<compile_context>
chip_gen: v6e
topology: v6e:2x2x1
jax: 0.10.0
libtpu: 0.0.40
codegen_flags: <defaults>
</compile_context>

<pallas_src>
import jax
import jax.numpy as jnp
from jax import lax
from jax.experimental import pallas as pl
from jax.experimental.pallas import tpu as pltpu


def _downsample_kernel(x_ref, sw_ref, rh_ref, w_ref, b_ref, o_ref):
    """One (batch, D-tile) step: MaxPool3d(2,2) -> 1x1x1 conv -> BN -> ReLU.

    x_ref : (1, Cin, 2*tDo, H, W)   VMEM  input slab (NCDHW, untransposed)
    sw_ref: (W, 2*Wo)               VMEM  [even | odd] column-selection (0/1)
    rh_ref: (2*Ho, H)               VMEM  [even ; odd] row-selection (0/1)
    w_ref : (Cout, Cin)             SMEM  conv weight with BN scale folded in
    b_ref : (Cout,)                 SMEM  BN shift
    o_ref : (1, Cout, tDo, Ho, Wo)  VMEM
    """
    _, cin, _, H, W = x_ref.shape
    _, cout, t_do, Ho, Wo = o_ref.shape

    sw = sw_ref[...]          # (W, 2*Wo)
    rh = rh_ref[...]          # (2*Ho, H)

    for do in range(t_do):
        # ---- 2x2x2 max pooling -------------------------------------------
        # depth pair: leading dim -> plain elementwise max (VPU)
        zd = jnp.maximum(x_ref[0, :, 2 * do], x_ref[0, :, 2 * do + 1])  # (Cin,H,W)

        pooled = []
        for ci in range(cin):
            # width pair: one MXU pass extracts even & odd columns, then max
            tw = jnp.dot(zd[ci], sw, preferred_element_type=jnp.float32)  # (H, 2Wo)
            tw = jnp.maximum(tw[:, :Wo], tw[:, Wo:])                      # (H, Wo)
            # height pair: same trick on rows
            th = jnp.dot(rh, tw, preferred_element_type=jnp.float32)      # (2Ho, Wo)
            th = jnp.maximum(th[:Ho, :], th[Ho:, :])                      # (Ho, Wo)
            pooled.append(th)

        # ---- 1x1x1 conv (+ folded BN) + ReLU ------------------------------
        # Channel counts are tiny (Cin=4, Cout=8): scalar-broadcast MACs on the
        # VPU; for large Cin*Cout this channel mix should move to an MXU matmul.
        for co in range(cout):
            acc = pooled[0] * w_ref[co, 0]
            for ci in range(1, cin):
                acc = acc + pooled[ci] * w_ref[co, ci]
            acc = jnp.maximum(acc + b_ref[co], 0.0)
            o_ref[0, co, do] = acc.astype(o_ref.dtype)


def downsample_max_cbr(x, conv_w, bn_gamma, bn_beta, bn_mean, bn_var, *,
                       eps=1e-3, vmem_block_budget=4 * 1024 * 1024):
    """Forward of DownSample(nIn, nOut, pool='max') with nIn != nOut.

    x      : (N, Cin, D, H, W)        NCDHW, as in PyTorch
    conv_w : (Cout, Cin, 1, 1, 1)     nn.Conv3d(nIn, nOut, 1, bias=False).weight
    bn_*   : (Cout,)                  BatchNorm3d affine params / running stats
    returns: (N, Cout, D//2, H//2, W//2)
    """
    N, Cin, D, H, W = x.shape
    Cout = conv_w.shape[0]
    assert conv_w.shape == (Cout, Cin, 1, 1, 1)
    assert D % 2 == 0 and H % 2 == 0 and W % 2 == 0, "MaxPool3d(2,2): even dims"
    Do, Ho, Wo = D // 2, H // 2, W // 2

    # Fold eval-mode BatchNorm into the 1x1 conv:  y = scale*conv(x) + shift
    scale = bn_gamma * lax.rsqrt(bn_var + eps)                            # (Cout,)
    w2d = (conv_w[:, :, 0, 0, 0] * scale[:, None]).astype(jnp.float32)   # (Cout,Cin)
    bias = (bn_beta - bn_mean * scale).astype(jnp.float32)               # (Cout,)

    # 0/1 selection matrices: sw has the even-column selector in its first Wo
    # columns and the odd-column selector in the last Wo; rh likewise for rows.
    j = lax.broadcasted_iota(jnp.int32, (W, 2 * Wo), 1)
    wi = lax.broadcasted_iota(jnp.int32, (W, 2 * Wo), 0)
    sw = (wi == jnp.where(j < Wo, 2 * j, 2 * (j - Wo) + 1)).astype(x.dtype)
    i = lax.broadcasted_iota(jnp.int32, (2 * Ho, H), 0)
    hi = lax.broadcasted_iota(jnp.int32, (2 * Ho, H), 1)
    rh = (hi == jnp.where(i < Ho, 2 * i, 2 * (i - Ho) + 1)).astype(x.dtype)

    # D-tile: largest divisor of Do whose input slab fits the VMEM budget,
    # preferring >= 4 grid steps so the DMA pipeline has work to hide.
    bytes_per_out_plane = Cin * 2 * H * W * x.dtype.itemsize
    divisors = [t for t in range(1, Do + 1) if Do % t == 0]
    fitting = [t for t in divisors if t * bytes_per_out_plane <= vmem_block_budget] or [1]
    pipelined = [t for t in fitting if N * (Do // t) >= 4]
    t_do = max(pipelined) if pipelined else max(fitting)

    grid = (N, Do // t_do)

    out = pl.pallas_call(
        _downsample_kernel,
        out_shape=jax.ShapeDtypeStruct((N, Cout, Do, Ho, Wo), x.dtype),
        grid_spec=pltpu.PrefetchScalarGridSpec(
            num_scalar_prefetch=0,
            grid=grid,
            in_specs=[
                pl.BlockSpec((1, Cin, 2 * t_do, H, W),
                             lambda n, dt: (n, 0, dt, 0, 0)),
                pl.BlockSpec((W, 2 * Wo), lambda n, dt: (0, 0)),
                pl.BlockSpec((2 * Ho, H), lambda n, dt: (0, 0)),
                pl.BlockSpec(memory_space=pltpu.MemorySpace.SMEM),
                pl.BlockSpec(memory_space=pltpu.MemorySpace.SMEM),
            ],
            out_specs=pl.BlockSpec((1, Cout, t_do, Ho, Wo),
                                   lambda n, dt: (n, 0, dt, 0, 0)),
        ),
        compiler_params=pltpu.CompilerParams(
            dimension_semantics=("parallel", "parallel"),
            vmem_limit_bytes=48 * 1024 * 1024,
        ),
    )(x, sw, rh, w2d, bias)
    return out


if __name__ == "__main__":
    # Small shapes consistent with the module: N=2, nIn=4, nOut=8, 16^3 volume.
    N, Cin, Cout = 2, 4, 8
    D = H = W = 16

    key = jax.random.PRNGKey(0)
    kx, kw, kg, kb, km, kv = jax.random.split(key, 6)
    x = jax.random.normal(kx, (N, Cin, D, H, W), dtype=jnp.float32)
    conv_w = jax.random.normal(kw, (Cout, Cin, 1, 1, 1),
                               dtype=jnp.float32) * (1.0 / Cin) ** 0.5
    bn_gamma = 1.0 + 0.1 * jax.random.normal(kg, (Cout,), dtype=jnp.float32)
    bn_beta = 0.1 * jax.random.normal(kb, (Cout,), dtype=jnp.float32)
    bn_mean = 0.1 * jax.random.normal(km, (Cout,), dtype=jnp.float32)
    bn_var = 0.5 + jnp.abs(jax.random.normal(kv, (Cout,), dtype=jnp.float32))

    out = downsample_max_cbr(x, conv_w, bn_gamma, bn_beta, bn_mean, bn_var)
    out = jax.block_until_ready(out)

    # Pure-XLA reference of the same forward pass.
    xp = x.reshape(N, Cin, D // 2, 2, H // 2, 2, W // 2, 2).max(axis=(3, 5, 7))
    conv = jnp.einsum('oc,ncdhw->nodhw', conv_w[:, :, 0, 0, 0], xp)
    scale = bn_gamma / jnp.sqrt(bn_var + 1e-3)
    ref = jnp.maximum(conv * scale[None, :, None, None, None]
                      + (bn_beta - bn_mean * scale)[None, :, None, None, None],
                      0.0)

    assert out.shape == (N, Cout, D // 2, H // 2, W // 2)
    err = float(jnp.max(jnp.abs(out - ref)))
    assert err < 1e-3, f"max abs err = {err}"
    print("KERNEL_OK")
</pallas_src>

<mosaic_0001>
module attributes {stable_mosaic.version = 11 : i64} {
  func.func @_downsample_kernel(%arg0: i32, %arg1: i32, %arg2: memref<1x4x8x16x16xf32, #tpu.memory_space<vmem>>, %arg3: memref<16x16xf32, #tpu.memory_space<vmem>>, %arg4: memref<16x16xf32, #tpu.memory_space<vmem>>, %arg5: memref<8x4xf32, #tpu.memory_space<smem>>, %arg6: memref<8xf32, #tpu.memory_space<smem>>, %arg7: memref<1x8x4x8x8xf32, #tpu.memory_space<vmem>>) attributes {dimension_semantics = [#tpu.dimension_semantics<parallel>, #tpu.dimension_semantics<parallel>], iteration_bounds = array<i64: 2, 2>, scalar_prefetch = 0 : i64, scratch_operands = 0 : i64, tpu.core_type = #tpu.core_type<tc>, window_params = [{transform_indices = @transform_0, window_bounds = array<i64: 1, 4, 8, 16, 16>}, {pipeline_mode = #tpu.pipeline_mode<synchronous>, transform_indices = @transform_1, window_bounds = array<i64: 16, 16>}, {pipeline_mode = #tpu.pipeline_mode<synchronous>, transform_indices = @transform_2, window_bounds = array<i64: 16, 16>}, {transform_indices = @transform_3, window_bounds = array<i64: 8, 4>}, {transform_indices = @transform_4, window_bounds = array<i64: 8>}, {transform_indices = @transform_5, window_bounds = array<i64: 1, 8, 4, 8, 8>}]} {
    %c0 = arith.constant 0 : index
    %c0_0 = arith.constant 0 : index
    %0 = vector.load %arg3[%c0, %c0_0] : memref<16x16xf32, #tpu.memory_space<vmem>>, vector<16x16xf32>
    %c0_1 = arith.constant 0 : index
    %c0_2 = arith.constant 0 : index
    %1 = vector.load %arg4[%c0_1, %c0_2] : memref<16x16xf32, #tpu.memory_space<vmem>>, vector<16x16xf32>
    %c0_3 = arith.constant 0 : index
    %c0_4 = arith.constant 0 : index
    %c0_5 = arith.constant 0 : index
    %c0_6 = arith.constant 0 : index
    %c0_7 = arith.constant 0 : index
    %2 = vector.load %arg2[%c0_3, %c0_4, %c0_5, %c0_6, %c0_7] : memref<1x4x8x16x16xf32, #tpu.memory_space<vmem>>, vector<1x4x1x16x16xf32>
    %3 = vector.shape_cast %2 : vector<1x4x1x16x16xf32> to vector<4x16x16xf32>
    %c0_8 = arith.constant 0 : index
    %c0_9 = arith.constant 0 : index
    %c1 = arith.constant 1 : index
    %c0_10 = arith.constant 0 : index
    %c0_11 = arith.constant 0 : index
    %4 = vector.load %arg2[%c0_8, %c0_9, %c1, %c0_10, %c0_11] : memref<1x4x8x16x16xf32, #tpu.memory_space<vmem>>, vector<1x4x1x16x16xf32>
    %5 = vector.shape_cast %4 : vector<1x4x1x16x16xf32> to vector<4x16x16xf32>
    %6 = arith.maximumf %3, %5 : vector<4x16x16xf32>
    %7 = vector.extract_strided_slice %6 {offsets = [0, 0, 0], sizes = [1, 16, 16], strides = [1, 1, 1]} : vector<4x16x16xf32> to vector<1x16x16xf32>
    %8 = vector.shape_cast %7 : vector<1x16x16xf32> to vector<16x16xf32>
    %cst = arith.constant dense<0.000000e+00> : vector<16x16xf32>
    %9 = tpu.matmul %8, %0, %cst {dimension_numbers = #tpu.dot_dimension_numbers<[1], [0], [0], [1], [0, 0, 1, 1], [], []>} : vector<16x16xf32>, vector<16x16xf32>, vector<16x16xf32> -> vector<16x16xf32>
    %10 = vector.extract_strided_slice %9 {offsets = [0, 0], sizes = [16, 8], strides = [1, 1]} : vector<16x16xf32> to vector<16x8xf32>
    %11 = vector.extract_strided_slice %9 {offsets = [0, 8], sizes = [16, 8], strides = [1, 1]} : vector<16x16xf32> to vector<16x8xf32>
    %12 = arith.maximumf %10, %11 : vector<16x8xf32>
    %cst_12 = arith.constant dense<0.000000e+00> : vector<16x8xf32>
    %13 = tpu.matmul %1, %12, %cst_12 {dimension_numbers = #tpu.dot_dimension_numbers<[1], [0], [0], [1], [0, 0, 1, 1], [], []>} : vector<16x16xf32>, vector<16x8xf32>, vector<16x8xf32> -> vector<16x8xf32>
    %14 = vector.extract_strided_slice %13 {offsets = [0, 0], sizes = [8, 8], strides = [1, 1]} : vector<16x8xf32> to vector<8x8xf32>
    %15 = vector.extract_strided_slice %13 {offsets = [8, 0], sizes = [8, 8], strides = [1, 1]} : vector<16x8xf32> to vector<8x8xf32>
    %16 = arith.maximumf %14, %15 : vector<8x8xf32>
    %17 = vector.extract_strided_slice %6 {offsets = [1, 0, 0], sizes = [1, 16, 16], strides = [1, 1, 1]} : vector<4x16x16xf32> to vector<1x16x16xf32>
    %18 = vector.shape_cast %17 : vector<1x16x16xf32> to vector<16x16xf32>
    %cst_13 = arith.constant dense<0.000000e+00> : vector<16x16xf32>
    %19 = tpu.matmul %18, %0, %cst_13 {dimension_numbers = #tpu.dot_dimension_numbers<[1], [0], [0], [1], [0, 0, 1, 1], [], []>} : vector<16x16xf32>, vector<16x16xf32>, vector<16x16xf32> -> vector<16x16xf32>
    %20 = vector.extract_strided_slice %19 {offsets = [0, 0], sizes = [16, 8], strides = [1, 1]} : vector<16x16xf32> to vector<16x8xf32>
    %21 = vector.extract_strided_slice %19 {offsets = [0, 8], sizes = [16, 8], strides = [1, 1]} : vector<16x16xf32> to vector<16x8xf32>
    %22 = arith.maximumf %20, %21 : vector<16x8xf32>
    %cst_14 = arith.constant dense<0.000000e+00> : vector<16x8xf32>
    %23 = tpu.matmul %1, %22, %cst_14 {dimension_numbers = #tpu.dot_dimension_numbers<[1], [0], [0], [1], [0, 0, 1, 1], [], []>} : vector<16x16xf32>, vector<16x8xf32>, vector<16x8xf32> -> vector<16x8xf32>
    %24 = vector.extract_strided_slice %23 {offsets = [0, 0], sizes = [8, 8], strides = [1, 1]} : vector<16x8xf32> to vector<8x8xf32>
    %25 = vector.extract_strided_slice %23 {offsets = [8, 0], sizes = [8, 8], strides = [1, 1]} : vector<16x8xf32> to vector<8x8xf32>
    %26 = arith.maximumf %24, %25 : vector<8x8xf32>
    %27 = vector.extract_strided_slice %6 {offsets = [2, 0, 0], sizes = [1, 16, 16], strides = [1, 1, 1]} : vector<4x16x16xf32> to vector<1x16x16xf32>
    %28 = vector.shape_cast %27 : vector<1x16x16xf32> to vector<16x16xf32>
    %cst_15 = arith.constant dense<0.000000e+00> : vector<16x16xf32>
    %29 = tpu.matmul %28, %0, %cst_15 {dimension_numbers = #tpu.dot_dimension_numbers<[1], [0], [0], [1], [0, 0, 1, 1], [], []>} : vector<16x16xf32>, vector<16x16xf32>, vector<16x16xf32> -> vector<16x16xf32>
    %30 = vector.extract_strided_slice %29 {offsets = [0, 0], sizes = [16, 8], strides = [1, 1]} : vector<16x16xf32> to vector<16x8xf32>
    %31 = vector.extract_strided_slice %29 {offsets = [0, 8], sizes = [16, 8], strides = [1, 1]} : vector<16x16xf32> to vector<16x8xf32>
    %32 = arith.maximumf %30, %31 : vector<16x8xf32>
    %cst_16 = arith.constant dense<0.000000e+00> : vector<16x8xf32>
    %33 = tpu.matmul %1, %32, %cst_16 {dimension_numbers = #tpu.dot_dimension_numbers<[1], [0], [0], [1], [0, 0, 1, 1], [], []>} : vector<16x16xf32>, vector<16x8xf32>, vector<16x8xf32> -> vector<16x8xf32>
    %34 = vector.extract_strided_slice %33 {offsets = [0, 0], sizes = [8, 8], strides = [1, 1]} : vector<16x8xf32> to vector<8x8xf32>
    %35 = vector.extract_strided_slice %33 {offsets = [8, 0], sizes = [8, 8], strides = [1, 1]} : vector<16x8xf32> to vector<8x8xf32>
    %36 = arith.maximumf %34, %35 : vector<8x8xf32>
    %37 = vector.extract_strided_slice %6 {offsets = [3, 0, 0], sizes = [1, 16, 16], strides = [1, 1, 1]} : vector<4x16x16xf32> to vector<1x16x16xf32>
    %38 = vector.shape_cast %37 : vector<1x16x16xf32> to vector<16x16xf32>
    %cst_17 = arith.constant dense<0.000000e+00> : vector<16x16xf32>
    %39 = tpu.matmul %38, %0, %cst_17 {dimension_numbers = #tpu.dot_dimension_numbers<[1], [0], [0], [1], [0, 0, 1, 1], [], []>} : vector<16x16xf32>, vector<16x16xf32>, vector<16x16xf32> -> vector<16x16xf32>
    %40 = vector.extract_strided_slice %39 {offsets = [0, 0], sizes = [16, 8], strides = [1, 1]} : vector<16x16xf32> to vector<16x8xf32>
    %41 = vector.extract_strided_slice %39 {offsets = [0, 8], sizes = [16, 8], strides = [1, 1]} : vector<16x16xf32> to vector<16x8xf32>
    %42 = arith.maximumf %40, %41 : vector<16x8xf32>
    %cst_18 = arith.constant dense<0.000000e+00> : vector<16x8xf32>
    %43 = tpu.matmul %1, %42, %cst_18 {dimension_numbers = #tpu.dot_dimension_numbers<[1], [0], [0], [1], [0, 0, 1, 1], [], []>} : vector<16x16xf32>, vector<16x8xf32>, vector<16x8xf32> -> vector<16x8xf32>
    %44 = vector.extract_strided_slice %43 {offsets = [0, 0], sizes = [8, 8], strides = [1, 1]} : vector<16x8xf32> to vector<8x8xf32>
    %45 = vector.extract_strided_slice %43 {offsets = [8, 0], sizes = [8, 8], strides = [1, 1]} : vector<16x8xf32> to vector<8x8xf32>
    %46 = arith.maximumf %44, %45 : vector<8x8xf32>
    %c0_19 = arith.constant 0 : index
    %c0_20 = arith.constant 0 : index
    %47 = memref.load %arg5[%c0_19, %c0_20] : memref<8x4xf32, #tpu.memory_space<smem>>
    %48 = vector.broadcast %47 : f32 to vector<8x8xf32>
    %49 = arith.mulf %16, %48 : vector<8x8xf32>
    %c0_21 = arith.constant 0 : index
    %c1_22 = arith.constant 1 : index
    %50 = memref.load %arg5[%c0_21, %c1_22] : memref<8x4xf32, #tpu.memory_space<smem>>
    %51 = vector.broadcast %50 : f32 to vector<8x8xf32>
    %52 = arith.mulf %26, %51 : vector<8x8xf32>
    %53 = arith.addf %49, %52 : vector<8x8xf32>
    %c0_23 = arith.constant 0 : index
    %c2 = arith.constant 2 : index
    %54 = memref.load %arg5[%c0_23, %c2] : memref<8x4xf32, #tpu.memory_space<smem>>
    %55 = vector.broadcast %54 : f32 to vector<8x8xf32>
    %56 = arith.mulf %36, %55 : vector<8x8xf32>
    %57 = arith.addf %53, %56 : vector<8x8xf32>
    %c0_24 = arith.constant 0 : index
    %c3 = arith.constant 3 : index
    %58 = memref.load %arg5[%c0_24, %c3] : memref<8x4xf32, #tpu.memory_space<smem>>
    %59 = vector.broadcast %58 : f32 to vector<8x8xf32>
    %60 = arith.mulf %46, %59 : vector<8x8xf32>
    %61 = arith.addf %57, %60 : vector<8x8xf32>
    %c0_25 = arith.constant 0 : index
    %62 = memref.load %arg6[%c0_25] : memref<8xf32, #tpu.memory_space<smem>>
    %63 = vector.broadcast %62 : f32 to vector<8x8xf32>
    %64 = arith.addf %61, %63 : vector<8x8xf32>
    %cst_26 = arith.constant 0.000000e+00 : f32
    %65 = vector.broadcast %cst_26 : f32 to vector<8x8xf32>
    %66 = arith.maximumf %64, %65 : vector<8x8xf32>
    %c0_27 = arith.constant 0 : index
    %c0_28 = arith.constant 0 : index
    %c0_29 = arith.constant 0 : index
    %c0_30 = arith.constant 0 : index
    %c0_31 = arith.constant 0 : index
    %67 = vector.load %arg7[%c0_27, %c0_28, %c0_29, %c0_30, %c0_31] : memref<1x8x4x8x8xf32, #tpu.memory_space<vmem>>, vector<1x1x1x8x8xf32>
    %68 = vector.shape_cast %67 : vector<1x1x1x8x8xf32> to vector<8x8xf32>
    %69 = vector.shape_cast %66 : vector<8x8xf32> to vector<1x1x1x8x8xf32>
    tpu.vector_store %arg7[%c0_27, %c0_28, %c0_29, %c0_30, %c0_31], %69 {strides = array<i32>} : memref<1x8x4x8x8xf32, #tpu.memory_space<vmem>>, vector<1x1x1x8x8xf32>,
    %c1_32 = arith.constant 1 : index
    %c0_33 = arith.constant 0 : index
    %70 = memref.load %arg5[%c1_32, %c0_33] : memref<8x4xf32, #tpu.memory_space<smem>>
    %71 = vector.broadcast %70 : f32 to vector<8x8xf32>
    %72 = arith.mulf %16, %71 : vector<8x8xf32>
    %c1_34 = arith.constant 1 : index
    %c1_35 = arith.constant 1 : index
    %73 = memref.load %arg5[%c1_34, %c1_35] : memref<8x4xf32, #tpu.memory_space<smem>>
    %74 = vector.broadcast %73 : f32 to vector<8x8xf32>
    %75 = arith.mulf %26, %74 : vector<8x8xf32>
    %76 = arith.addf %72, %75 : vector<8x8xf32>
    %c1_36 = arith.constant 1 : index
    %c2_37 = arith.constant 2 : index
    %77 = memref.load %arg5[%c1_36, %c2_37] : memref<8x4xf32, #tpu.memory_space<smem>>
    %78 = vector.broadcast %77 : f32 to vector<8x8xf32>
    %79 = arith.mulf %36, %78 : vector<8x8xf32>
    %80 = arith.addf %76, %79 : vector<8x8xf32>
    %c1_38 = arith.constant 1 : index
    %c3_39 = arith.constant 3 : index
    %81 = memref.load %arg5[%c1_38, %c3_39] : memref<8x4xf32, #tpu.memory_space<smem>>
    %82 = vector.broadcast %81 : f32 to vector<8x8xf32>
    %83 = arith.mulf %46, %82 : vector<8x8xf32>
    %84 = arith.addf %80, %83 : vector<8x8xf32>
    %c1_40 = arith.constant 1 : index
    %85 = memref.load %arg6[%c1_40] : memref<8xf32, #tpu.memory_space<smem>>
    %86 = vector.broadcast %85 : f32 to vector<8x8xf32>
    %87 = arith.addf %84, %86 : vector<8x8xf32>
    %cst_41 = arith.constant 0.000000e+00 : f32
    %88 = vector.broadcast %cst_41 : f32 to vector<8x8xf32>
    %89 = arith.maximumf %87, %88 : vector<8x8xf32>
    %c0_42 = arith.constant 0 : index
    %c1_43 = arith.constant 1 : index
    %c0_44 = arith.constant 0 : index
    %c0_45 = arith.constant 0 : index
    %c0_46 = arith.constant 0 : index
    %90 = vector.load %arg7[%c0_42, %c1_43, %c0_44, %c0_45, %c0_46] : memref<1x8x4x8x8xf32, #tpu.memory_space<vmem>>, vector<1x1x1x8x8xf32>
    %91 = vector.shape_cast %90 : vector<1x1x1x8x8xf32> to vector<8x8xf32>
    %92 = vector.shape_cast %89 : vector<8x8xf32> to vector<1x1x1x8x8xf32>
    tpu.vector_store %arg7[%c0_42, %c1_43, %c0_44, %c0_45, %c0_46], %92 {strides = array<i32>} : memref<1x8x4x8x8xf32, #tpu.memory_space<vmem>>, vector<1x1x1x8x8xf32>,
    %c2_47 = arith.constant 2 : index
    %c0_48 = arith.constant 0 : index
    %93 = memref.load %arg5[%c2_47, %c0_48] : memref<8x4xf32, #tpu.memory_space<smem>>
    %94 = vector.broadcast %93 : f32 to vector<8x8xf32>
    %95 = arith.mulf %16, %94 : vector<8x8xf32>
    %c2_49 = arith.constant 2 : index
    %c1_50 = arith.constant 1 : index
    %96 = memref.load %arg5[%c2_49, %c1_50] : memref<8x4xf32, #tpu.memory_space<smem>>
    %97 = vector.broadcast %96 : f32 to vector<8x8xf32>
    %98 = arith.mulf %26, %97 : vector<8x8xf32>
    %99 = arith.addf %95, %98 : vector<8x8xf32>
    %c2_51 = arith.constant 2 : index
    %c2_52 = arith.constant 2 : index
    %100 = memref.load %arg5[%c2_51, %c2_52] : memref<8x4xf32, #tpu.memory_space<smem>>
    %101 = vector.broadcast %100 : f32 to vector<8x8xf32>
    %102 = arith.mulf %36, %101 : vector<8x8xf32>
    %103 = arith.addf %99, %102 : vector<8x8xf32>
    %c2_53 = arith.constant 2 : index
    %c3_54 = arith.constant 3 : index
    %104 = memref.load %arg5[%c2_53, %c3_54] : memref<8x4xf32, #tpu.memory_space<smem>>
    %105 = vector.broadcast %104 : f32 to vector<8x8xf32>
    %106 = arith.mulf %46, %105 : vector<8x8xf32>
    %107 = arith.addf %103, %106 : vector<8x8xf32>
    %c2_55 = arith.constant 2 : index
    %108 = memref.load %arg6[%c2_55] : memref<8xf32, #tpu.memory_space<smem>>
    %109 = vector.broadcast %108 : f32 to vector<8x8xf32>
    %110 = arith.addf %107, %109 : vector<8x8xf32>
    %cst_56 = arith.constant 0.000000e+00 : f32
    %111 = vector.broadcast %cst_56 : f32 to vector<8x8xf32>
    %112 = arith.maximumf %110, %111 : vector<8x8xf32>
    %c0_57 = arith.constant 0 : index
    %c2_58 = arith.constant 2 : index
    %c0_59 = arith.constant 0 : index
    %c0_60 = arith.constant 0 : index
    %c0_61 = arith.constant 0 : index
    %113 = vector.load %arg7[%c0_57, %c2_58, %c0_59, %c0_60, %c0_61] : memref<1x8x4x8x8xf32, #tpu.memory_space<vmem>>, vector<1x1x1x8x8xf32>
    %114 = vector.shape_cast %113 : vector<1x1x1x8x8xf32> to vector<8x8xf32>
    %115 = vector.shape_cast %112 : vector<8x8xf32> to vector<1x1x1x8x8xf32>
    tpu.vector_store %arg7[%c0_57, %c2_58, %c0_59, %c0_60, %c0_61], %115 {strides = array<i32>} : memref<1x8x4x8x8xf32, #tpu.memory_space<vmem>>, vector<1x1x1x8x8xf32>,
    %c3_62 = arith.constant 3 : index
    %c0_63 = arith.constant 0 : index
    %116 = memref.load %arg5[%c3_62, %c0_63] : memref<8x4xf32, #tpu.memory_space<smem>>
    %117 = vector.broadcast %116 : f32 to vector<8x8xf32>
    %118 = arith.mulf %16, %117 : vector<8x8xf32>
    %c3_64 = arith.constant 3 : index
    %c1_65 = arith.constant 1 : index
    %119 = memref.load %arg5[%c3_64, %c1_65] : memref<8x4xf32, #tpu.memory_space<smem>>
    %120 = vector.broadcast %119 : f32 to vector<8x8xf32>
    %121 = arith.mulf %26, %120 : vector<8x8xf32>
    %122 = arith.addf %118, %121 : vector<8x8xf32>
    %c3_66 = arith.constant 3 : index
    %c2_67 = arith.constant 2 : index
    %123 = memref.load %arg5[%c3_66, %c2_67] : memref<8x4xf32, #tpu.memory_space<smem>>
    %124 = vector.broadcast %123 : f32 to vector<8x8xf32>
    %125 = arith.mulf %36, %124 : vector<8x8xf32>
    %126 = arith.addf %122, %125 : vector<8x8xf32>
    %c3_68 = arith.constant 3 : index
    %c3_69 = arith.constant 3 : index
    %127 = memref.load %arg5[%c3_68, %c3_69] : memref<8x4xf32, #tpu.memory_space<smem>>
    %128 = vector.broadcast %127 : f32 to vector<8x8xf32>
    %129 = arith.mulf %46, %128 : vector<8x8xf32>
    %130 = arith.addf %126, %129 : vector<8x8xf32>
    %c3_70 = arith.constant 3 : index
    %131 = memref.load %arg6[%c3_70] : memref<8xf32, #tpu.memory_space<smem>>
    %132 = vector.broadcast %131 : f32 to vector<8x8xf32>
    %133 = arith.addf %130, %132 : vector<8x8xf32>
    %cst_71 = arith.constant 0.000000e+00 : f32
    %134 = vector.broadcast %cst_71 : f32 to vector<8x8xf32>
    %135 = arith.maximumf %133, %134 : vector<8x8xf32>
    %c0_72 = arith.constant 0 : index
    %c3_73 = arith.constant 3 : index
    %c0_74 = arith.constant 0 : index
    %c0_75 = arith.constant 0 : index
    %c0_76 = arith.constant 0 : index
    %136 = vector.load %arg7[%c0_72, %c3_73, %c0_74, %c0_75, %c0_76] : memref<1x8x4x8x8xf32, #tpu.memory_space<vmem>>, vector<1x1x1x8x8xf32>
    %137 = vector.shape_cast %136 : vector<1x1x1x8x8xf32> to vector<8x8xf32>
    %138 = vector.shape_cast %135 : vector<8x8xf32> to vector<1x1x1x8x8xf32>
    tpu.vector_store %arg7[%c0_72, %c3_73, %c0_74, %c0_75, %c0_76], %138 {strides = array<i32>} : memref<1x8x4x8x8xf32, #tpu.memory_space<vmem>>, vector<1x1x1x8x8xf32>,
    %c4 = arith.constant 4 : index
    %c0_77 = arith.constant 0 : index
    %139 = memref.load %arg5[%c4, %c0_77] : memref<8x4xf32, #tpu.memory_space<smem>>
    %140 = vector.broadcast %139 : f32 to vector<8x8xf32>
    %141 = arith.mulf %16, %140 : vector<8x8xf32>
    %c4_78 = arith.constant 4 : index
    %c1_79 = arith.constant 1 : index
    %142 = memref.load %arg5[%c4_78, %c1_79] : memref<8x4xf32, #tpu.memory_space<smem>>
    %143 = vector.broadcast %142 : f32 to vector<8x8xf32>
    %144 = arith.mulf %26, %143 : vector<8x8xf32>
    %145 = arith.addf %141, %144 : vector<8x8xf32>
    %c4_80 = arith.constant 4 : index
    %c2_81 = arith.constant 2 : index
    %146 = memref.load %arg5[%c4_80, %c2_81] : memref<8x4xf32, #tpu.memory_space<smem>>
    %147 = vector.broadcast %146 : f32 to vector<8x8xf32>
    %148 = arith.mulf %36, %147 : vector<8x8xf32>
    %149 = arith.addf %145, %148 : vector<8x8xf32>
    %c4_82 = arith.constant 4 : index
    %c3_83 = arith.constant 3 : index
    %150 = memref.load %arg5[%c4_82, %c3_83] : memref<8x4xf32, #tpu.memory_space<smem>>
    %151 = vector.broadcast %150 : f32 to vector<8x8xf32>
    %152 = arith.mulf %46, %151 : vector<8x8xf32>
    %153 = arith.addf %149, %152 : vector<8x8xf32>
    %c4_84 = arith.constant 4 : index
    %154 = memref.load %arg6[%c4_84] : memref<8xf32, #tpu.memory_space<smem>>
    %155 = vector.broadcast %154 : f32 to vector<8x8xf32>
    %156 = arith.addf %153, %155 : vector<8x8xf32>
    %cst_85 = arith.constant 0.000000e+00 : f32
    %157 = vector.broadcast %cst_85 : f32 to vector<8x8xf32>
    %158 = arith.maximumf %156, %157 : vector<8x8xf32>
    %c0_86 = arith.constant 0 : index
    %c4_87 = arith.constant 4 : index
    %c0_88 = arith.constant 0 : index
    %c0_89 = arith.constant 0 : index
    %c0_90 = arith.constant 0 : index
    %159 = vector.load %arg7[%c0_86, %c4_87, %c0_88, %c0_89, %c0_90] : memref<1x8x4x8x8xf32, #tpu.memory_space<vmem>>, vector<1x1x1x8x8xf32>
    %160 = vector.shape_cast %159 : vector<1x1x1x8x8xf32> to vector<8x8xf32>
    %161 = vector.shape_cast %158 : vector<8x8xf32> to vector<1x1x1x8x8xf32>
    tpu.vector_store %arg7[%c0_86, %c4_87, %c0_88, %c0_89, %c0_90], %161 {strides = array<i32>} : memref<1x8x4x8x8xf32, #tpu.memory_space<vmem>>, vector<1x1x1x8x8xf32>,
    %c5 = arith.constant 5 : index
    %c0_91 = arith.constant 0 : index
    %162 = memref.load %arg5[%c5, %c0_91] : memref<8x4xf32, #tpu.memory_space<smem>>
    %163 = vector.broadcast %162 : f32 to vector<8x8xf32>
    %164 = arith.mulf %16, %163 : vector<8x8xf32>
    %c5_92 = arith.constant 5 : index
    %c1_93 = arith.constant 1 : index
    %165 = memref.load %arg5[%c5_92, %c1_93] : memref<8x4xf32, #tpu.memory_space<smem>>
    %166 = vector.broadcast %165 : f32 to vector<8x8xf32>
    %167 = arith.mulf %26, %166 : vector<8x8xf32>
    %168 = arith.addf %164, %167 : vector<8x8xf32>
    %c5_94 = arith.constant 5 : index
    %c2_95 = arith.constant 2 : index
    %169 = memref.load %arg5[%c5_94, %c2_95] : memref<8x4xf32, #tpu.memory_space<smem>>
    %170 = vector.broadcast %169 : f32 to vector<8x8xf32>
    %171 = arith.mulf %36, %170 : vector<8x8xf32>
    %172 = arith.addf %168, %171 : vector<8x8xf32>
    %c5_96 = arith.constant 5 : index
    %c3_97 = arith.constant 3 : index
    %173 = memref.load %arg5[%c5_96, %c3_97] : memref<8x4xf32, #tpu.memory_space<smem>>
    %174 = vector.broadcast %173 : f32 to vector<8x8xf32>
    %175 = arith.mulf %46, %174 : vector<8x8xf32>
    %176 = arith.addf %172, %175 : vector<8x8xf32>
    %c5_98 = arith.constant 5 : index
    %177 = memref.load %arg6[%c5_98] : memref<8xf32, #tpu.memory_space<smem>>
    %178 = vector.broadcast %177 : f32 to vector<8x8xf32>
    %179 = arith.addf %176, %178 : vector<8x8xf32>
    %cst_99 = arith.constant 0.000000e+00 : f32
    %180 = vector.broadcast %cst_99 : f32 to vector<8x8xf32>
    %181 = arith.maximumf %179, %180 : vector<8x8xf32>
    %c0_100 = arith.constant 0 : index
    %c5_101 = arith.constant 5 : index
    %c0_102 = arith.constant 0 : index
    %c0_103 = arith.constant 0 : index
    %c0_104 = arith.constant 0 : index
    %182 = vector.load %arg7[%c0_100, %c5_101, %c0_102, %c0_103, %c0_104] : memref<1x8x4x8x8xf32, #tpu.memory_space<vmem>>, vector<1x1x1x8x8xf32>
    %183 = vector.shape_cast %182 : vector<1x1x1x8x8xf32> to vector<8x8xf32>
    %184 = vector.shape_cast %181 : vector<8x8xf32> to vector<1x1x1x8x8xf32>
    tpu.vector_store %arg7[%c0_100, %c5_101, %c0_102, %c0_103, %c0_104], %184 {strides = array<i32>} : memref<1x8x4x8x8xf32, #tpu.memory_space<vmem>>, vector<1x1x1x8x8xf32>,
    %c6 = arith.constant 6 : index
    %c0_105 = arith.constant 0 : index
    %185 = memref.load %arg5[%c6, %c0_105] : memref<8x4xf32, #tpu.memory_space<smem>>
    %186 = vector.broadcast %185 : f32 to vector<8x8xf32>
    %187 = arith.mulf %16, %186 : vector<8x8xf32>
    %c6_106 = arith.constant 6 : index
    %c1_107 = arith.constant 1 : index
    %188 = memref.load %arg5[%c6_106, %c1_107] : memref<8x4xf32, #tpu.memory_space<smem>>
    %189 = vector.broadcast %188 : f32 to vector<8x8xf32>
    %190 = arith.mulf %26, %189 : vector<8x8xf32>
    %191 = arith.addf %187, %190 : vector<8x8xf32>
    %c6_108 = arith.constant 6 : index
    %c2_109 = arith.constant 2 : index
    %192 = memref.load %arg5[%c6_108, %c2_109] : memref<8x4xf32, #tpu.memory_space<smem>>
    %193 = vector.broadcast %192 : f32 to vector<8x8xf32>
    %194 = arith.mulf %36, %193 : vector<8x8xf32>
    %195 = arith.addf %191, %194 : vector<8x8xf32>
    %c6_110 = arith.constant 6 : index
    %c3_111 = arith.constant 3 : index
    %196 = memref.load %arg5[%c6_110, %c3_111] : memref<8x4xf32, #tpu.memory_space<smem>>
    %197 = vector.broadcast %196 : f32 to vector<8x8xf32>
    %198 = arith.mulf %46, %197 : vector<8x8xf32>
    %199 = arith.addf %195, %198 : vector<8x8xf32>
    %c6_112 = arith.constant 6 : index
    %200 = memref.load %arg6[%c6_112] : memref<8xf32, #tpu.memory_space<smem>>
    %201 = vector.broadcast %200 : f32 to vector<8x8xf32>
    %202 = arith.addf %199, %201 : vector<8x8xf32>
    %cst_113 = arith.constant 0.000000e+00 : f32
    %203 = vector.broadcast %cst_113 : f32 to vector<8x8xf32>
    %204 = arith.maximumf %202, %203 : vector<8x8xf32>
    %c0_114 = arith.constant 0 : index
    %c6_115 = arith.constant 6 : index
    %c0_116 = arith.constant 0 : index
    %c0_117 = arith.constant 0 : index
    %c0_118 = arith.constant 0 : index
    %205 = vector.load %arg7[%c0_114, %c6_115, %c0_116, %c0_117, %c0_118] : memref<1x8x4x8x8xf32, #tpu.memory_space<vmem>>, vector<1x1x1x8x8xf32>
    %206 = vector.shape_cast %205 : vector<1x1x1x8x8xf32> to vector<8x8xf32>
    %207 = vector.shape_cast %204 : vector<8x8xf32> to vector<1x1x1x8x8xf32>
    tpu.vector_store %arg7[%c0_114, %c6_115, %c0_116, %c0_117, %c0_118], %207 {strides = array<i32>} : memref<1x8x4x8x8xf32, #tpu.memory_space<vmem>>, vector<1x1x1x8x8xf32>,
    %c7 = arith.constant 7 : index
    %c0_119 = arith.constant 0 : index
    %208 = memref.load %arg5[%c7, %c0_119] : memref<8x4xf32, #tpu.memory_space<smem>>
    %209 = vector.broadcast %208 : f32 to vector<8x8xf32>
    %210 = arith.mulf %16, %209 : vector<8x8xf32>
    %c7_120 = arith.constant 7 : index
    %c1_121 = arith.constant 1 : index
    %211 = memref.load %arg5[%c7_120, %c1_121] : memref<8x4xf32, #tpu.memory_space<smem>>
    %212 = vector.broadcast %211 : f32 to vector<8x8xf32>
    %213 = arith.mulf %26, %212 : vector<8x8xf32>
    %214 = arith.addf %210, %213 : vector<8x8xf32>
    %c7_122 = arith.constant 7 : index
    %c2_123 = arith.constant 2 : index
    %215 = memref.load %arg5[%c7_122, %c2_123] : memref<8x4xf32, #tpu.memory_space<smem>>
    %216 = vector.broadcast %215 : f32 to vector<8x8xf32>
    %217 = arith.mulf %36, %216 : vector<8x8xf32>
    %218 = arith.addf %214, %217 : vector<8x8xf32>
    %c7_124 = arith.constant 7 : index
    %c3_125 = arith.constant 3 : index
    %219 = memref.load %arg5[%c7_124, %c3_125] : memref<8x4xf32, #tpu.memory_space<smem>>
    %220 = vector.broadcast %219 : f32 to vector<8x8xf32>
    %221 = arith.mulf %46, %220 : vector<8x8xf32>
    %222 = arith.addf %218, %221 : vector<8x8xf32>
    %c7_126 = arith.constant 7 : index
    %223 = memref.load %arg6[%c7_126] : memref<8xf32, #tpu.memory_space<smem>>
    %224 = vector.broadcast %223 : f32 to vector<8x8xf32>
    %225 = arith.addf %222, %224 : vector<8x8xf32>
    %cst_127 = arith.constant 0.000000e+00 : f32
    %226 = vector.broadcast %cst_127 : f32 to vector<8x8xf32>
    %227 = arith.maximumf %225, %226 : vector<8x8xf32>
    %c0_128 = arith.constant 0 : index
    %c7_129 = arith.constant 7 : index
    %c0_130 = arith.constant 0 : index
    %c0_131 = arith.constant 0 : index
    %c0_132 = arith.constant 0 : index
    %228 = vector.load %arg7[%c0_128, %c7_129, %c0_130, %c0_131, %c0_132] : memref<1x8x4x8x8xf32, #tpu.memory_space<vmem>>, vector<1x1x1x8x8xf32>
    %229 = vector.shape_cast %228 : vector<1x1x1x8x8xf32> to vector<8x8xf32>
    %230 = vector.shape_cast %227 : vector<8x8xf32> to vector<1x1x1x8x8xf32>
    tpu.vector_store %arg7[%c0_128, %c7_129, %c0_130, %c0_131, %c0_132], %230 {strides = array<i32>} : memref<1x8x4x8x8xf32, #tpu.memory_space<vmem>>, vector<1x1x1x8x8xf32>,
    %c0_133 = arith.constant 0 : index
    %c0_134 = arith.constant 0 : index
    %c2_135 = arith.constant 2 : index
    %c0_136 = arith.constant 0 : index
    %c0_137 = arith.constant 0 : index
    %231 = vector.load %arg2[%c0_133, %c0_134, %c2_135, %c0_136, %c0_137] : memref<1x4x8x16x16xf32, #tpu.memory_space<vmem>>, vector<1x4x1x16x16xf32>
    %232 = vector.shape_cast %231 : vector<1x4x1x16x16xf32> to vector<4x16x16xf32>
    %c0_138 = arith.constant 0 : index
    %c0_139 = arith.constant 0 : index
    %c3_140 = arith.constant 3 : index
    %c0_141 = arith.constant 0 : index
    %c0_142 = arith.constant 0 : index
    %233 = vector.load %arg2[%c0_138, %c0_139, %c3_140, %c0_141, %c0_142] : memref<1x4x8x16x16xf32, #tpu.memory_space<vmem>>, vector<1x4x1x16x16xf32>
    %234 = vector.shape_cast %233 : vector<1x4x1x16x16xf32> to vector<4x16x16xf32>
    %235 = arith.maximumf %232, %234 : vector<4x16x16xf32>
    %236 = vector.extract_strided_slice %235 {offsets = [0, 0, 0], sizes = [1, 16, 16], strides = [1, 1, 1]} : vector<4x16x16xf32> to vector<1x16x16xf32>
    %237 = vector.shape_cast %236 : vector<1x16x16xf32> to vector<16x16xf32>
    %cst_143 = arith.constant dense<0.000000e+00> : vector<16x16xf32>
    %238 = tpu.matmul %237, %0, %cst_143 {dimension_numbers = #tpu.dot_dimension_numbers<[1], [0], [0], [1], [0, 0, 1, 1], [], []>} : vector<16x16xf32>, vector<16x16xf32>, vector<16x16xf32> -> vector<16x16xf32>
    %239 = vector.extract_strided_slice %238 {offsets = [0, 0], sizes = [16, 8], strides = [1, 1]} : vector<16x16xf32> to vector<16x8xf32>
    %240 = vector.extract_strided_slice %238 {offsets = [0, 8], sizes = [16, 8], strides = [1, 1]} : vector<16x16xf32> to vector<16x8xf32>
    %241 = arith.maximumf %239, %240 : vector<16x8xf32>
    %cst_144 = arith.constant dense<0.000000e+00> : vector<16x8xf32>
    %242 = tpu.matmul %1, %241, %cst_144 {dimension_numbers = #tpu.dot_dimension_numbers<[1], [0], [0], [1], [0, 0, 1, 1], [], []>} : vector<16x16xf32>, vector<16x8xf32>, vector<16x8xf32> -> vector<16x8xf32>
    %243 = vector.extract_strided_slice %242 {offsets = [0, 0], sizes = [8, 8], strides = [1, 1]} : vector<16x8xf32> to vector<8x8xf32>
    %244 = vector.extract_strided_slice %242 {offsets = [8, 0], sizes = [8, 8], strides = [1, 1]} : vector<16x8xf32> to vector<8x8xf32>
    %245 = arith.maximumf %243, %244 : vector<8x8xf32>
    %246 = vector.extract_strided_slice %235 {offsets = [1, 0, 0], sizes = [1, 16, 16], strides = [1, 1, 1]} : vector<4x16x16xf32> to vector<1x16x16xf32>
    %247 = vector.shape_cast %246 : vector<1x16x16xf32> to vector<16x16xf32>
    %cst_145 = arith.constant dense<0.000000e+00> : vector<16x16xf32>
    %248 = tpu.matmul %247, %0, %cst_145 {dimension_numbers = #tpu.dot_dimension_numbers<[1], [0], [0], [1], [0, 0, 1, 1], [], []>} : vector<16x16xf32>, vector<16x16xf32>, vector<16x16xf32> -> vector<16x16xf32>
    %249 = vector.extract_strided_slice %248 {offsets = [0, 0], sizes = [16, 8], strides = [1, 1]} : vector<16x16xf32> to vector<16x8xf32>
    %250 = vector.extract_strided_slice %248 {offsets = [0, 8], sizes = [16, 8], strides = [1, 1]} : vector<16x16xf32> to vector<16x8xf32>
    %251 = arith.maximumf %249, %250 : vector<16x8xf32>
    %cst_146 = arith.constant dense<0.000000e+00> : vector<16x8xf32>
    %252 = tpu.matmul %1, %251, %cst_146 {dimension_numbers = #tpu.dot_dimension_numbers<[1], [0], [0], [1], [0, 0, 1, 1], [], []>} : vector<16x16xf32>, vector<16x8xf32>, vector<16x8xf32> -> vector<16x8xf32>
    %253 = vector.extract_strided_slice %252 {offsets = [0, 0], sizes = [8, 8], strides = [1, 1]} : vector<16x8xf32> to vector<8x8xf32>
    %254 = vector.extract_strided_slice %252 {offsets = [8, 0], sizes = [8, 8], strides = [1, 1]} : vector<16x8xf32> to vector<8x8xf32>
    %255 = arith.maximumf %253, %254 : vector<8x8xf32>
    %256 = vector.extract_strided_slice %235 {offsets = [2, 0, 0], sizes = [1, 16, 16], strides = [1, 1, 1]} : vector<4x16x16xf32> to vector<1x16x16xf32>
    %257 = vector.shape_cast %256 : vector<1x16x16xf32> to vector<16x16xf32>
    %cst_147 = arith.constant dense<0.000000e+00> : vector<16x16xf32>
    %258 = tpu.matmul %257, %0, %cst_147 {dimension_numbers = #tpu.dot_dimension_numbers<[1], [0], [0], [1], [0, 0, 1, 1], [], []>} : vector<16x16xf32>, vector<16x16xf32>, vector<16x16xf32> -> vector<16x16xf32>
    %259 = vector.extract_strided_slice %258 {offsets = [0, 0], sizes = [16, 8], strides = [1, 1]} : vector<16x16xf32> to vector<16x8xf32>
    %260 = vector.extract_strided_slice %258 {offsets = [0, 8], sizes = [16, 8], strides = [1, 1]} : vector<16x16xf32> to vector<16x8xf32>
    %261 = arith.maximumf %259, %260 : vector<16x8xf32>
    %cst_148 = arith.constant dense<0.000000e+00> : vector<16x8xf32>
    %262 = tpu.matmul %1, %261, %cst_148 {dimension_numbers = #tpu.dot_dimension_numbers<[1], [0], [0], [1], [0, 0, 1, 1], [], []>} : vector<16x16xf32>, vector<16x8xf32>, vector<16x8xf32> -> vector<16x8xf32>
    %263 = vector.extract_strided_slice %262 {offsets = [0, 0], sizes = [8, 8], strides = [1, 1]} : vector<16x8xf32> to vector<8x8xf32>
    %264 = vector.extract_strided_slice %262 {offsets = [8, 0], sizes = [8, 8], strides = [1, 1]} : vector<16x8xf32> to vector<8x8xf32>
    %265 = arith.maximumf %263, %264 : vector<8x8xf32>
    %266 = vector.extract_strided_slice %235 {offsets = [3, 0, 0], sizes = [1, 16, 16], strides = [1, 1, 1]} : vector<4x16x16xf32> to vector<1x16x16xf32>
    %267 = vector.shape_cast %266 : vector<1x16x16xf32> to vector<16x16xf32>
    %cst_149 = arith.constant dense<0.000000e+00> : vector<16x16xf32>
    %268 = tpu.matmul %267, %0, %cst_149 {dimension_numbers = #tpu.dot_dimension_numbers<[1], [0], [0], [1], [0, 0, 1, 1], [], []>} : vector<16x16xf32>, vector<16x16xf32>, vector<16x16xf32> -> vector<16x16xf32>
    %269 = vector.extract_strided_slice %268 {offsets = [0, 0], sizes = [16, 8], strides = [1, 1]} : vector<16x16xf32> to vector<16x8xf32>
    %270 = vector.extract_strided_slice %268 {offsets = [0, 8], sizes = [16, 8], strides = [1, 1]} : vector<16x16xf32> to vector<16x8xf32>
    %271 = arith.maximumf %269, %270 : vector<16x8xf32>
    %cst_150 = arith.constant dense<0.000000e+00> : vector<16x8xf32>
    %272 = tpu.matmul %1, %271, %cst_150 {dimension_numbers = #tpu.dot_dimension_numbers<[1], [0], [0], [1], [0, 0, 1, 1], [], []>} : vector<16x16xf32>, vector<16x8xf32>, vector<16x8xf32> -> vector<16x8xf32>
    %273 = vector.extract_strided_slice %272 {offsets = [0, 0], sizes = [8, 8], strides = [1, 1]} : vector<16x8xf32> to vector<8x8xf32>
    %274 = vector.extract_strided_slice %272 {offsets = [8, 0], sizes = [8, 8], strides = [1, 1]} : vector<16x8xf32> to vector<8x8xf32>
    %275 = arith.maximumf %273, %274 : vector<8x8xf32>
    %c0_151 = arith.constant 0 : index
    %c0_152 = arith.constant 0 : index
    %276 = memref.load %arg5[%c0_151, %c0_152] : memref<8x4xf32, #tpu.memory_space<smem>>
    %277 = vector.broadcast %276 : f32 to vector<8x8xf32>
    %278 = arith.mulf %245, %277 : vector<8x8xf32>
    %c0_153 = arith.constant 0 : index
    %c1_154 = arith.constant 1 : index
    %279 = memref.load %arg5[%c0_153, %c1_154] : memref<8x4xf32, #tpu.memory_space<smem>>
    %280 = vector.broadcast %279 : f32 to vector<8x8xf32>
    %281 = arith.mulf %255, %280 : vector<8x8xf32>
    %282 = arith.addf %278, %281 : vector<8x8xf32>
    %c0_155 = arith.constant 0 : index
    %c2_156 = arith.constant 2 : index
    %283 = memref.load %arg5[%c0_155, %c2_156] : memref<8x4xf32, #tpu.memory_space<smem>>
    %284 = vector.broadcast %283 : f32 to vector<8x8xf32>
    %285 = arith.mulf %265, %284 : vector<8x8xf32>
    %286 = arith.addf %282, %285 : vector<8x8xf32>
    %c0_157 = arith.constant 0 : index
    %c3_158 = arith.constant 3 : index
    %287 = memref.load %arg5[%c0_157, %c3_158] : memref<8x4xf32, #tpu.memory_space<smem>>
    %288 = vector.broadcast %287 : f32 to vector<8x8xf32>
    %289 = arith.mulf %275, %288 : vector<8x8xf32>
    %290 = arith.addf %286, %289 : vector<8x8xf32>
    %c0_159 = arith.constant 0 : index
    %291 = memref.load %arg6[%c0_159] : memref<8xf32, #tpu.memory_space<smem>>
    %292 = vector.broadcast %291 : f32 to vector<8x8xf32>
    %293 = arith.addf %290, %292 : vector<8x8xf32>
    %cst_160 = arith.constant 0.000000e+00 : f32
    %294 = vector.broadcast %cst_160 : f32 to vector<8x8xf32>
    %295 = arith.maximumf %293, %294 : vector<8x8xf32>
    %c0_161 = arith.constant 0 : index
    %c0_162 = arith.constant 0 : index
    %c1_163 = arith.constant 1 : index
    %c0_164 = arith.constant 0 : index
    %c0_165 = arith.constant 0 : index
    %296 = vector.load %arg7[%c0_161, %c0_162, %c1_163, %c0_164, %c0_165] : memref<1x8x4x8x8xf32, #tpu.memory_space<vmem>>, vector<1x1x1x8x8xf32>
    %297 = vector.shape_cast %296 : vector<1x1x1x8x8xf32> to vector<8x8xf32>
    %298 = vector.shape_cast %295 : vector<8x8xf32> to vector<1x1x1x8x8xf32>
    tpu.vector_store %arg7[%c0_161, %c0_162, %c1_163, %c0_164, %c0_165], %298 {strides = array<i32>} : memref<1x8x4x8x8xf32, #tpu.memory_space<vmem>>, vector<1x1x1x8x8xf32>,
    %c1_166 = arith.constant 1 : index
    %c0_167 = arith.constant 0 : index
    %299 = memref.load %arg5[%c1_166, %c0_167] : memref<8x4xf32, #tpu.memory_space<smem>>
    %300 = vector.broadcast %299 : f32 to vector<8x8xf32>
    %301 = arith.mulf %245, %300 : vector<8x8xf32>
    %c1_168 = arith.constant 1 : index
    %c1_169 = arith.constant 1 : index
    %302 = memref.load %arg5[%c1_168, %c1_169] : memref<8x4xf32, #tpu.memory_space<smem>>
    %303 = vector.broadcast %302 : f32 to vector<8x8xf32>
    %304 = arith.mulf %255, %303 : vector<8x8xf32>
    %305 = arith.addf %301, %304 : vector<8x8xf32>
    %c1_170 = arith.constant 1 : index
    %c2_171 = arith.constant 2 : index
    %306 = memref.load %arg5[%c1_170, %c2_171] : memref<8x4xf32, #tpu.memory_space<smem>>
    %307 = vector.broadcast %306 : f32 to vector<8x8xf32>
    %308 = arith.mulf %265, %307 : vector<8x8xf32>
    %309 = arith.addf %305, %308 : vector<8x8xf32>
    %c1_172 = arith.constant 1 : index
    %c3_173 = arith.constant 3 : index
    %310 = memref.load %arg5[%c1_172, %c3_173] : memref<8x4xf32, #tpu.memory_space<smem>>
    %311 = vector.broadcast %310 : f32 to vector<8x8xf32>
    %312 = arith.mulf %275, %311 : vector<8x8xf32>
    %313 = arith.addf %309, %312 : vector<8x8xf32>
    %c1_174 = arith.constant 1 : index
    %314 = memref.load %arg6[%c1_174] : memref<8xf32, #tpu.memory_space<smem>>
    %315 = vector.broadcast %314 : f32 to vector<8x8xf32>
    %316 = arith.addf %313, %315 : vector<8x8xf32>
    %cst_175 = arith.constant 0.000000e+00 : f32
    %317 = vector.broadcast %cst_175 : f32 to vector<8x8xf32>
    %318 = arith.maximumf %316, %317 : vector<8x8xf32>
    %c0_176 = arith.constant 0 : index
    %c1_177 = arith.constant 1 : index
    %c1_178 = arith.constant 1 : index
    %c0_179 = arith.constant 0 : index
    %c0_180 = arith.constant 0 : index
    %319 = vector.load %arg7[%c0_176, %c1_177, %c1_178, %c0_179, %c0_180] : memref<1x8x4x8x8xf32, #tpu.memory_space<vmem>>, vector<1x1x1x8x8xf32>
    %320 = vector.shape_cast %319 : vector<1x1x1x8x8xf32> to vector<8x8xf32>
    %321 = vector.shape_cast %318 : vector<8x8xf32> to vector<1x1x1x8x8xf32>
    tpu.vector_store %arg7[%c0_176, %c1_177, %c1_178, %c0_179, %c0_180], %321 {strides = array<i32>} : memref<1x8x4x8x8xf32, #tpu.memory_space<vmem>>, vector<1x1x1x8x8xf32>,
    %c2_181 = arith.constant 2 : index
    %c0_182 = arith.constant 0 : index
    %322 = memref.load %arg5[%c2_181, %c0_182] : memref<8x4xf32, #tpu.memory_space<smem>>
    %323 = vector.broadcast %322 : f32 to vector<8x8xf32>
    %324 = arith.mulf %245, %323 : vector<8x8xf32>
    %c2_183 = arith.constant 2 : index
    %c1_184 = arith.constant 1 : index
    %325 = memref.load %arg5[%c2_183, %c1_184] : memref<8x4xf32, #tpu.memory_space<smem>>
    %326 = vector.broadcast %325 : f32 to vector<8x8xf32>
    %327 = arith.mulf %255, %326 : vector<8x8xf32>
    %328 = arith.addf %324, %327 : vector<8x8xf32>
    %c2_185 = arith.constant 2 : index
    %c2_186 = arith.constant 2 : index
    %329 = memref.load %arg5[%c2_185, %c2_186] : memref<8x4xf32, #tpu.memory_space<smem>>
    %330 = vector.broadcast %329 : f32 to vector<8x8xf32>
    %331 = arith.mulf %265, %330 : vector<8x8xf32>
    %332 = arith.addf %328, %331 : vector<8x8xf32>
    %c2_187 = arith.constant 2 : index
    %c3_188 = arith.constant 3 : index
    %333 = memref.load %arg5[%c2_187, %c3_188] : memref<8x4xf32, #tpu.memory_space<smem>>
    %334 = vector.broadcast %333 : f32 to vector<8x8xf32>
    %335 = arith.mulf %275, %334 : vector<8x8xf32>
    %336 = arith.addf %332, %335 : vector<8x8xf32>
    %c2_189 = arith.constant 2 : index
    %337 = memref.load %arg6[%c2_189] : memref<8xf32, #tpu.memory_space<smem>>
    %338 = vector.broadcast %337 : f32 to vector<8x8xf32>
    %339 = arith.addf %336, %338 : vector<8x8xf32>
    %cst_190 = arith.constant 0.000000e+00 : f32
    %340 = vector.broadcast %cst_190 : f32 to vector<8x8xf32>
    %341 = arith.maximumf %339, %340 : vector<8x8xf32>
    %c0_191 = arith.constant 0 : index
    %c2_192 = arith.constant 2 : index
    %c1_193 = arith.constant 1 : index
    %c0_194 = arith.constant 0 : index
    %c0_195 = arith.constant 0 : index
    %342 = vector.load %arg7[%c0_191, %c2_192, %c1_193, %c0_194, %c0_195] : memref<1x8x4x8x8xf32, #tpu.memory_space<vmem>>, vector<1x1x1x8x8xf32>
    %343 = vector.shape_cast %342 : vector<1x1x1x8x8xf32> to vector<8x8xf32>
    %344 = vector.shape_cast %341 : vector<8x8xf32> to vector<1x1x1x8x8xf32>
    tpu.vector_store %arg7[%c0_191, %c2_192, %c1_193, %c0_194, %c0_195], %344 {strides = array<i32>} : memref<1x8x4x8x8xf32, #tpu.memory_space<vmem>>, vector<1x1x1x8x8xf32>,
    %c3_196 = arith.constant 3 : index
    %c0_197 = arith.constant 0 : index
    %345 = memref.load %arg5[%c3_196, %c0_197] : memref<8x4xf32, #tpu.memory_space<smem>>
    %346 = vector.broadcast %345 : f32 to vector<8x8xf32>
    %347 = arith.mulf %245, %346 : vector<8x8xf32>
    %c3_198 = arith.constant 3 : index
    %c1_199 = arith.constant 1 : index
    %348 = memref.load %arg5[%c3_198, %c1_199] : memref<8x4xf32, #tpu.memory_space<smem>>
    %349 = vector.broadcast %348 : f32 to vector<8x8xf32>
    %350 = arith.mulf %255, %349 : vector<8x8xf32>
    %351 = arith.addf %347, %350 : vector<8x8xf32>
    %c3_200 = arith.constant 3 : index
    %c2_201 = arith.constant 2 : index
    %352 = memref.load %arg5[%c3_200, %c2_201] : memref<8x4xf32, #tpu.memory_space<smem>>
    %353 = vector.broadcast %352 : f32 to vector<8x8xf32>
    %354 = arith.mulf %265, %353 : vector<8x8xf32>
    %355 = arith.addf %351, %354 : vector<8x8xf32>
    %c3_202 = arith.constant 3 : index
    %c3_203 = arith.constant 3 : index
    %356 = memref.load %arg5[%c3_202, %c3_203] : memref<8x4xf32, #tpu.memory_space<smem>>
    %357 = vector.broadcast %356 : f32 to vector<8x8xf32>
    %358 = arith.mulf %275, %357 : vector<8x8xf32>
    %359 = arith.addf %355, %358 : vector<8x8xf32>
    %c3_204 = arith.constant 3 : index
    %360 = memref.load %arg6[%c3_204] : memref<8xf32, #tpu.memory_space<smem>>
    %361 = vector.broadcast %360 : f32 to vector<8x8xf32>
    %362 = arith.addf %359, %361 : vector<8x8xf32>
    %cst_205 = arith.constant 0.000000e+00 : f32
    %363 = vector.broadcast %cst_205 : f32 to vector<8x8xf32>
    %364 = arith.maximumf %362, %363 : vector<8x8xf32>
    %c0_206 = arith.constant 0 : index
    %c3_207 = arith.constant 3 : index
    %c1_208 = arith.constant 1 : index
    %c0_209 = arith.constant 0 : index
    %c0_210 = arith.constant 0 : index
    %365 = vector.load %arg7[%c0_206, %c3_207, %c1_208, %c0_209, %c0_210] : memref<1x8x4x8x8xf32, #tpu.memory_space<vmem>>, vector<1x1x1x8x8xf32>
    %366 = vector.shape_cast %365 : vector<1x1x1x8x8xf32> to vector<8x8xf32>
    %367 = vector.shape_cast %364 : vector<8x8xf32> to vector<1x1x1x8x8xf32>
    tpu.vector_store %arg7[%c0_206, %c3_207, %c1_208, %c0_209, %c0_210], %367 {strides = array<i32>} : memref<1x8x4x8x8xf32, #tpu.memory_space<vmem>>, vector<1x1x1x8x8xf32>,
    %c4_211 = arith.constant 4 : index
    %c0_212 = arith.constant 0 : index
    %368 = memref.load %arg5[%c4_211, %c0_212] : memref<8x4xf32, #tpu.memory_space<smem>>
    %369 = vector.broadcast %368 : f32 to vector<8x8xf32>
    %370 = arith.mulf %245, %369 : vector<8x8xf32>
    %c4_213 = arith.constant 4 : index
    %c1_214 = arith.constant 1 : index
    %371 = memref.load %arg5[%c4_213, %c1_214] : memref<8x4xf32, #tpu.memory_space<smem>>
    %372 = vector.broadcast %371 : f32 to vector<8x8xf32>
    %373 = arith.mulf %255, %372 : vector<8x8xf32>
    %374 = arith.addf %370, %373 : vector<8x8xf32>
    %c4_215 = arith.constant 4 : index
    %c2_216 = arith.constant 2 : index
    %375 = memref.load %arg5[%c4_215, %c2_216] : memref<8x4xf32, #tpu.memory_space<smem>>
    %376 = vector.broadcast %375 : f32 to vector<8x8xf32>
    %377 = arith.mulf %265, %376 : vector<8x8xf32>
    %378 = arith.addf %374, %377 : vector<8x8xf32>
    %c4_217 = arith.constant 4 : index
    %c3_218 = arith.constant 3 : index
    %379 = memref.load %arg5[%c4_217, %c3_218] : memref<8x4xf32, #tpu.memory_space<smem>>
    %380 = vector.broadcast %379 : f32 to vector<8x8xf32>
    %381 = arith.mulf %275, %380 : vector<8x8xf32>
    %382 = arith.addf %378, %381 : vector<8x8xf32>
    %c4_219 = arith.constant 4 : index
    %383 = memref.load %arg6[%c4_219] : memref<8xf32, #tpu.memory_space<smem>>
    %384 = vector.broadcast %383 : f32 to vector<8x8xf32>
    %385 = arith.addf %382, %384 : vector<8x8xf32>
    %cst_220 = arith.constant 0.000000e+00 : f32
    %386 = vector.broadcast %cst_220 : f32 to vector<8x8xf32>
    %387 = arith.maximumf %385, %386 : vector<8x8xf32>
    %c0_221 = arith.constant 0 : index
    %c4_222 = arith.constant 4 : index
    %c1_223 = arith.constant 1 : index
    %c0_224 = arith.constant 0 : index
    %c0_225 = arith.constant 0 : index
    %388 = vector.load %arg7[%c0_221, %c4_222, %c1_223, %c0_224, %c0_225] : memref<1x8x4x8x8xf32, #tpu.memory_space<vmem>>, vector<1x1x1x8x8xf32>
    %389 = vector.shape_cast %388 : vector<1x1x1x8x8xf32> to vector<8x8xf32>
    %390 = vector.shape_cast %387 : vector<8x8xf32> to vector<1x1x1x8x8xf32>
    tpu.vector_store %arg7[%c0_221, %c4_222, %c1_223, %c0_224, %c0_225], %390 {strides = array<i32>} : memref<1x8x4x8x8xf32, #tpu.memory_space<vmem>>, vector<1x1x1x8x8xf32>,
    %c5_226 = arith.constant 5 : index
    %c0_227 = arith.constant 0 : index
    %391 = memref.load %arg5[%c5_226, %c0_227] : memref<8x4xf32, #tpu.memory_space<smem>>
    %392 = vector.broadcast %391 : f32 to vector<8x8xf32>
    %393 = arith.mulf %245, %392 : vector<8x8xf32>
    %c5_228 = arith.constant 5 : index
    %c1_229 = arith.constant 1 : index
    %394 = memref.load %arg5[%c5_228, %c1_229] : memref<8x4xf32, #tpu.memory_space<smem>>
    %395 = vector.broadcast %394 : f32 to vector<8x8xf32>
    %396 = arith.mulf %255, %395 : vector<8x8xf32>
    %397 = arith.addf %393, %396 : vector<8x8xf32>
    %c5_230 = arith.constant 5 : index
    %c2_231 = arith.constant 2 : index
    %398 = memref.load %arg5[%c5_230, %c2_231] : memref<8x4xf32, #tpu.memory_space<smem>>
    %399 = vector.broadcast %398 : f32 to vector<8x8xf32>
    %400 = arith.mulf %265, %399 : vector<8x8xf32>
    %401 = arith.addf %397, %400 : vector<8x8xf32>
    %c5_232 = arith.constant 5 : index
    %c3_233 = arith.constant 3 : index
    %402 = memref.load %arg5[%c5_232, %c3_233] : memref<8x4xf32, #tpu.memory_space<smem>>
    %403 = vector.broadcast %402 : f32 to vector<8x8xf32>
    %404 = arith.mulf %275, %403 : vector<8x8xf32>
    %405 = arith.addf %401, %404 : vector<8x8xf32>
    %c5_234 = arith.constant 5 : index
    %406 = memref.load %arg6[%c5_234] : memref<8xf32, #tpu.memory_space<smem>>
    %407 = vector.broadcast %406 : f32 to vector<8x8xf32>
    %408 = arith.addf %405, %407 : vector<8x8xf32>
    %cst_235 = arith.constant 0.000000e+00 : f32
    %409 = vector.broadcast %cst_235 : f32 to vector<8x8xf32>
    %410 = arith.maximumf %408, %409 : vector<8x8xf32>
    %c0_236 = arith.constant 0 : index
    %c5_237 = arith.constant 5 : index
    %c1_238 = arith.constant 1 : index
    %c0_239 = arith.constant 0 : index
    %c0_240 = arith.constant 0 : index
    %411 = vector.load %arg7[%c0_236, %c5_237, %c1_238, %c0_239, %c0_240] : memref<1x8x4x8x8xf32, #tpu.memory_space<vmem>>, vector<1x1x1x8x8xf32>
    %412 = vector.shape_cast %411 : vector<1x1x1x8x8xf32> to vector<8x8xf32>
    %413 = vector.shape_cast %410 : vector<8x8xf32> to vector<1x1x1x8x8xf32>
    tpu.vector_store %arg7[%c0_236, %c5_237, %c1_238, %c0_239, %c0_240], %413 {strides = array<i32>} : memref<1x8x4x8x8xf32, #tpu.memory_space<vmem>>, vector<1x1x1x8x8xf32>,
    %c6_241 = arith.constant 6 : index
    %c0_242 = arith.constant 0 : index
    %414 = memref.load %arg5[%c6_241, %c0_242] : memref<8x4xf32, #tpu.memory_space<smem>>
    %415 = vector.broadcast %414 : f32 to vector<8x8xf32>
    %416 = arith.mulf %245, %415 : vector<8x8xf32>
    %c6_243 = arith.constant 6 : index
    %c1_244 = arith.constant 1 : index
    %417 = memref.load %arg5[%c6_243, %c1_244] : memref<8x4xf32, #tpu.memory_space<smem>>
    %418 = vector.broadcast %417 : f32 to vector<8x8xf32>
    %419 = arith.mulf %255, %418 : vector<8x8xf32>
    %420 = arith.addf %416, %419 : vector<8x8xf32>
    %c6_245 = arith.constant 6 : index
    %c2_246 = arith.constant 2 : index
    %421 = memref.load %arg5[%c6_245, %c2_246] : memref<8x4xf32, #tpu.memory_space<smem>>
    %422 = vector.broadcast %421 : f32 to vector<8x8xf32>
    %423 = arith.mulf %265, %422 : vector<8x8xf32>
    %424 = arith.addf %420, %423 : vector<8x8xf32>
    %c6_247 = arith.constant 6 : index
    %c3_248 = arith.constant 3 : index
    %425 = memref.load %arg5[%c6_247, %c3_248] : memref<8x4xf32, #tpu.memory_space<smem>>
    %426 = vector.broadcast %425 : f32 to vector<8x8xf32>
    %427 = arith.mulf %275, %426 : vector<8x8xf32>
    %428 = arith.addf %424, %427 : vector<8x8xf32>
    %c6_249 = arith.constant 6 : index
    %429 = memref.load %arg6[%c6_249] : memref<8xf32, #tpu.memory_space<smem>>
    %430 = vector.broadcast %429 : f32 to vector<8x8xf32>
    %431 = arith.addf %428, %430 : vector<8x8xf32>
    %cst_250 = arith.constant 0.000000e+00 : f32
    %432 = vector.broadcast %cst_250 : f32 to vector<8x8xf32>
    %433 = arith.maximumf %431, %432 : vector<8x8xf32>
    %c0_251 = arith.constant 0 : index
    %c6_252 = arith.constant 6 : index
    %c1_253 = arith.constant 1 : index
    %c0_254 = arith.constant 0 : index
    %c0_255 = arith.constant 0 : index
    %434 = vector.load %arg7[%c0_251, %c6_252, %c1_253, %c0_254, %c0_255] : memref<1x8x4x8x8xf32, #tpu.memory_space<vmem>>, vector<1x1x1x8x8xf32>
    %435 = vector.shape_cast %434 : vector<1x1x1x8x8xf32> to vector<8x8xf32>
    %436 = vector.shape_cast %433 : vector<8x8xf32> to vector<1x1x1x8x8xf32>
    tpu.vector_store %arg7[%c0_251, %c6_252, %c1_253, %c0_254, %c0_255], %436 {strides = array<i32>} : memref<1x8x4x8x8xf32, #tpu.memory_space<vmem>>, vector<1x1x1x8x8xf32>,
    %c7_256 = arith.constant 7 : index
    %c0_257 = arith.constant 0 : index
    %437 = memref.load %arg5[%c7_256, %c0_257] : memref<8x4xf32, #tpu.memory_space<smem>>
    %438 = vector.broadcast %437 : f32 to vector<8x8xf32>
    %439 = arith.mulf %245, %438 : vector<8x8xf32>
    %c7_258 = arith.constant 7 : index
    %c1_259 = arith.constant 1 : index
    %440 = memref.load %arg5[%c7_258, %c1_259] : memref<8x4xf32, #tpu.memory_space<smem>>
    %441 = vector.broadcast %440 : f32 to vector<8x8xf32>
    %442 = arith.mulf %255, %441 : vector<8x8xf32>
    %443 = arith.addf %439, %442 : vector<8x8xf32>
    %c7_260 = arith.constant 7 : index
    %c2_261 = arith.constant 2 : index
    %444 = memref.load %arg5[%c7_260, %c2_261] : memref<8x4xf32, #tpu.memory_space<smem>>
    %445 = vector.broadcast %444 : f32 to vector<8x8xf32>
    %446 = arith.mulf %265, %445 : vector<8x8xf32>
    %447 = arith.addf %443, %446 : vector<8x8xf32>
    %c7_262 = arith.constant 7 : index
    %c3_263 = arith.constant 3 : index
    %448 = memref.load %arg5[%c7_262, %c3_263] : memref<8x4xf32, #tpu.memory_space<smem>>
    %449 = vector.broadcast %448 : f32 to vector<8x8xf32>
    %450 = arith.mulf %275, %449 : vector<8x8xf32>
    %451 = arith.addf %447, %450 : vector<8x8xf32>
    %c7_264 = arith.constant 7 : index
    %452 = memref.load %arg6[%c7_264] : memref<8xf32, #tpu.memory_space<smem>>
    %453 = vector.broadcast %452 : f32 to vector<8x8xf32>
    %454 = arith.addf %451, %453 : vector<8x8xf32>
    %cst_265 = arith.constant 0.000000e+00 : f32
    %455 = vector.broadcast %cst_265 : f32 to vector<8x8xf32>
    %456 = arith.maximumf %454, %455 : vector<8x8xf32>
    %c0_266 = arith.constant 0 : index
    %c7_267 = arith.constant 7 : index
    %c1_268 = arith.constant 1 : index
    %c0_269 = arith.constant 0 : index
    %c0_270 = arith.constant 0 : index
    %457 = vector.load %arg7[%c0_266, %c7_267, %c1_268, %c0_269, %c0_270] : memref<1x8x4x8x8xf32, #tpu.memory_space<vmem>>, vector<1x1x1x8x8xf32>
    %458 = vector.shape_cast %457 : vector<1x1x1x8x8xf32> to vector<8x8xf32>
    %459 = vector.shape_cast %456 : vector<8x8xf32> to vector<1x1x1x8x8xf32>
    tpu.vector_store %arg7[%c0_266, %c7_267, %c1_268, %c0_269, %c0_270], %459 {strides = array<i32>} : memref<1x8x4x8x8xf32, #tpu.memory_space<vmem>>, vector<1x1x1x8x8xf32>,
    %c0_271 = arith.constant 0 : index
    %c0_272 = arith.constant 0 : index
    %c4_273 = arith.constant 4 : index
    %c0_274 = arith.constant 0 : index
    %c0_275 = arith.constant 0 : index
    %460 = vector.load %arg2[%c0_271, %c0_272, %c4_273, %c0_274, %c0_275] : memref<1x4x8x16x16xf32, #tpu.memory_space<vmem>>, vector<1x4x1x16x16xf32>
    %461 = vector.shape_cast %460 : vector<1x4x1x16x16xf32> to vector<4x16x16xf32>
    %c0_276 = arith.constant 0 : index
    %c0_277 = arith.constant 0 : index
    %c5_278 = arith.constant 5 : index
    %c0_279 = arith.constant 0 : index
    %c0_280 = arith.constant 0 : index
    %462 = vector.load %arg2[%c0_276, %c0_277, %c5_278, %c0_279, %c0_280] : memref<1x4x8x16x16xf32, #tpu.memory_space<vmem>>, vector<1x4x1x16x16xf32>
    %463 = vector.shape_cast %462 : vector<1x4x1x16x16xf32> to vector<4x16x16xf32>
    %464 = arith.maximumf %461, %463 : vector<4x16x16xf32>
    %465 = vector.extract_strided_slice %464 {offsets = [0, 0, 0], sizes = [1, 16, 16], strides = [1, 1, 1]} : vector<4x16x16xf32> to vector<1x16x16xf32>
    %466 = vector.shape_cast %465 : vector<1x16x16xf32> to vector<16x16xf32>
    %cst_281 = arith.constant dense<0.000000e+00> : vector<16x16xf32>
    %467 = tpu.matmul %466, %0, %cst_281 {dimension_numbers = #tpu.dot_dimension_numbers<[1], [0], [0], [1], [0, 0, 1, 1], [], []>} : vector<16x16xf32>, vector<16x16xf32>, vector<16x16xf32> -> vector<16x16xf32>
    %468 = vector.extract_strided_slice %467 {offsets = [0, 0], sizes = [16, 8], strides = [1, 1]} : vector<16x16xf32> to vector<16x8xf32>
    %469 = vector.extract_strided_slice %467 {offsets = [0, 8], sizes = [16, 8], strides = [1, 1]} : vector<16x16xf32> to vector<16x8xf32>
    %470 = arith.maximumf %468, %469 : vector<16x8xf32>
    %cst_282 = arith.constant dense<0.000000e+00> : vector<16x8xf32>
    %471 = tpu.matmul %1, %470, %cst_282 {dimension_numbers = #tpu.dot_dimension_numbers<[1], [0], [0], [1], [0, 0, 1, 1], [], []>} : vector<16x16xf32>, vector<16x8xf32>, vector<16x8xf32> -> vector<16x8xf32>
    %472 = vector.extract_strided_slice %471 {offsets = [0, 0], sizes = [8, 8], strides = [1, 1]} : vector<16x8xf32> to vector<8x8xf32>
    %473 = vector.extract_strided_slice %471 {offsets = [8, 0], sizes = [8, 8], strides = [1, 1]} : vector<16x8xf32> to vector<8x8xf32>
    %474 = arith.maximumf %472, %473 : vector<8x8xf32>
    %475 = vector.extract_strided_slice %464 {offsets = [1, 0, 0], sizes = [1, 16, 16], strides = [1, 1, 1]} : vector<4x16x16xf32> to vector<1x16x16xf32>
    %476 = vector.shape_cast %475 : vector<1x16x16xf32> to vector<16x16xf32>
    %cst_283 = arith.constant dense<0.000000e+00> : vector<16x16xf32>
    %477 = tpu.matmul %476, %0, %cst_283 {dimension_numbers = #tpu.dot_dimension_numbers<[1], [0], [0], [1], [0, 0, 1, 1], [], []>} : vector<16x16xf32>, vector<16x16xf32>, vector<16x16xf32> -> vector<16x16xf32>
    %478 = vector.extract_strided_slice %477 {offsets = [0, 0], sizes = [16, 8], strides = [1, 1]} : vector<16x16xf32> to vector<16x8xf32>
    %479 = vector.extract_strided_slice %477 {offsets = [0, 8], sizes = [16, 8], strides = [1, 1]} : vector<16x16xf32> to vector<16x8xf32>
    %480 = arith.maximumf %478, %479 : vector<16x8xf32>
    %cst_284 = arith.constant dense<0.000000e+00> : vector<16x8xf32>
    %481 = tpu.matmul %1, %480, %cst_284 {dimension_numbers = #tpu.dot_dimension_numbers<[1], [0], [0], [1], [0, 0, 1, 1], [], []>} : vector<16x16xf32>, vector<16x8xf32>, vector<16x8xf32> -> vector<16x8xf32>
    %482 = vector.extract_strided_slice %481 {offsets = [0, 0], sizes = [8, 8], strides = [1, 1]} : vector<16x8xf32> to vector<8x8xf32>
    %483 = vector.extract_strided_slice %481 {offsets = [8, 0], sizes = [8, 8], strides = [1, 1]} : vector<16x8xf32> to vector<8x8xf32>
    %484 = arith.maximumf %482, %483 : vector<8x8xf32>
    %485 = vector.extract_strided_slice %464 {offsets = [2, 0, 0], sizes = [1, 16, 16], strides = [1, 1, 1]} : vector<4x16x16xf32> to vector<1x16x16xf32>
    %486 = vector.shape_cast %485 : vector<1x16x16xf32> to vector<16x16xf32>
    %cst_285 = arith.constant dense<0.000000e+00> : vector<16x16xf32>
    %487 = tpu.matmul %486, %0, %cst_285 {dimension_numbers = #tpu.dot_dimension_numbers<[1], [0], [0], [1], [0, 0, 1, 1], [], []>} : vector<16x16xf32>, vector<16x16xf32>, vector<16x16xf32> -> vector<16x16xf32>
    %488 = vector.extract_strided_slice %487 {offsets = [0, 0], sizes = [16, 8], strides = [1, 1]} : vector<16x16xf32> to vector<16x8xf32>
    %489 = vector.extract_strided_slice %487 {offsets = [0, 8], sizes = [16, 8], strides = [1, 1]} : vector<16x16xf32> to vector<16x8xf32>
    %490 = arith.maximumf %488, %489 : vector<16x8xf32>
    %cst_286 = arith.constant dense<0.000000e+00> : vector<16x8xf32>
    %491 = tpu.matmul %1, %490, %cst_286 {dimension_numbers = #tpu.dot_dimension_numbers<[1], [0], [0], [1], [0, 0, 1, 1], [], []>} : vector<16x16xf32>, vector<16x8xf32>, vector<16x8xf32> -> vector<16x8xf32>
    %492 = vector.extract_strided_slice %491 {offsets = [0, 0], sizes = [8, 8], strides = [1, 1]} : vector<16x8xf32> to vector<8x8xf32>
    %493 = vector.extract_strided_slice %491 {offsets = [8, 0], sizes = [8, 8], strides = [1, 1]} : vector<16x8xf32> to vector<8x8xf32>
    %494 = arith.maximumf %492, %493 : vector<8x8xf32>
    %495 = vector.extract_strided_slice %464 {offsets = [3, 0, 0], sizes = [1, 16, 16], strides = [1, 1, 1]} : vector<4x16x16xf32> to vector<1x16x16xf32>
    %496 = vector.shape_cast %495 : vector<1x16x16xf32> to vector<16x16xf32>
    %cst_287 = arith.constant dense<0.000000e+00> : vector<16x16xf32>
    %497 = tpu.matmul %496, %0, %cst_287 {dimension_numbers = #tpu.dot_dimension_numbers<[1], [0], [0], [1], [0, 0, 1, 1], [], []>} : vector<16x16xf32>, vector<16x16xf32>, vector<16x16xf32> -> vector<16x16xf32>
    %498 = vector.extract_strided_slice %497 {offsets = [0, 0], sizes = [16, 8], strides = [1, 1]} : vector<16x16xf32> to vector<16x8xf32>
    %499 = vector.extract_strided_slice %497 {offsets = [0, 8], sizes = [16, 8], strides = [1, 1]} : vector<16x16xf32> to vector<16x8xf32>
    %500 = arith.maximumf %498, %499 : vector<16x8xf32>
    %cst_288 = arith.constant dense<0.000000e+00> : vector<16x8xf32>
    %501 = tpu.matmul %1, %500, %cst_288 {dimension_numbers = #tpu.dot_dimension_numbers<[1], [0], [0], [1], [0, 0, 1, 1], [], []>} : vector<16x16xf32>, vector<16x8xf32>, vector<16x8xf32> -> vector<16x8xf32>
    %502 = vector.extract_strided_slice %501 {offsets = [0, 0], sizes = [8, 8], strides = [1, 1]} : vector<16x8xf32> to vector<8x8xf32>
    %503 = vector.extract_strided_slice %501 {offsets = [8, 0], sizes = [8, 8], strides = [1, 1]} : vector<16x8xf32> to vector<8x8xf32>
    %504 = arith.maximumf %502, %503 : vector<8x8xf32>
    %c0_289 = arith.constant 0 : index
    %c0_290 = arith.constant 0 : index
    %505 = memref.load %arg5[%c0_289, %c0_290] : memref<8x4xf32, #tpu.memory_space<smem>>
    %506 = vector.broadcast %505 : f32 to vector<8x8xf32>
    %507 = arith.mulf %474, %506 : vector<8x8xf32>
    %c0_291 = arith.constant 0 : index
    %c1_292 = arith.constant 1 : index
    %508 = memref.load %arg5[%c0_291, %c1_292] : memref<8x4xf32, #tpu.memory_space<smem>>
    %509 = vector.broadcast %508 : f32 to vector<8x8xf32>
    %510 = arith.mulf %484, %509 : vector<8x8xf32>
    %511 = arith.addf %507, %510 : vector<8x8xf32>
    %c0_293 = arith.constant 0 : index
    %c2_294 = arith.constant 2 : index
    %512 = memref.load %arg5[%c0_293, %c2_294] : memref<8x4xf32, #tpu.memory_space<smem>>
    %513 = vector.broadcast %512 : f32 to vector<8x8xf32>
    %514 = arith.mulf %494, %513 : vector<8x8xf32>
    %515 = arith.addf %511, %514 : vector<8x8xf32>
    %c0_295 = arith.constant 0 : index
    %c3_296 = arith.constant 3 : index
    %516 = memref.load %arg5[%c0_295, %c3_296] : memref<8x4xf32, #tpu.memory_space<smem>>
    %517 = vector.broadcast %516 : f32 to vector<8x8xf32>
    %518 = arith.mulf %504, %517 : vector<8x8xf32>
    %519 = arith.addf %515, %518 : vector<8x8xf32>
    %c0_297 = arith.constant 0 : index
    %520 = memref.load %arg6[%c0_297] : memref<8xf32, #tpu.memory_space<smem>>
    %521 = vector.broadcast %520 : f32 to vector<8x8xf32>
    %522 = arith.addf %519, %521 : vector<8x8xf32>
    %cst_298 = arith.constant 0.000000e+00 : f32
    %523 = vector.broadcast %cst_298 : f32 to vector<8x8xf32>
    %524 = arith.maximumf %522, %523 : vector<8x8xf32>
    %c0_299 = arith.constant 0 : index
    %c0_300 = arith.constant 0 : index
    %c2_301 = arith.constant 2 : index
    %c0_302 = arith.constant 0 : index
    %c0_303 = arith.constant 0 : index
    %525 = vector.load %arg7[%c0_299, %c0_300, %c2_301, %c0_302, %c0_303] : memref<1x8x4x8x8xf32, #tpu.memory_space<vmem>>, vector<1x1x1x8x8xf32>
    %526 = vector.shape_cast %525 : vector<1x1x1x8x8xf32> to vector<8x8xf32>
    %527 = vector.shape_cast %524 : vector<8x8xf32> to vector<1x1x1x8x8xf32>
    tpu.vector_store %arg7[%c0_299, %c0_300, %c2_301, %c0_302, %c0_303], %527 {strides = array<i32>} : memref<1x8x4x8x8xf32, #tpu.memory_space<vmem>>, vector<1x1x1x8x8xf32>,
    %c1_304 = arith.constant 1 : index
    %c0_305 = arith.constant 0 : index
    %528 = memref.load %arg5[%c1_304, %c0_305] : memref<8x4xf32, #tpu.memory_space<smem>>
    %529 = vector.broadcast %528 : f32 to vector<8x8xf32>
    %530 = arith.mulf %474, %529 : vector<8x8xf32>
    %c1_306 = arith.constant 1 : index
    %c1_307 = arith.constant 1 : index
    %531 = memref.load %arg5[%c1_306, %c1_307] : memref<8x4xf32, #tpu.memory_space<smem>>
    %532 = vector.broadcast %531 : f32 to vector<8x8xf32>
    %533 = arith.mulf %484, %532 : vector<8x8xf32>
    %534 = arith.addf %530, %533 : vector<8x8xf32>
    %c1_308 = arith.constant 1 : index
    %c2_309 = arith.constant 2 : index
    %535 = memref.load %arg5[%c1_308, %c2_309] : memref<8x4xf32, #tpu.memory_space<smem>>
    %536 = vector.broadcast %535 : f32 to vector<8x8xf32>
    %537 = arith.mulf %494, %536 : vector<8x8xf32>
    %538 = arith.addf %534, %537 : vector<8x8xf32>
    %c1_310 = arith.constant 1 : index
    %c3_311 = arith.constant 3 : index
    %539 = memref.load %arg5[%c1_310, %c3_311] : memref<8x4xf32, #tpu.memory_space<smem>>
    %540 = vector.broadcast %539 : f32 to vector<8x8xf32>
    %541 = arith.mulf %504, %540 : vector<8x8xf32>
    %542 = arith.addf %538, %541 : vector<8x8xf32>
    %c1_312 = arith.constant 1 : index
    %543 = memref.load %arg6[%c1_312] : memref<8xf32, #tpu.memory_space<smem>>
    %544 = vector.broadcast %543 : f32 to vector<8x8xf32>
    %545 = arith.addf %542, %544 : vector<8x8xf32>
    %cst_313 = arith.constant 0.000000e+00 : f32
    %546 = vector.broadcast %cst_313 : f32 to vector<8x8xf32>
    %547 = arith.maximumf %545, %546 : vector<8x8xf32>
    %c0_314 = arith.constant 0 : index
    %c1_315 = arith.constant 1 : index
    %c2_316 = arith.constant 2 : index
    %c0_317 = arith.constant 0 : index
    %c0_318 = arith.constant 0 : index
    %548 = vector.load %arg7[%c0_314, %c1_315, %c2_316, %c0_317, %c0_318] : memref<1x8x4x8x8xf32, #tpu.memory_space<vmem>>, vector<1x1x1x8x8xf32>
    %549 = vector.shape_cast %548 : vector<1x1x1x8x8xf32> to vector<8x8xf32>
    %550 = vector.shape_cast %547 : vector<8x8xf32> to vector<1x1x1x8x8xf32>
    tpu.vector_store %arg7[%c0_314, %c1_315, %c2_316, %c0_317, %c0_318], %550 {strides = array<i32>} : memref<1x8x4x8x8xf32, #tpu.memory_space<vmem>>, vector<1x1x1x8x8xf32>,
    %c2_319 = arith.constant 2 : index
    %c0_320 = arith.constant 0 : index
    %551 = memref.load %arg5[%c2_319, %c0_320] : memref<8x4xf32, #tpu.memory_space<smem>>
    %552 = vector.broadcast %551 : f32 to vector<8x8xf32>
    %553 = arith.mulf %474, %552 : vector<8x8xf32>
    %c2_321 = arith.constant 2 : index
    %c1_322 = arith.constant 1 : index
    %554 = memref.load %arg5[%c2_321, %c1_322] : memref<8x4xf32, #tpu.memory_space<smem>>
    %555 = vector.broadcast %554 : f32 to vector<8x8xf32>
    %556 = arith.mulf %484, %555 : vector<8x8xf32>
    %557 = arith.addf %553, %556 : vector<8x8xf32>
    %c2_323 = arith.constant 2 : index
    %c2_324 = arith.constant 2 : index
    %558 = memref.load %arg5[%c2_323, %c2_324] : memref<8x4xf32, #tpu.memory_space<smem>>
    %559 = vector.broadcast %558 : f32 to vector<8x8xf32>
    %560 = arith.mulf %494, %559 : vector<8x8xf32>
    %561 = arith.addf %557, %560 : vector<8x8xf32>
    %c2_325 = arith.constant 2 : index
    %c3_326 = arith.constant 3 : index
    %562 = memref.load %arg5[%c2_325, %c3_326] : memref<8x4xf32, #tpu.memory_space<smem>>
    %563 = vector.broadcast %562 : f32 to vector<8x8xf32>
    %564 = arith.mulf %504, %563 : vector<8x8xf32>
    %565 = arith.addf %561, %564 : vector<8x8xf32>
    %c2_327 = arith.constant 2 : index
    %566 = memref.load %arg6[%c2_327] : memref<8xf32, #tpu.memory_space<smem>>
    %567 = vector.broadcast %566 : f32 to vector<8x8xf32>
    %568 = arith.addf %565, %567 : vector<8x8xf32>
    %cst_328 = arith.constant 0.000000e+00 : f32
    %569 = vector.broadcast %cst_328 : f32 to vector<8x8xf32>
    %570 = arith.maximumf %568, %569 : vector<8x8xf32>
    %c0_329 = arith.constant 0 : index
    %c2_330 = arith.constant 2 : index
    %c2_331 = arith.constant 2 : index
    %c0_332 = arith.constant 0 : index
    %c0_333 = arith.constant 0 : index
    %571 = vector.load %arg7[%c0_329, %c2_330, %c2_331, %c0_332, %c0_333] : memref<1x8x4x8x8xf32, #tpu.memory_space<vmem>>, vector<1x1x1x8x8xf32>
    %572 = vector.shape_cast %571 : vector<1x1x1x8x8xf32> to vector<8x8xf32>
    %573 = vector.shape_cast %570 : vector<8x8xf32> to vector<1x1x1x8x8xf32>
    tpu.vector_store %arg7[%c0_329, %c2_330, %c2_331, %c0_332, %c0_333], %573 {strides = array<i32>} : memref<1x8x4x8x8xf32, #tpu.memory_space<vmem>>, vector<1x1x1x8x8xf32>,
    %c3_334 = arith.constant 3 : index
    %c0_335 = arith.constant 0 : index
    %574 = memref.load %arg5[%c3_334, %c0_335] : memref<8x4xf32, #tpu.memory_space<smem>>
    %575 = vector.broadcast %574 : f32 to vector<8x8xf32>
    %576 = arith.mulf %474, %575 : vector<8x8xf32>
    %c3_336 = arith.constant 3 : index
    %c1_337 = arith.constant 1 : index
    %577 = memref.load %arg5[%c3_336, %c1_337] : memref<8x4xf32, #tpu.memory_space<smem>>
    %578 = vector.broadcast %577 : f32 to vector<8x8xf32>
    %579 = arith.mulf %484, %578 : vector<8x8xf32>
    %580 = arith.addf %576, %579 : vector<8x8xf32>
    %c3_338 = arith.constant 3 : index
    %c2_339 = arith.constant 2 : index
    %581 = memref.load %arg5[%c3_338, %c2_339] : memref<8x4xf32, #tpu.memory_space<smem>>
    %582 = vector.broadcast %581 : f32 to vector<8x8xf32>
    %583 = arith.mulf %494, %582 : vector<8x8xf32>
    %584 = arith.addf %580, %583 : vector<8x8xf32>
    %c3_340 = arith.constant 3 : index
    %c3_341 = arith.constant 3 : index
    %585 = memref.load %arg5[%c3_340, %c3_341] : memref<8x4xf32, #tpu.memory_space<smem>>
    %586 = vector.broadcast %585 : f32 to vector<8x8xf32>
    %587 = arith.mulf %504, %586 : vector<8x8xf32>
    %588 = arith.addf %584, %587 : vector<8x8xf32>
    %c3_342 = arith.constant 3 : index
    %589 = memref.load %arg6[%c3_342] : memref<8xf32, #tpu.memory_space<smem>>
    %590 = vector.broadcast %589 : f32 to vector<8x8xf32>
    %591 = arith.addf %588, %590 : vector<8x8xf32>
    %cst_343 = arith.constant 0.000000e+00 : f32
    %592 = vector.broadcast %cst_343 : f32 to vector<8x8xf32>
    %593 = arith.maximumf %591, %592 : vector<8x8xf32>
    %c0_344 = arith.constant 0 : index
    %c3_345 = arith.constant 3 : index
    %c2_346 = arith.constant 2 : index
    %c0_347 = arith.constant 0 : index
    %c0_348 = arith.constant 0 : index
    %594 = vector.load %arg7[%c0_344, %c3_345, %c2_346, %c0_347, %c0_348] : memref<1x8x4x8x8xf32, #tpu.memory_space<vmem>>, vector<1x1x1x8x8xf32>
    %595 = vector.shape_cast %594 : vector<1x1x1x8x8xf32> to vector<8x8xf32>
    %596 = vector.shape_cast %593 : vector<8x8xf32> to vector<1x1x1x8x8xf32>
    tpu.vector_store %arg7[%c0_344, %c3_345, %c2_346, %c0_347, %c0_348], %596 {strides = array<i32>} : memref<1x8x4x8x8xf32, #tpu.memory_space<vmem>>, vector<1x1x1x8x8xf32>,
    %c4_349 = arith.constant 4 : index
    %c0_350 = arith.constant 0 : index
    %597 = memref.load %arg5[%c4_349, %c0_350] : memref<8x4xf32, #tpu.memory_space<smem>>
    %598 = vector.broadcast %597 : f32 to vector<8x8xf32>
    %599 = arith.mulf %474, %598 : vector<8x8xf32>
    %c4_351 = arith.constant 4 : index
    %c1_352 = arith.constant 1 : index
    %600 = memref.load %arg5[%c4_351, %c1_352] : memref<8x4xf32, #tpu.memory_space<smem>>
    %601 = vector.broadcast %600 : f32 to vector<8x8xf32>
    %602 = arith.mulf %484, %601 : vector<8x8xf32>
    %603 = arith.addf %599, %602 : vector<8x8xf32>
    %c4_353 = arith.constant 4 : index
    %c2_354 = arith.constant 2 : index
    %604 = memref.load %arg5[%c4_353, %c2_354] : memref<8x4xf32, #tpu.memory_space<smem>>
    %605 = vector.broadcast %604 : f32 to vector<8x8xf32>
    %606 = arith.mulf %494, %605 : vector<8x8xf32>
    %607 = arith.addf %603, %606 : vector<8x8xf32>
    %c4_355 = arith.constant 4 : index
    %c3_356 = arith.constant 3 : index
    %608 = memref.load %arg5[%c4_355, %c3_356] : memref<8x4xf32, #tpu.memory_space<smem>>
    %609 = vector.broadcast %608 : f32 to vector<8x8xf32>
    %610 = arith.mulf %504, %609 : vector<8x8xf32>
    %611 = arith.addf %607, %610 : vector<8x8xf32>
    %c4_357 = arith.constant 4 : index
    %612 = memref.load %arg6[%c4_357] : memref<8xf32, #tpu.memory_space<smem>>
    %613 = vector.broadcast %612 : f32 to vector<8x8xf32>
    %614 = arith.addf %611, %613 : vector<8x8xf32>
    %cst_358 = arith.constant 0.000000e+00 : f32
    %615 = vector.broadcast %cst_358 : f32 to vector<8x8xf32>
    %616 = arith.maximumf %614, %615 : vector<8x8xf32>
    %c0_359 = arith.constant 0 : index
    %c4_360 = arith.constant 4 : index
    %c2_361 = arith.constant 2 : index
    %c0_362 = arith.constant 0 : index
    %c0_363 = arith.constant 0 : index
    %617 = vector.load %arg7[%c0_359, %c4_360, %c2_361, %c0_362, %c0_363] : memref<1x8x4x8x8xf32, #tpu.memory_space<vmem>>, vector<1x1x1x8x8xf32>
    %618 = vector.shape_cast %617 : vector<1x1x1x8x8xf32> to vector<8x8xf32>
    %619 = vector.shape_cast %616 : vector<8x8xf32> to vector<1x1x1x8x8xf32>
    tpu.vector_store %arg7[%c0_359, %c4_360, %c2_361, %c0_362, %c0_363], %619 {strides = array<i32>} : memref<1x8x4x8x8xf32, #tpu.memory_space<vmem>>, vector<1x1x1x8x8xf32>,
    %c5_364 = arith.constant 5 : index
    %c0_365 = arith.constant 0 : index
    %620 = memref.load %arg5[%c5_364, %c0_365] : memref<8x4xf32, #tpu.memory_space<smem>>
    %621 = vector.broadcast %620 : f32 to vector<8x8xf32>
    %622 = arith.mulf %474, %621 : vector<8x8xf32>
    %c5_366 = arith.constant 5 : index
    %c1_367 = arith.constant 1 : index
    %623 = memref.load %arg5[%c5_366, %c1_367] : memref<8x4xf32, #tpu.memory_space<smem>>
    %624 = vector.broadcast %623 : f32 to vector<8x8xf32>
    %625 = arith.mulf %484, %624 : vector<8x8xf32>
    %626 = arith.addf %622, %625 : vector<8x8xf32>
    %c5_368 = arith.constant 5 : index
    %c2_369 = arith.constant 2 : index
    %627 = memref.load %arg5[%c5_368, %c2_369] : memref<8x4xf32, #tpu.memory_space<smem>>
    %628 = vector.broadcast %627 : f32 to vector<8x8xf32>
    %629 = arith.mulf %494, %628 : vector<8x8xf32>
    %630 = arith.addf %626, %629 : vector<8x8xf32>
    %c5_370 = arith.constant 5 : index
    %c3_371 = arith.constant 3 : index
    %631 = memref.load %arg5[%c5_370, %c3_371] : memref<8x4xf32, #tpu.memory_space<smem>>
    %632 = vector.broadcast %631 : f32 to vector<8x8xf32>
    %633 = arith.mulf %504, %632 : vector<8x8xf32>
    %634 = arith.addf %630, %633 : vector<8x8xf32>
    %c5_372 = arith.constant 5 : index
    %635 = memref.load %arg6[%c5_372] : memref<8xf32, #tpu.memory_space<smem>>
    %636 = vector.broadcast %635 : f32 to vector<8x8xf32>
    %637 = arith.addf %634, %636 : vector<8x8xf32>
    %cst_373 = arith.constant 0.000000e+00 : f32
    %638 = vector.broadcast %cst_373 : f32 to vector<8x8xf32>
    %639 = arith.maximumf %637, %638 : vector<8x8xf32>
    %c0_374 = arith.constant 0 : index
    %c5_375 = arith.constant 5 : index
    %c2_376 = arith.constant 2 : index
    %c0_377 = arith.constant 0 : index
    %c0_378 = arith.constant 0 : index
    %640 = vector.load %arg7[%c0_374, %c5_375, %c2_376, %c0_377, %c0_378] : memref<1x8x4x8x8xf32, #tpu.memory_space<vmem>>, vector<1x1x1x8x8xf32>
    %641 = vector.shape_cast %640 : vector<1x1x1x8x8xf32> to vector<8x8xf32>
    %642 = vector.shape_cast %639 : vector<8x8xf32> to vector<1x1x1x8x8xf32>
    tpu.vector_store %arg7[%c0_374, %c5_375, %c2_376, %c0_377, %c0_378], %642 {strides = array<i32>} : memref<1x8x4x8x8xf32, #tpu.memory_space<vmem>>, vector<1x1x1x8x8xf32>,
    %c6_379 = arith.constant 6 : index
    %c0_380 = arith.constant 0 : index
    %643 = memref.load %arg5[%c6_379, %c0_380] : memref<8x4xf32, #tpu.memory_space<smem>>
    %644 = vector.broadcast %643 : f32 to vector<8x8xf32>
    %645 = arith.mulf %474, %644 : vector<8x8xf32>
    %c6_381 = arith.constant 6 : index
    %c1_382 = arith.constant 1 : index
    %646 = memref.load %arg5[%c6_381, %c1_382] : memref<8x4xf32, #tpu.memory_space<smem>>
    %647 = vector.broadcast %646 : f32 to vector<8x8xf32>
    %648 = arith.mulf %484, %647 : vector<8x8xf32>
    %649 = arith.addf %645, %648 : vector<8x8xf32>
    %c6_383 = arith.constant 6 : index
    %c2_384 = arith.constant 2 : index
    %650 = memref.load %arg5[%c6_383, %c2_384] : memref<8x4xf32, #tpu.memory_space<smem>>
    %651 = vector.broadcast %650 : f32 to vector<8x8xf32>
    %652 = arith.mulf %494, %651 : vector<8x8xf32>
    %653 = arith.addf %649, %652 : vector<8x8xf32>
    %c6_385 = arith.constant 6 : index
    %c3_386 = arith.constant 3 : index
    %654 = memref.load %arg5[%c6_385, %c3_386] : memref<8x4xf32, #tpu.memory_space<smem>>
    %655 = vector.broadcast %654 : f32 to vector<8x8xf32>
    %656 = arith.mulf %504, %655 : vector<8x8xf32>
    %657 = arith.addf %653, %656 : vector<8x8xf32>
    %c6_387 = arith.constant 6 : index
    %658 = memref.load %arg6[%c6_387] : memref<8xf32, #tpu.memory_space<smem>>
    %659 = vector.broadcast %658 : f32 to vector<8x8xf32>
    %660 = arith.addf %657, %659 : vector<8x8xf32>
    %cst_388 = arith.constant 0.000000e+00 : f32
    %661 = vector.broadcast %cst_388 : f32 to vector<8x8xf32>
    %662 = arith.maximumf %660, %661 : vector<8x8xf32>
    %c0_389 = arith.constant 0 : index
    %c6_390 = arith.constant 6 : index
    %c2_391 = arith.constant 2 : index
    %c0_392 = arith.constant 0 : index
    %c0_393 = arith.constant 0 : index
    %663 = vector.load %arg7[%c0_389, %c6_390, %c2_391, %c0_392, %c0_393] : memref<1x8x4x8x8xf32, #tpu.memory_space<vmem>>, vector<1x1x1x8x8xf32>
    %664 = vector.shape_cast %663 : vector<1x1x1x8x8xf32> to vector<8x8xf32>
    %665 = vector.shape_cast %662 : vector<8x8xf32> to vector<1x1x1x8x8xf32>
    tpu.vector_store %arg7[%c0_389, %c6_390, %c2_391, %c0_392, %c0_393], %665 {strides = array<i32>} : memref<1x8x4x8x8xf32, #tpu.memory_space<vmem>>, vector<1x1x1x8x8xf32>,
    %c7_394 = arith.constant 7 : index
    %c0_395 = arith.constant 0 : index
    %666 = memref.load %arg5[%c7_394, %c0_395] : memref<8x4xf32, #tpu.memory_space<smem>>
    %667 = vector.broadcast %666 : f32 to vector<8x8xf32>
    %668 = arith.mulf %474, %667 : vector<8x8xf32>
    %c7_396 = arith.constant 7 : index
    %c1_397 = arith.constant 1 : index
    %669 = memref.load %arg5[%c7_396, %c1_397] : memref<8x4xf32, #tpu.memory_space<smem>>
    %670 = vector.broadcast %669 : f32 to vector<8x8xf32>
    %671 = arith.mulf %484, %670 : vector<8x8xf32>
    %672 = arith.addf %668, %671 : vector<8x8xf32>
    %c7_398 = arith.constant 7 : index
    %c2_399 = arith.constant 2 : index
    %673 = memref.load %arg5[%c7_398, %c2_399] : memref<8x4xf32, #tpu.memory_space<smem>>
    %674 = vector.broadcast %673 : f32 to vector<8x8xf32>
    %675 = arith.mulf %494, %674 : vector<8x8xf32>
    %676 = arith.addf %672, %675 : vector<8x8xf32>
    %c7_400 = arith.constant 7 : index
    %c3_401 = arith.constant 3 : index
    %677 = memref.load %arg5[%c7_400, %c3_401] : memref<8x4xf32, #tpu.memory_space<smem>>
    %678 = vector.broadcast %677 : f32 to vector<8x8xf32>
    %679 = arith.mulf %504, %678 : vector<8x8xf32>
    %680 = arith.addf %676, %679 : vector<8x8xf32>
    %c7_402 = arith.constant 7 : index
    %681 = memref.load %arg6[%c7_402] : memref<8xf32, #tpu.memory_space<smem>>
    %682 = vector.broadcast %681 : f32 to vector<8x8xf32>
    %683 = arith.addf %680, %682 : vector<8x8xf32>
    %cst_403 = arith.constant 0.000000e+00 : f32
    %684 = vector.broadcast %cst_403 : f32 to vector<8x8xf32>
    %685 = arith.maximumf %683, %684 : vector<8x8xf32>
    %c0_404 = arith.constant 0 : index
    %c7_405 = arith.constant 7 : index
    %c2_406 = arith.constant 2 : index
    %c0_407 = arith.constant 0 : index
    %c0_408 = arith.constant 0 : index
    %686 = vector.load %arg7[%c0_404, %c7_405, %c2_406, %c0_407, %c0_408] : memref<1x8x4x8x8xf32, #tpu.memory_space<vmem>>, vector<1x1x1x8x8xf32>
    %687 = vector.shape_cast %686 : vector<1x1x1x8x8xf32> to vector<8x8xf32>
    %688 = vector.shape_cast %685 : vector<8x8xf32> to vector<1x1x1x8x8xf32>
    tpu.vector_store %arg7[%c0_404, %c7_405, %c2_406, %c0_407, %c0_408], %688 {strides = array<i32>} : memref<1x8x4x8x8xf32, #tpu.memory_space<vmem>>, vector<1x1x1x8x8xf32>,
    %c0_409 = arith.constant 0 : index
    %c0_410 = arith.constant 0 : index
    %c6_411 = arith.constant 6 : index
    %c0_412 = arith.constant 0 : index
    %c0_413 = arith.constant 0 : index
    %689 = vector.load %arg2[%c0_409, %c0_410, %c6_411, %c0_412, %c0_413] : memref<1x4x8x16x16xf32, #tpu.memory_space<vmem>>, vector<1x4x1x16x16xf32>
    %690 = vector.shape_cast %689 : vector<1x4x1x16x16xf32> to vector<4x16x16xf32>
    %c0_414 = arith.constant 0 : index
    %c0_415 = arith.constant 0 : index
    %c7_416 = arith.constant 7 : index
    %c0_417 = arith.constant 0 : index
    %c0_418 = arith.constant 0 : index
    %691 = vector.load %arg2[%c0_414, %c0_415, %c7_416, %c0_417, %c0_418] : memref<1x4x8x16x16xf32, #tpu.memory_space<vmem>>, vector<1x4x1x16x16xf32>
    %692 = vector.shape_cast %691 : vector<1x4x1x16x16xf32> to vector<4x16x16xf32>
    %693 = arith.maximumf %690, %692 : vector<4x16x16xf32>
    %694 = vector.extract_strided_slice %693 {offsets = [0, 0, 0], sizes = [1, 16, 16], strides = [1, 1, 1]} : vector<4x16x16xf32> to vector<1x16x16xf32>
    %695 = vector.shape_cast %694 : vector<1x16x16xf32> to vector<16x16xf32>
    %cst_419 = arith.constant dense<0.000000e+00> : vector<16x16xf32>
    %696 = tpu.matmul %695, %0, %cst_419 {dimension_numbers = #tpu.dot_dimension_numbers<[1], [0], [0], [1], [0, 0, 1, 1], [], []>} : vector<16x16xf32>, vector<16x16xf32>, vector<16x16xf32> -> vector<16x16xf32>
    %697 = vector.extract_strided_slice %696 {offsets = [0, 0], sizes = [16, 8], strides = [1, 1]} : vector<16x16xf32> to vector<16x8xf32>
    %698 = vector.extract_strided_slice %696 {offsets = [0, 8], sizes = [16, 8], strides = [1, 1]} : vector<16x16xf32> to vector<16x8xf32>
    %699 = arith.maximumf %697, %698 : vector<16x8xf32>
    %cst_420 = arith.constant dense<0.000000e+00> : vector<16x8xf32>
    %700 = tpu.matmul %1, %699, %cst_420 {dimension_numbers = #tpu.dot_dimension_numbers<[1], [0], [0], [1], [0, 0, 1, 1], [], []>} : vector<16x16xf32>, vector<16x8xf32>, vector<16x8xf32> -> vector<16x8xf32>
    %701 = vector.extract_strided_slice %700 {offsets = [0, 0], sizes = [8, 8], strides = [1, 1]} : vector<16x8xf32> to vector<8x8xf32>
    %702 = vector.extract_strided_slice %700 {offsets = [8, 0], sizes = [8, 8], strides = [1, 1]} : vector<16x8xf32> to vector<8x8xf32>
    %703 = arith.maximumf %701, %702 : vector<8x8xf32>
    %704 = vector.extract_strided_slice %693 {offsets = [1, 0, 0], sizes = [1, 16, 16], strides = [1, 1, 1]} : vector<4x16x16xf32> to vector<1x16x16xf32>
    %705 = vector.shape_cast %704 : vector<1x16x16xf32> to vector<16x16xf32>
    %cst_421 = arith.constant dense<0.000000e+00> : vector<16x16xf32>
    %706 = tpu.matmul %705, %0, %cst_421 {dimension_numbers = #tpu.dot_dimension_numbers<[1], [0], [0], [1], [0, 0, 1, 1], [], []>} : vector<16x16xf32>, vector<16x16xf32>, vector<16x16xf32> -> vector<16x16xf32>
    %707 = vector.extract_strided_slice %706 {offsets = [0, 0], sizes = [16, 8], strides = [1, 1]} : vector<16x16xf32> to vector<16x8xf32>
    %708 = vector.extract_strided_slice %706 {offsets = [0, 8], sizes = [16, 8], strides = [1, 1]} : vector<16x16xf32> to vector<16x8xf32>
    %709 = arith.maximumf %707, %708 : vector<16x8xf32>
    %cst_422 = arith.constant dense<0.000000e+00> : vector<16x8xf32>
    %710 = tpu.matmul %1, %709, %cst_422 {dimension_numbers = #tpu.dot_dimension_numbers<[1], [0], [0], [1], [0, 0, 1, 1], [], []>} : vector<16x16xf32>, vector<16x8xf32>, vector<16x8xf32> -> vector<16x8xf32>
    %711 = vector.extract_strided_slice %710 {offsets = [0, 0], sizes = [8, 8], strides = [1, 1]} : vector<16x8xf32> to vector<8x8xf32>
    %712 = vector.extract_strided_slice %710 {offsets = [8, 0], sizes = [8, 8], strides = [1, 1]} : vector<16x8xf32> to vector<8x8xf32>
    %713 = arith.maximumf %711, %712 : vector<8x8xf32>
    %714 = vector.extract_strided_slice %693 {offsets = [2, 0, 0], sizes = [1, 16, 16], strides = [1, 1, 1]} : vector<4x16x16xf32> to vector<1x16x16xf32>
    %715 = vector.shape_cast %714 : vector<1x16x16xf32> to vector<16x16xf32>
    %cst_423 = arith.constant dense<0.000000e+00> : vector<16x16xf32>
    %716 = tpu.matmul %715, %0, %cst_423 {dimension_numbers = #tpu.dot_dimension_numbers<[1], [0], [0], [1], [0, 0, 1, 1], [], []>} : vector<16x16xf32>, vector<16x16xf32>, vector<16x16xf32> -> vector<16x16xf32>
    %717 = vector.extract_strided_slice %716 {offsets = [0, 0], sizes = [16, 8], strides = [1, 1]} : vector<16x16xf32> to vector<16x8xf32>
    %718 = vector.extract_strided_slice %716 {offsets = [0, 8], sizes = [16, 8], strides = [1, 1]} : vector<16x16xf32> to vector<16x8xf32>
    %719 = arith.maximumf %717, %718 : vector<16x8xf32>
    %cst_424 = arith.constant dense<0.000000e+00> : vector<16x8xf32>
    %720 = tpu.matmul %1, %719, %cst_424 {dimension_numbers = #tpu.dot_dimension_numbers<[1], [0], [0], [1], [0, 0, 1, 1], [], []>} : vector<16x16xf32>, vector<16x8xf32>, vector<16x8xf32> -> vector<16x8xf32>
    %721 = vector.extract_strided_slice %720 {offsets = [0, 0], sizes = [8, 8], strides = [1, 1]} : vector<16x8xf32> to vector<8x8xf32>
    %722 = vector.extract_strided_slice %720 {offsets = [8, 0], sizes = [8, 8], strides = [1, 1]} : vector<16x8xf32> to vector<8x8xf32>
    %723 = arith.maximumf %721, %722 : vector<8x8xf32>
    %724 = vector.extract_strided_slice %693 {offsets = [3, 0, 0], sizes = [1, 16, 16], strides = [1, 1, 1]} : vector<4x16x16xf32> to vector<1x16x16xf32>
    %725 = vector.shape_cast %724 : vector<1x16x16xf32> to vector<16x16xf32>
    %cst_425 = arith.constant dense<0.000000e+00> : vector<16x16xf32>
    %726 = tpu.matmul %725, %0, %cst_425 {dimension_numbers = #tpu.dot_dimension_numbers<[1], [0], [0], [1], [0, 0, 1, 1], [], []>} : vector<16x16xf32>, vector<16x16xf32>, vector<16x16xf32> -> vector<16x16xf32>
    %727 = vector.extract_strided_slice %726 {offsets = [0, 0], sizes = [16, 8], strides = [1, 1]} : vector<16x16xf32> to vector<16x8xf32>
    %728 = vector.extract_strided_slice %726 {offsets = [0, 8], sizes = [16, 8], strides = [1, 1]} : vector<16x16xf32> to vector<16x8xf32>
    %729 = arith.maximumf %727, %728 : vector<16x8xf32>
    %cst_426 = arith.constant dense<0.000000e+00> : vector<16x8xf32>
    %730 = tpu.matmul %1, %729, %cst_426 {dimension_numbers = #tpu.dot_dimension_numbers<[1], [0], [0], [1], [0, 0, 1, 1], [], []>} : vector<16x16xf32>, vector<16x8xf32>, vector<16x8xf32> -> vector<16x8xf32>
    %731 = vector.extract_strided_slice %730 {offsets = [0, 0], sizes = [8, 8], strides = [1, 1]} : vector<16x8xf32> to vector<8x8xf32>
    %732 = vector.extract_strided_slice %730 {offsets = [8, 0], sizes = [8, 8], strides = [1, 1]} : vector<16x8xf32> to vector<8x8xf32>
    %733 = arith.maximumf %731, %732 : vector<8x8xf32>
    %c0_427 = arith.constant 0 : index
    %c0_428 = arith.constant 0 : index
    %734 = memref.load %arg5[%c0_427, %c0_428] : memref<8x4xf32, #tpu.memory_space<smem>>
    %735 = vector.broadcast %734 : f32 to vector<8x8xf32>
    %736 = arith.mulf %703, %735 : vector<8x8xf32>
    %c0_429 = arith.constant 0 : index
    %c1_430 = arith.constant 1 : index
    %737 = memref.load %arg5[%c0_429, %c1_430] : memref<8x4xf32, #tpu.memory_space<smem>>
    %738 = vector.broadcast %737 : f32 to vector<8x8xf32>
    %739 = arith.mulf %713, %738 : vector<8x8xf32>
    %740 = arith.addf %736, %739 : vector<8x8xf32>
    %c0_431 = arith.constant 0 : index
    %c2_432 = arith.constant 2 : index
    %741 = memref.load %arg5[%c0_431, %c2_432] : memref<8x4xf32, #tpu.memory_space<smem>>
    %742 = vector.broadcast %741 : f32 to vector<8x8xf32>
    %743 = arith.mulf %723, %742 : vector<8x8xf32>
    %744 = arith.addf %740, %743 : vector<8x8xf32>
    %c0_433 = arith.constant 0 : index
    %c3_434 = arith.constant 3 : index
    %745 = memref.load %arg5[%c0_433, %c3_434] : memref<8x4xf32, #tpu.memory_space<smem>>
    %746 = vector.broadcast %745 : f32 to vector<8x8xf32>
    %747 = arith.mulf %733, %746 : vector<8x8xf32>
    %748 = arith.addf %744, %747 : vector<8x8xf32>
    %c0_435 = arith.constant 0 : index
    %749 = memref.load %arg6[%c0_435] : memref<8xf32, #tpu.memory_space<smem>>
    %750 = vector.broadcast %749 : f32 to vector<8x8xf32>
    %751 = arith.addf %748, %750 : vector<8x8xf32>
    %cst_436 = arith.constant 0.000000e+00 : f32
    %752 = vector.broadcast %cst_436 : f32 to vector<8x8xf32>
    %753 = arith.maximumf %751, %752 : vector<8x8xf32>
    %c0_437 = arith.constant 0 : index
    %c0_438 = arith.constant 0 : index
    %c3_439 = arith.constant 3 : index
    %c0_440 = arith.constant 0 : index
    %c0_441 = arith.constant 0 : index
    %754 = vector.load %arg7[%c0_437, %c0_438, %c3_439, %c0_440, %c0_441] : memref<1x8x4x8x8xf32, #tpu.memory_space<vmem>>, vector<1x1x1x8x8xf32>
    %755 = vector.shape_cast %754 : vector<1x1x1x8x8xf32> to vector<8x8xf32>
    %756 = vector.shape_cast %753 : vector<8x8xf32> to vector<1x1x1x8x8xf32>
    tpu.vector_store %arg7[%c0_437, %c0_438, %c3_439, %c0_440, %c0_441], %756 {strides = array<i32>} : memref<1x8x4x8x8xf32, #tpu.memory_space<vmem>>, vector<1x1x1x8x8xf32>,
    %c1_442 = arith.constant 1 : index
    %c0_443 = arith.constant 0 : index
    %757 = memref.load %arg5[%c1_442, %c0_443] : memref<8x4xf32, #tpu.memory_space<smem>>
    %758 = vector.broadcast %757 : f32 to vector<8x8xf32>
    %759 = arith.mulf %703, %758 : vector<8x8xf32>
    %c1_444 = arith.constant 1 : index
    %c1_445 = arith.constant 1 : index
    %760 = memref.load %arg5[%c1_444, %c1_445] : memref<8x4xf32, #tpu.memory_space<smem>>
    %761 = vector.broadcast %760 : f32 to vector<8x8xf32>
    %762 = arith.mulf %713, %761 : vector<8x8xf32>
    %763 = arith.addf %759, %762 : vector<8x8xf32>
    %c1_446 = arith.constant 1 : index
    %c2_447 = arith.constant 2 : index
    %764 = memref.load %arg5[%c1_446, %c2_447] : memref<8x4xf32, #tpu.memory_space<smem>>
    %765 = vector.broadcast %764 : f32 to vector<8x8xf32>
    %766 = arith.mulf %723, %765 : vector<8x8xf32>
    %767 = arith.addf %763, %766 : vector<8x8xf32>
    %c1_448 = arith.constant 1 : index
    %c3_449 = arith.constant 3 : index
    %768 = memref.load %arg5[%c1_448, %c3_449] : memref<8x4xf32, #tpu.memory_space<smem>>
    %769 = vector.broadcast %768 : f32 to vector<8x8xf32>
    %770 = arith.mulf %733, %769 : vector<8x8xf32>
    %771 = arith.addf %767, %770 : vector<8x8xf32>
    %c1_450 = arith.constant 1 : index
    %772 = memref.load %arg6[%c1_450] : memref<8xf32, #tpu.memory_space<smem>>
    %773 = vector.broadcast %772 : f32 to vector<8x8xf32>
    %774 = arith.addf %771, %773 : vector<8x8xf32>
    %cst_451 = arith.constant 0.000000e+00 : f32
    %775 = vector.broadcast %cst_451 : f32 to vector<8x8xf32>
    %776 = arith.maximumf %774, %775 : vector<8x8xf32>
    %c0_452 = arith.constant 0 : index
    %c1_453 = arith.constant 1 : index
    %c3_454 = arith.constant 3 : index
    %c0_455 = arith.constant 0 : index
    %c0_456 = arith.constant 0 : index
    %777 = vector.load %arg7[%c0_452, %c1_453, %c3_454, %c0_455, %c0_456] : memref<1x8x4x8x8xf32, #tpu.memory_space<vmem>>, vector<1x1x1x8x8xf32>
    %778 = vector.shape_cast %777 : vector<1x1x1x8x8xf32> to vector<8x8xf32>
    %779 = vector.shape_cast %776 : vector<8x8xf32> to vector<1x1x1x8x8xf32>
    tpu.vector_store %arg7[%c0_452, %c1_453, %c3_454, %c0_455, %c0_456], %779 {strides = array<i32>} : memref<1x8x4x8x8xf32, #tpu.memory_space<vmem>>, vector<1x1x1x8x8xf32>,
    %c2_457 = arith.constant 2 : index
    %c0_458 = arith.constant 0 : index
    %780 = memref.load %arg5[%c2_457, %c0_458] : memref<8x4xf32, #tpu.memory_space<smem>>
    %781 = vector.broadcast %780 : f32 to vector<8x8xf32>
    %782 = arith.mulf %703, %781 : vector<8x8xf32>
    %c2_459 = arith.constant 2 : index
    %c1_460 = arith.constant 1 : index
    %783 = memref.load %arg5[%c2_459, %c1_460] : memref<8x4xf32, #tpu.memory_space<smem>>
    %784 = vector.broadcast %783 : f32 to vector<8x8xf32>
    %785 = arith.mulf %713, %784 : vector<8x8xf32>
    %786 = arith.addf %782, %785 : vector<8x8xf32>
    %c2_461 = arith.constant 2 : index
    %c2_462 = arith.constant 2 : index
    %787 = memref.load %arg5[%c2_461, %c2_462] : memref<8x4xf32, #tpu.memory_space<smem>>
    %788 = vector.broadcast %787 : f32 to vector<8x8xf32>
    %789 = arith.mulf %723, %788 : vector<8x8xf32>
    %790 = arith.addf %786, %789 : vector<8x8xf32>
    %c2_463 = arith.constant 2 : index
    %c3_464 = arith.constant 3 : index
    %791 = memref.load %arg5[%c2_463, %c3_464] : memref<8x4xf32, #tpu.memory_space<smem>>
    %792 = vector.broadcast %791 : f32 to vector<8x8xf32>
    %793 = arith.mulf %733, %792 : vector<8x8xf32>
    %794 = arith.addf %790, %793 : vector<8x8xf32>
    %c2_465 = arith.constant 2 : index
    %795 = memref.load %arg6[%c2_465] : memref<8xf32, #tpu.memory_space<smem>>
    %796 = vector.broadcast %795 : f32 to vector<8x8xf32>
    %797 = arith.addf %794, %796 : vector<8x8xf32>
    %cst_466 = arith.constant 0.000000e+00 : f32
    %798 = vector.broadcast %cst_466 : f32 to vector<8x8xf32>
    %799 = arith.maximumf %797, %798 : vector<8x8xf32>
    %c0_467 = arith.constant 0 : index
    %c2_468 = arith.constant 2 : index
    %c3_469 = arith.constant 3 : index
    %c0_470 = arith.constant 0 : index
    %c0_471 = arith.constant 0 : index
    %800 = vector.load %arg7[%c0_467, %c2_468, %c3_469, %c0_470, %c0_471] : memref<1x8x4x8x8xf32, #tpu.memory_space<vmem>>, vector<1x1x1x8x8xf32>
    %801 = vector.shape_cast %800 : vector<1x1x1x8x8xf32> to vector<8x8xf32>
    %802 = vector.shape_cast %799 : vector<8x8xf32> to vector<1x1x1x8x8xf32>
    tpu.vector_store %arg7[%c0_467, %c2_468, %c3_469, %c0_470, %c0_471], %802 {strides = array<i32>} : memref<1x8x4x8x8xf32, #tpu.memory_space<vmem>>, vector<1x1x1x8x8xf32>,
    %c3_472 = arith.constant 3 : index
    %c0_473 = arith.constant 0 : index
    %803 = memref.load %arg5[%c3_472, %c0_473] : memref<8x4xf32, #tpu.memory_space<smem>>
    %804 = vector.broadcast %803 : f32 to vector<8x8xf32>
    %805 = arith.mulf %703, %804 : vector<8x8xf32>
    %c3_474 = arith.constant 3 : index
    %c1_475 = arith.constant 1 : index
    %806 = memref.load %arg5[%c3_474, %c1_475] : memref<8x4xf32, #tpu.memory_space<smem>>
    %807 = vector.broadcast %806 : f32 to vector<8x8xf32>
    %808 = arith.mulf %713, %807 : vector<8x8xf32>
    %809 = arith.addf %805, %808 : vector<8x8xf32>
    %c3_476 = arith.constant 3 : index
    %c2_477 = arith.constant 2 : index
    %810 = memref.load %arg5[%c3_476, %c2_477] : memref<8x4xf32, #tpu.memory_space<smem>>
    %811 = vector.broadcast %810 : f32 to vector<8x8xf32>
    %812 = arith.mulf %723, %811 : vector<8x8xf32>
    %813 = arith.addf %809, %812 : vector<8x8xf32>
    %c3_478 = arith.constant 3 : index
    %c3_479 = arith.constant 3 : index
    %814 = memref.load %arg5[%c3_478, %c3_479] : memref<8x4xf32, #tpu.memory_space<smem>>
    %815 = vector.broadcast %814 : f32 to vector<8x8xf32>
    %816 = arith.mulf %733, %815 : vector<8x8xf32>
    %817 = arith.addf %813, %816 : vector<8x8xf32>
    %c3_480 = arith.constant 3 : index
    %818 = memref.load %arg6[%c3_480] : memref<8xf32, #tpu.memory_space<smem>>
    %819 = vector.broadcast %818 : f32 to vector<8x8xf32>
    %820 = arith.addf %817, %819 : vector<8x8xf32>
    %cst_481 = arith.constant 0.000000e+00 : f32
    %821 = vector.broadcast %cst_481 : f32 to vector<8x8xf32>
    %822 = arith.maximumf %820, %821 : vector<8x8xf32>
    %c0_482 = arith.constant 0 : index
    %c3_483 = arith.constant 3 : index
    %c3_484 = arith.constant 3 : index
    %c0_485 = arith.constant 0 : index
    %c0_486 = arith.constant 0 : index
    %823 = vector.load %arg7[%c0_482, %c3_483, %c3_484, %c0_485, %c0_486] : memref<1x8x4x8x8xf32, #tpu.memory_space<vmem>>, vector<1x1x1x8x8xf32>
    %824 = vector.shape_cast %823 : vector<1x1x1x8x8xf32> to vector<8x8xf32>
    %825 = vector.shape_cast %822 : vector<8x8xf32> to vector<1x1x1x8x8xf32>
    tpu.vector_store %arg7[%c0_482, %c3_483, %c3_484, %c0_485, %c0_486], %825 {strides = array<i32>} : memref<1x8x4x8x8xf32, #tpu.memory_space<vmem>>, vector<1x1x1x8x8xf32>,
    %c4_487 = arith.constant 4 : index
    %c0_488 = arith.constant 0 : index
    %826 = memref.load %arg5[%c4_487, %c0_488] : memref<8x4xf32, #tpu.memory_space<smem>>
    %827 = vector.broadcast %826 : f32 to vector<8x8xf32>
    %828 = arith.mulf %703, %827 : vector<8x8xf32>
    %c4_489 = arith.constant 4 : index
    %c1_490 = arith.constant 1 : index
    %829 = memref.load %arg5[%c4_489, %c1_490] : memref<8x4xf32, #tpu.memory_space<smem>>
    %830 = vector.broadcast %829 : f32 to vector<8x8xf32>
    %831 = arith.mulf %713, %830 : vector<8x8xf32>
    %832 = arith.addf %828, %831 : vector<8x8xf32>
    %c4_491 = arith.constant 4 : index
    %c2_492 = arith.constant 2 : index
    %833 = memref.load %arg5[%c4_491, %c2_492] : memref<8x4xf32, #tpu.memory_space<smem>>
    %834 = vector.broadcast %833 : f32 to vector<8x8xf32>
    %835 = arith.mulf %723, %834 : vector<8x8xf32>
    %836 = arith.addf %832, %835 : vector<8x8xf32>
    %c4_493 = arith.constant 4 : index
    %c3_494 = arith.constant 3 : index
    %837 = memref.load %arg5[%c4_493, %c3_494] : memref<8x4xf32, #tpu.memory_space<smem>>
    %838 = vector.broadcast %837 : f32 to vector<8x8xf32>
    %839 = arith.mulf %733, %838 : vector<8x8xf32>
    %840 = arith.addf %836, %839 : vector<8x8xf32>
    %c4_495 = arith.constant 4 : index
    %841 = memref.load %arg6[%c4_495] : memref<8xf32, #tpu.memory_space<smem>>
    %842 = vector.broadcast %841 : f32 to vector<8x8xf32>
    %843 = arith.addf %840, %842 : vector<8x8xf32>
    %cst_496 = arith.constant 0.000000e+00 : f32
    %844 = vector.broadcast %cst_496 : f32 to vector<8x8xf32>
    %845 = arith.maximumf %843, %844 : vector<8x8xf32>
    %c0_497 = arith.constant 0 : index
    %c4_498 = arith.constant 4 : index
    %c3_499 = arith.constant 3 : index
    %c0_500 = arith.constant 0 : index
    %c0_501 = arith.constant 0 : index
    %846 = vector.load %arg7[%c0_497, %c4_498, %c3_499, %c0_500, %c0_501] : memref<1x8x4x8x8xf32, #tpu.memory_space<vmem>>, vector<1x1x1x8x8xf32>
    %847 = vector.shape_cast %846 : vector<1x1x1x8x8xf32> to vector<8x8xf32>
    %848 = vector.shape_cast %845 : vector<8x8xf32> to vector<1x1x1x8x8xf32>
    tpu.vector_store %arg7[%c0_497, %c4_498, %c3_499, %c0_500, %c0_501], %848 {strides = array<i32>} : memref<1x8x4x8x8xf32, #tpu.memory_space<vmem>>, vector<1x1x1x8x8xf32>,
    %c5_502 = arith.constant 5 : index
    %c0_503 = arith.constant 0 : index
    %849 = memref.load %arg5[%c5_502, %c0_503] : memref<8x4xf32, #tpu.memory_space<smem>>
    %850 = vector.broadcast %849 : f32 to vector<8x8xf32>
    %851 = arith.mulf %703, %850 : vector<8x8xf32>
    %c5_504 = arith.constant 5 : index
    %c1_505 = arith.constant 1 : index
    %852 = memref.load %arg5[%c5_504, %c1_505] : memref<8x4xf32, #tpu.memory_space<smem>>
    %853 = vector.broadcast %852 : f32 to vector<8x8xf32>
    %854 = arith.mulf %713, %853 : vector<8x8xf32>
    %855 = arith.addf %851, %854 : vector<8x8xf32>
    %c5_506 = arith.constant 5 : index
    %c2_507 = arith.constant 2 : index
    %856 = memref.load %arg5[%c5_506, %c2_507] : memref<8x4xf32, #tpu.memory_space<smem>>
    %857 = vector.broadcast %856 : f32 to vector<8x8xf32>
    %858 = arith.mulf %723, %857 : vector<8x8xf32>
    %859 = arith.addf %855, %858 : vector<8x8xf32>
    %c5_508 = arith.constant 5 : index
    %c3_509 = arith.constant 3 : index
    %860 = memref.load %arg5[%c5_508, %c3_509] : memref<8x4xf32, #tpu.memory_space<smem>>
    %861 = vector.broadcast %860 : f32 to vector<8x8xf32>
    %862 = arith.mulf %733, %861 : vector<8x8xf32>
    %863 = arith.addf %859, %862 : vector<8x8xf32>
    %c5_510 = arith.constant 5 : index
    %864 = memref.load %arg6[%c5_510] : memref<8xf32, #tpu.memory_space<smem>>
    %865 = vector.broadcast %864 : f32 to vector<8x8xf32>
    %866 = arith.addf %863, %865 : vector<8x8xf32>
    %cst_511 = arith.constant 0.000000e+00 : f32
    %867 = vector.broadcast %cst_511 : f32 to vector<8x8xf32>
    %868 = arith.maximumf %866, %867 : vector<8x8xf32>
    %c0_512 = arith.constant 0 : index
    %c5_513 = arith.constant 5 : index
    %c3_514 = arith.constant 3 : index
    %c0_515 = arith.constant 0 : index
    %c0_516 = arith.constant 0 : index
    %869 = vector.load %arg7[%c0_512, %c5_513, %c3_514, %c0_515, %c0_516] : memref<1x8x4x8x8xf32, #tpu.memory_space<vmem>>, vector<1x1x1x8x8xf32>
    %870 = vector.shape_cast %869 : vector<1x1x1x8x8xf32> to vector<8x8xf32>
    %871 = vector.shape_cast %868 : vector<8x8xf32> to vector<1x1x1x8x8xf32>
    tpu.vector_store %arg7[%c0_512, %c5_513, %c3_514, %c0_515, %c0_516], %871 {strides = array<i32>} : memref<1x8x4x8x8xf32, #tpu.memory_space<vmem>>, vector<1x1x1x8x8xf32>,
    %c6_517 = arith.constant 6 : index
    %c0_518 = arith.constant 0 : index
    %872 = memref.load %arg5[%c6_517, %c0_518] : memref<8x4xf32, #tpu.memory_space<smem>>
    %873 = vector.broadcast %872 : f32 to vector<8x8xf32>
    %874 = arith.mulf %703, %873 : vector<8x8xf32>
    %c6_519 = arith.constant 6 : index
    %c1_520 = arith.constant 1 : index
    %875 = memref.load %arg5[%c6_519, %c1_520] : memref<8x4xf32, #tpu.memory_space<smem>>
    %876 = vector.broadcast %875 : f32 to vector<8x8xf32>
    %877 = arith.mulf %713, %876 : vector<8x8xf32>
    %878 = arith.addf %874, %877 : vector<8x8xf32>
    %c6_521 = arith.constant 6 : index
    %c2_522 = arith.constant 2 : index
    %879 = memref.load %arg5[%c6_521, %c2_522] : memref<8x4xf32, #tpu.memory_space<smem>>
    %880 = vector.broadcast %879 : f32 to vector<8x8xf32>
    %881 = arith.mulf %723, %880 : vector<8x8xf32>
    %882 = arith.addf %878, %881 : vector<8x8xf32>
    %c6_523 = arith.constant 6 : index
    %c3_524 = arith.constant 3 : index
    %883 = memref.load %arg5[%c6_523, %c3_524] : memref<8x4xf32, #tpu.memory_space<smem>>
    %884 = vector.broadcast %883 : f32 to vector<8x8xf32>
    %885 = arith.mulf %733, %884 : vector<8x8xf32>
    %886 = arith.addf %882, %885 : vector<8x8xf32>
    %c6_525 = arith.constant 6 : index
    %887 = memref.load %arg6[%c6_525] : memref<8xf32, #tpu.memory_space<smem>>
    %888 = vector.broadcast %887 : f32 to vector<8x8xf32>
    %889 = arith.addf %886, %888 : vector<8x8xf32>
    %cst_526 = arith.constant 0.000000e+00 : f32
    %890 = vector.broadcast %cst_526 : f32 to vector<8x8xf32>
    %891 = arith.maximumf %889, %890 : vector<8x8xf32>
    %c0_527 = arith.constant 0 : index
    %c6_528 = arith.constant 6 : index
    %c3_529 = arith.constant 3 : index
    %c0_530 = arith.constant 0 : index
    %c0_531 = arith.constant 0 : index
    %892 = vector.load %arg7[%c0_527, %c6_528, %c3_529, %c0_530, %c0_531] : memref<1x8x4x8x8xf32, #tpu.memory_space<vmem>>, vector<1x1x1x8x8xf32>
    %893 = vector.shape_cast %892 : vector<1x1x1x8x8xf32> to vector<8x8xf32>
    %894 = vector.shape_cast %891 : vector<8x8xf32> to vector<1x1x1x8x8xf32>
    tpu.vector_store %arg7[%c0_527, %c6_528, %c3_529, %c0_530, %c0_531], %894 {strides = array<i32>} : memref<1x8x4x8x8xf32, #tpu.memory_space<vmem>>, vector<1x1x1x8x8xf32>,
    %c7_532 = arith.constant 7 : index
    %c0_533 = arith.constant 0 : index
    %895 = memref.load %arg5[%c7_532, %c0_533] : memref<8x4xf32, #tpu.memory_space<smem>>
    %896 = vector.broadcast %895 : f32 to vector<8x8xf32>
    %897 = arith.mulf %703, %896 : vector<8x8xf32>
    %c7_534 = arith.constant 7 : index
    %c1_535 = arith.constant 1 : index
    %898 = memref.load %arg5[%c7_534, %c1_535] : memref<8x4xf32, #tpu.memory_space<smem>>
    %899 = vector.broadcast %898 : f32 to vector<8x8xf32>
    %900 = arith.mulf %713, %899 : vector<8x8xf32>
    %901 = arith.addf %897, %900 : vector<8x8xf32>
    %c7_536 = arith.constant 7 : index
    %c2_537 = arith.constant 2 : index
    %902 = memref.load %arg5[%c7_536, %c2_537] : memref<8x4xf32, #tpu.memory_space<smem>>
    %903 = vector.broadcast %902 : f32 to vector<8x8xf32>
    %904 = arith.mulf %723, %903 : vector<8x8xf32>
    %905 = arith.addf %901, %904 : vector<8x8xf32>
    %c7_538 = arith.constant 7 : index
    %c3_539 = arith.constant 3 : index
    %906 = memref.load %arg5[%c7_538, %c3_539] : memref<8x4xf32, #tpu.memory_space<smem>>
    %907 = vector.broadcast %906 : f32 to vector<8x8xf32>
    %908 = arith.mulf %733, %907 : vector<8x8xf32>
    %909 = arith.addf %905, %908 : vector<8x8xf32>
    %c7_540 = arith.constant 7 : index
    %910 = memref.load %arg6[%c7_540] : memref<8xf32, #tpu.memory_space<smem>>
    %911 = vector.broadcast %910 : f32 to vector<8x8xf32>
    %912 = arith.addf %909, %911 : vector<8x8xf32>
    %cst_541 = arith.constant 0.000000e+00 : f32
    %913 = vector.broadcast %cst_541 : f32 to vector<8x8xf32>
    %914 = arith.maximumf %912, %913 : vector<8x8xf32>
    %c0_542 = arith.constant 0 : index
    %c7_543 = arith.constant 7 : index
    %c3_544 = arith.constant 3 : index
    %c0_545 = arith.constant 0 : index
    %c0_546 = arith.constant 0 : index
    %915 = vector.load %arg7[%c0_542, %c7_543, %c3_544, %c0_545, %c0_546] : memref<1x8x4x8x8xf32, #tpu.memory_space<vmem>>, vector<1x1x1x8x8xf32>
    %916 = vector.shape_cast %915 : vector<1x1x1x8x8xf32> to vector<8x8xf32>
    %917 = vector.shape_cast %914 : vector<8x8xf32> to vector<1x1x1x8x8xf32>
    tpu.vector_store %arg7[%c0_542, %c7_543, %c3_544, %c0_545, %c0_546], %917 {strides = array<i32>} : memref<1x8x4x8x8xf32, #tpu.memory_space<vmem>>, vector<1x1x1x8x8xf32>,
    return
  }
  func.func @transform_0(%arg0: i32, %arg1: i32) -> (i32, i32, i32, i32, i32) {
    %c0_i32 = arith.constant 0 : i32
    %c0_i32_0 = arith.constant 0 : i32
    %c0_i32_1 = arith.constant 0 : i32
    %c0_i32_2 = arith.constant 0 : i32
    return %arg0, %c0_i32, %arg1, %c0_i32_0, %c0_i32_1 : i32, i32, i32, i32, i32
  }
  func.func @transform_1(%arg0: i32, %arg1: i32) -> (i32, i32) {
    %c0_i32 = arith.constant 0 : i32
    %c0_i32_0 = arith.constant 0 : i32
    %c0_i32_1 = arith.constant 0 : i32
    return %c0_i32, %c0_i32_0 : i32, i32
  }
  func.func @transform_2(%arg0: i32, %arg1: i32) -> (i32, i32) {
    %c0_i32 = arith.constant 0 : i32
    %c0_i32_0 = arith.constant 0 : i32
    %c0_i32_1 = arith.constant 0 : i32
    return %c0_i32, %c0_i32_0 : i32, i32
  }
  func.func @transform_3(%arg0: i32, %arg1: i32) -> (i32, i32) {
    %c0_i32 = arith.constant 0 : i32
    %c0_i32_0 = arith.constant 0 : i32
    %c0_i32_1 = arith.constant 0 : i32
    return %c0_i32, %c0_i32_0 : i32, i32
  }
  func.func @transform_4(%arg0: i32, %arg1: i32) -> i32 {
    %c0_i32 = arith.constant 0 : i32
    %c0_i32_0 = arith.constant 0 : i32
    return %c0_i32 : i32
  }
  func.func @transform_5(%arg0: i32, %arg1: i32) -> (i32, i32, i32, i32, i32) {
    %c0_i32 = arith.constant 0 : i32
    %c0_i32_0 = arith.constant 0 : i32
    %c0_i32_1 = arith.constant 0 : i32
    %c0_i32_2 = arith.constant 0 : i32
    return %arg0, %c0_i32, %arg1, %c0_i32_0, %c0_i32_1 : i32, i32, i32, i32, i32
  }
}

</mosaic_0001>

<bundles_post_ra>
// kernel: tpu_custom_call.1
= control target key start
LH: loop header
LB: loop body
LE: loop exit
PB: predicated region body
PF: predicated region fallthrough
CT: control target
= control target key end

     0   :  { %s6261_s0 = inlined_call_operand.hbm [shape: f32[2,4,16,16,16], index: 0, kind: input, shape index: {}]   ;;  %s6262_s1 = inlined_call_operand.hbm [shape: f32[16,16], index: 1, kind: input, shape index: {}]   ;;  %s6263_s2 = inlined_call_operand.hbm [shape: f32[16,16], index: 2, kind: input, shape index: {}]   ;;  %s6264_s3 = inlined_call_operand.vmem [shape: f32[8,4], index: 3, kind: input, shape index: {}]   ;;  %s6265_s4 = inlined_call_operand.vmem [shape: f32[8], index: 4, kind: input, shape index: {}]   ;;  %s6266_s5 = inlined_call_operand.hbm [shape: f32[2,8,8,8,8], index: 5, kind: output, shape index: {}]  }
   0x1   :  { %6345 = sst [smem:[#allocation84_spill]] %s6261_s0 }
   0x2   :  { %6346 = sst [smem:[#allocation85_spill]] %s6262_s1 }
   0x3   :  { %6347 = sst [smem:[#allocation86_spill]] %s6263_s2 }
   0x4   :  { %6348 = sst [smem:[#allocation87_spill]] %s6264_s3 }
   0x5   :  { %6349 = sst [smem:[#allocation88_spill]] %s6265_s4 }
   0x6   :  { %6350 = sst [smem:[#allocation89_spill]] %s6266_s5 }
   0x7   :  { %10 = vsyncpa [#allocation3], 0 }
   0x8   :  { %12 = vsyncpa [#allocation3 + $0x1], 0 }
   0x9   :  { %13 = vsyncpa [#allocation7], 0 }
   0xa   :  { %14 = vsyncpa [#allocation5], 0 }
   0xb   :  { %15 = vsyncpa [#allocation11], 0 }
   0xc   :  { %16 = vsyncpa [#allocation4], 0 }
   0xd   :  { %18 = vsyncpa [#allocation4 + $0x1], 0  ;;  %s5016_s18 = smov 0   ;;  %s5018_s19 = smov 0  }
   0xe   :  { %s5020_s20 = smov 0   ;;  %s5022_s21 = smov 0  }
   0xf   :  { %s5024_s22 = smov 0   ;;  %s5026_s23 = smov 0  }
  0x10   :  { %s5028_s24 = smov 0   ;;  %s5030_s25 = smov 0  }
  0x11 LB: > { %6351 = sst [smem:[#allocation23_spill]] %s4936_s18  ;;  %s3973_s26 = sadd.s32 4294967295, %s4964_s25   ;;  %s4964_s25 = sphi %s5030_s25, %s24_s25   ;;  %s4960_s24 = sphi %s5028_s24, %s6556_s24   ;;  %s4956_s23 = sphi %s5026_s23, %s6555_s23   ;;  %s4952_s22 = sphi %s5024_s22, %s6554_s22   ;;  %s4948_s21 = sphi %s5022_s21, %s6553_s21   ;;  %s4944_s20 = sphi %s5020_s20, %s6552_s20   ;;  %s4940_s19 = sphi %s5018_s19, %s6551_s19   ;;  %s4936_s18 = sphi %s5016_s18, %s6550_s18  }
  0x12   : > { %6352 = sst [smem:[#allocation24_spill]] %s4940_s19  ;;  %s3974_s27 = sadd.s32 4294967294, %s4964_s25  }
  0x13   : > { %6353 = sst [smem:[#allocation25_spill]] %s4944_s20  ;;  %s33_s28 = sadd.s32 1, %s4956_s23 }
  0x14   : > { %6354 = sst [smem:[#allocation26_spill]] %s4948_s21  ;;  %s36_s29 = sadd.s32 1, %s4960_s24 }
  0x15   : > { %6355 = sst [smem:[#allocation27_spill]] %s4952_s22  ;;  %p34_p0 = scmp.ge.s32.totalorder %s33_s28, 2 }
  0x16   : > { %6356 = sst [smem:[#allocation28_spill]] %s4956_s23  ;;  %s45_s30 = sadd.s32 1, %s4944_s20 }
  0x17   : > { %6357 = sst [smem:[#allocation29_spill]] %s4960_s24  ;;  %p52_p1 = scmp.ne.s32.totalorder %s4944_s20, %s4940_s19 }
  0x18   : > { %6358 = sst [smem:[#allocation30_spill]] %s4964_s25  ;;  %p53_p2 = scmp.eq.s32.totalorder %s4964_s25, 0 }
  0x19   : > { %s6558_s28 = smov (%p34_p0, %s33_s28), 0  ;;  %s6560_s29 = smov (!%p34_p0, %s36_s29), %s4960_s24 }
  0x1a   : > { %6359 = sst [smem:[#allocation31_spill]] %s6558_s28  ;;  %s41_s6 = ssub.s32 %s4956_s23, %s6558_s28 }
  0x1b   : > { %p5069_p3 = por %p53_p2, %p52_p1  ;;  %p38_p4 = scmp.ge.s32.totalorder %s6560_s29, 2 }
  0x1c   : > { %p58_p5 = scmp.ne.s32.totalorder %s4940_s19, %s4936_s18  ;;  %p5075_p6 = scmp.eq.s32.totalorder %s3973_s26, 0 }
  0x1d   : > { %s6360_s7 = scalar_select %p5069_p3, 1, 0 }
  0x1e   : > { %s6361_s8 = scalar_select %p5075_p6, 1, 0 }
  0x1f   : > { %p168_p7 = scmp.eq.s32.totalorder %s3973_s26, 3  ;;  %s6562_s29 = smov (%p38_p4, %s6560_s29), 0 }
  0x20   : > { %6362 = sst [smem:[#allocation32_spill]] %s6562_s29  ;;  %p5083_p8 = por %p5075_p6, %p58_p5 }
  0x21   : > { %p5087_p9 = por %p168_p7, %p52_p1  ;;  %s40_s11 = ssub.s32 %s4960_s24, %s6562_s29 }
  0x22   : > { %s6363_s9 = scalar_select %p5083_p8, 1, 0 }
  0x23   : > { %s6364_s10 = scalar_select %p5087_p9, 1, 0 }
  0x24   : > { %p174_p10 = scmp.eq.s32.totalorder %s3974_s27, 3  ;;  %s42_s12 = sor.u32 %s41_s6, %s40_s11 }
  0x25   : > { %6365 = sst [smem:[#allocation33_spill]] %s6364_s10  ;;  %p3975_p11 = scmp.ge.s32.totalorder %s4964_s25, 1 }
  0x26   : > { %p43_p12 = scmp.eq.s32.totalorder %s42_s12, 0  ;;  %p5094_p13 = por %p174_p10, %p58_p5 }
  0x27   : > { %p181_p0 = scmp.lt.s32.totalorder %s4964_s25, 5  ;;  %s4966_s16 = smov [#allocation6]  }
  0x28   : > { %s6366_s13 = scalar_select %p5094_p13, 1, 0 }
  0x29   : > { %s5100_s14 = scalar_select %p43_p12, %s4944_s20, %s45_s30  }
  0x2a   : > { %6367 = sst [smem:[#allocation34_spill]] %s6366_s13  ;;  %p5102_p2 = pnand %p3975_p11, %p181_p0 }
  0x2b   : > { %6368 = sst [smem:[#allocation35_spill]] %s5100_s14  ;;  %s193_s17 = sshll.u32 %s4966_s16, 4  ;;  %s194_s17 = int_to_ptr.vmem [resolvable:$true] %s193_s17 }
  0x2c   : > { %s6369_s15 = scalar_select %p5102_p2, 1, 0 }
  0x2d   : > { %p4690_p1 = pneg %p5102_p2  ;;  %s4967_s27 = smov [#allocation8]  }
  0x2e   : > { %s206_s30 = sshll.u32 %s4967_s27, 4  ;;  %s6371_s3 = sld [smem:[#allocation87_spill]]  ;;  %s207_s30 = int_to_ptr.vmem [resolvable:$true] %s206_s30 }
  0x2f   : > { %p5110_p4 = pnand %p4690_p1, %p5075_p6  ;;  %s4811_s16 = scalar_lea.vmem %s194_s17, 256 }
  0x30   : > { %p4812_p7 = scmp.ne.s32.totalorder %s194_s17, %s4811_s16  ;;  %p4819_p12 = scmp.lt.s32.totalorder %s194_s17, %s194_s17 }
  0x31   : > { %p4802_p5 = pneg %p5110_p4  ;;  %p4820_p0 = scmp.lt.s32.totalorder %s4811_s16, %s4811_s16 }
  0x33   : > { %p4814_p10 = pnand %p4812_p7, %p4802_p5  ;;  %p4821_p1 = por %p4820_p0, %p4819_p12 }
  0x34   : > { %s220_s12 = sshll.u32 %s6371_s3, 4  ;;  %s5117_s12 = int_to_ptr.vmem [resolvable:$true] %s220_s12 }
  0x35   : > { %p4815_p11 = pneg %p4814_p10 }
  0x37   : > { %p4822_p13 = pnand %p4821_p1, %p4815_p11 }
  0x39   : > { %4825 = shalt.err (!%p4822_p13)
}
  0x3a   : > { %s4968_s27 = smov 128   ;;  %s4969_s6 = smov 8  }
  0x3b   : > { %s6372_s1 = sld [smem:[#allocation85_spill]]  ;;  %s4837_s29 = scalar_lea.vmem %s207_s30, 256 }
  0x3c   : > { %p4838_p9 = scmp.ne.s32.totalorder %s207_s30, %s4837_s29  ;;  %p4845_p6 = scmp.lt.s32.totalorder %s207_s30, %s207_s30 }
  0x3d   : > { %p4846_p8 = scmp.lt.s32.totalorder %s4837_s29, %s4837_s29 }
  0x3e   : > { %p4840_p7 = pnand %p4838_p9, %p4802_p5 }
  0x3f   : > { %p4847_p12 = por %p4846_p8, %p4845_p6 }
  0x40   : > { %p4841_p10 = pneg %p4840_p7 }
  0x41   : > { %4693 = dma.hbm_to_vmem [thread:$0]  (!%p5110_p4), %s6372_s1, 256, %s194_s17, [#allocation7], %s4968_s27, %s4968_s27, %s4969_s6  }
  0x42   : > { %p4848_p11 = pnand %p4847_p12, %p4841_p10 }
  0x44   : > { %4851 = shalt.err (!%p4848_p11)
}
  0x45   : > { %s6373_s2 = sld [smem:[#allocation86_spill]]  ;;  %s4852_s1 = scalar_lea.vmem %s5117_s12, 128 }
  0x46   : > { %s6374_s4 = sld [smem:[#allocation88_spill]]  ;;  %p4853_p9 = scmp.ne.s32.totalorder %s5117_s12, %s4852_s1 }
  0x47   : > { %p4860_p13 = scmp.lt.s32.totalorder %s5117_s12, %s5117_s12  ;;  %p4861_p0 = scmp.lt.s32.totalorder %s4852_s1, %s4852_s1 }
  0x48   : > { %p4855_p6 = pnand %p4853_p9, %p4802_p5 }
  0x49   : > { %p4862_p1 = por %p4861_p0, %p4860_p13 }
  0x4a   : > { %p4856_p8 = pneg %p4855_p6 }
  0x4b   : > { %4696 = dma.hbm_to_vmem [thread:$0]  (!%p5110_p4), %s6373_s2, 256, %s207_s30, [#allocation7], %s4968_s27, %s4968_s27, %s4969_s6  }
  0x4c   : > { %s231_s11 = sshll.u32 %s6374_s4, 4  ;;  %p4863_p7 = pnand %p4862_p1, %p4856_p8  ;;  %s232_s11 = int_to_ptr.vmem [resolvable:$true] %s231_s11 }
  0x4e   : > { %4866 = shalt.err (!%p4863_p7)
}
  0x4f   : > { %s4970_s28 = smov [#allocation9]   ;;  %s4867_s29 = scalar_lea.vmem %s232_s11, 16 }
  0x50   : > { %4699 = dma.vmem_to_smem (!%p5110_p4), %s5117_s12, 128, %s4970_s28, [#allocation5]  }
  0x51   : > { %p4868_p10 = scmp.ne.s32.totalorder %s232_s11, %s4867_s29  ;;  %p4875_p9 = scmp.lt.s32.totalorder %s232_s11, %s232_s11 }
  0x52   : > { %p4876_p6 = scmp.lt.s32.totalorder %s4867_s29, %s4867_s29 }
  0x53   : > { %p4870_p12 = pnand %p4868_p10, %p4802_p5 }
  0x54   : > { %p4877_p2 = por %p4876_p6, %p4875_p9 }
  0x55   : > { %p4871_p11 = pneg %p4870_p12 }
  0x57   : > { %p4878_p3 = pnand %p4877_p2, %p4871_p11 }
  0x59   : > { %4881 = shalt.err (!%p4878_p3)
}
  0x5a   : > { %s4971_s1 = smov [#allocation10]   ;;  %p3980_p8 = scmp.ge.s32.totalorder %s4964_s25, 4 }
  0x5b   : > { %4702 = dma.vmem_to_smem (!%p5110_p4), %s232_s11, 16, %s4971_s1, [#allocation11]  }
  0x5c   : > { %238 = sbr.rel (%p3980_p8) target bundleno = 117 (0x75), region = 32 }
  0x61   : > { %s242_s30 = sand.u32 1, %s4944_s20   ;;  %s4304_s12 = sshll.u32 %s4956_s23, 4 }
  0x62   : > { %s3981_s27 = sshll.u32 %s242_s30, 9  ;;  %s3984_s6 = sshll.u32 %s4960_s24, 7 }
  0x63   : > { %s253_s16 = sadd.s32 %s4304_s12, %s3984_s6  ;;  %s246_s3 = scalar_lea.vmem [#allocation2], %s3981_s27 }
  0x64   : > { %s268_s26 = sshll.u32 %s246_s3, 4  ;;  %s3985_s17 = sshll.u32 %s253_s16, 7  ;;  %s269_s26 = int_to_ptr.vmem [resolvable:$true] %s268_s26 }
  0x65   : > { %p6375_p3 = scmp.ne.s32.totalorder %s6360_s7, 0  ;;  %s4972_s28 = smov 4096  }
  0x66   : > { %s4973_s1 = smov 2048   ;;  %s4974_s2 = smov 16  }
  0x67   : > { %s4665_s11 = scalar_select %p6375_p3, [#allocation0], [#allocation17] }
  0x68   : > { %4666 = sst [smem:[#allocation14]] (%p6375_p3), %s4972_s28  ;;  %s4975_s12 = smov 128  }
  0x69   : > { %s260_s29 = sld [smem:[%s4665_s11]]   ;;  %s4976_s3 = smov 8  }
  0x6a   : > { %4667 = sst [smem:[#allocation14 + $0x1]] (%p6375_p3), %s4973_s1  ;;  %s243_s4 = scalar_lea.sflag [#allocation3], %s242_s30 }
  0x6b   : > { %4668 = sst [smem:[#allocation14 + $0x2]] (%p6375_p3), %s4974_s2  ;;  %s4977_s1 = smov 131072  }
  0x6c   : > { %4669 = sst [smem:[#allocation14 + $0x3]] (%p6375_p3), %s4975_s12 }
  0x6d   : > { %s6376_s0 = sld [smem:[#allocation84_spill]] }
  0x6e   : > { %4670 = sst [smem:[#allocation14 + $0x4]] (%p6375_p3), %s4975_s12 }
  0x6f   : > { %4671 = sst [smem:[#allocation14 + $0x5]] (%p6375_p3), %s4976_s3  ;;  %s3986_s11 = sshll.u32 %s260_s29, 26 }
  0x70   : > { %s3987_s28 = sadd.s32 134217728, %s3986_s11 }
  0x73   : > { %s255_s16 = scalar_lea.hbm %s6376_s0, %s3985_s17 }
  0x74   : > { %4672 = dma.general (%p6375_p3), %s255_s16, 8192, %s269_s26, %s243_s4, %s4977_s1, [#allocation14], %s3987_s28, 0  }
  0x75 PF: > { %p6377_p2 = scmp.ne.s32.totalorder %s6369_s15, 0 }
  0x77   : > { %293 = sbr.rel (%p6377_p2) target bundleno = 766 (0x2fe), region = 40 }
  0x7c   : > { %s5181_s2 = sand.u32 1, %s4940_s19   ;;  %p6379_p4 = scmp.ne.s32.totalorder %s6363_s9, 0 }
  0x7d   : > { %6378 = sst [smem:[#allocation36_spill]] %s5181_s2  ;;  %s3989_s17 = sshll.u32 %s5181_s2, 9 }
  0x7e   : > { %s296_s12 = scalar_lea.sflag [#allocation3], %s5181_s2  ;;  %s5185_s27 = scalar_lea.vmem [#allocation2], %s3989_s17 }
  0x7f   : > { %4915 = dma.done.wait (%p6379_p4), %s296_s12, 8192  }
  0x80   : > { %4917 = vsyncadd (%p6379_p4), %s296_s12, 4294959104  ;;  %p6380_p5 = scmp.ne.s32.totalorder %s6361_s8, 0 }
  0x82   : > { %4919 = dma.done.wait (%p6380_p5), [#allocation7], 512  }
  0x83   : > { %4921 = vsyncadd (%p6380_p5), [#allocation7], 4294966784 }
  0x84   : > { %4923 = dma.done.wait (%p6380_p5), [#allocation5], 128  }
  0x85   : > { %4925 = vsyncadd (%p6380_p5), [#allocation5], 4294967168 }
  0x86   : > { %4927 = dma.done.wait (%p6380_p5), [#allocation11], 16  }
  0x87   : > { %4929 = vsyncadd (%p6380_p5), [#allocation11], 4294967280 }
  0x88   : > { %320 = sfence }
  0x89   : > { %v5203_v0 = vld [vmem:[#allocation6 + $0x8] sm:$0xff]  ;;  %v5205_v1 = vld [vmem:[#allocation6] sm:$0xff]  ;;  %v3995_v3 = vld [vmem:[%s5185_s27 + $0x10] sm:$0xff]  ;;  %vm374_vm0 = vcmask 130048   ;;  %s4978_s4 = smov 120   ;;  %s5595_s7 = sld [smem:[#allocation9]] }
  0x8a   : > { %v349_v2 = vld [vmem:[%s5185_s27] sm:$0xff]  ;;  %4433 = vmatprep.subr.mxu0 %v5203_v0  ;;  %v350_v4 = vld [vmem:[%s5185_s27 + $0x8] sm:$0xff]  ;;  %v3996_v5 = vld [vmem:[%s5185_s27 + $0x18] sm:$0xff]  ;;  %s5597_s8 = sld [smem:[#allocation9 + $0x80]]  ;;  %vm1068_vm1 = vcmask 64512  }
  0x8b   : > { %4434 = vmatpush3.msra.mxu0 %v5203_v0  ;;  %v366_v6 = vmax.f32 %v349_v2, %v3995_v3  ;;  %v367_v7 = vmax.f32 %v350_v4, %v3996_v5  ;;  %v351_v8 = vld [vmem:[%s5185_s27 + $0x80] sm:$0xff]  ;;  %v3997_v9 = vld [vmem:[%s5185_s27 + $0x90] sm:$0xff]  ;;  %v352_v10 = vld [vmem:[%s5185_s27 + $0x88] sm:$0xff]  ;;  %s5599_s9 = sld [smem:[#allocation9 + $0x100]] }
  0x8c   : > { %4435 = vmatprep.subr.mxu0 %v5205_v1  ;;  %v368_v11 = vmax.f32 %v351_v8, %v3997_v9  ;;  %v3998_v12 = vld [vmem:[%s5185_s27 + $0x98] sm:$0xff]  ;;  %v353_v13 = vld [vmem:[%s5185_s27 + $0x100] sm:$0xff]  ;;  %v3999_v14 = vld [vmem:[%s5185_s27 + $0x110] sm:$0xff]  ;;  %s5601_s15 = sld [smem:[#allocation9 + $0x180]] }
  0x8d   : > { %4436 = vmatpush3.msra.mxu0 %v5205_v1  ;;  %4437 = vmatprep.mubr.msk.f32.mxu0 %vm374_vm0, %v366_v6  ;;  %v369_v15 = vmax.f32 %v352_v10, %v3998_v12  ;;  %v370_v16 = vmax.f32 %v353_v13, %v3999_v14  ;;  %v354_v17 = vld [vmem:[%s5185_s27 + $0x108] sm:$0xff]  ;;  %v4000_v18 = vld [vmem:[%s5185_s27 + $0x118] sm:$0xff]  ;;  %v355_v19 = vld [vmem:[%s5185_s27 + $0x180] sm:$0xff]  ;;  %s5603_s30 = sld [smem:[#allocation9 + $0x200]] }
  0x8e   : > { %4438 = vmatmul.mubr.msk.f32.vlgmr.msra.gmra.mxu0 %vm374_vm0, %v367_v7  ;;  %4447 = vmatprep.subr.mxu0 %v5203_v0  ;;  %v4001_v20 = vld [vmem:[%s5185_s27 + $0x190] sm:$0xff]  ;;  %v371_v21 = vmax.f32 %v354_v17, %v4000_v18  ;;  %v356_v23 = vld [vmem:[%s5185_s27 + $0x188] sm:$0xff]  ;;  %v4002_v24 = vld [vmem:[%s5185_s27 + $0x198] sm:$0xff]  ;;  %s5605_s26 = sld [smem:[#allocation9 + $0x280]] }
  0x8f   : > { %4448 = vmatpush3.msra.mxu0 %v5203_v0  ;;  %4451 = vmatprep.mubr.msk.f32.mxu0 %vm374_vm0, %v368_v11  ;;  %v372_v22 = vmax.f32 %v355_v19, %v4001_v20  ;;  %v4064_v25 = vld [vmem:[%s5185_s27 + $0x20] sm:$0xff]  ;;  %v4072_v26 = vld [vmem:[%s5185_s27 + $0x30] sm:$0xff]  ;;  %v373_v27 = vmax.f32 %v356_v23, %v4002_v24  ;;  %v4065_v29 = vld [vmem:[%s5185_s27 + $0x28] sm:$0xff]  ;;  %s5607_s29 = sld [smem:[#allocation9 + $0x300]] }
  0x90   : > { %4449 = vmatprep.subr.mxu0 %v5205_v1  ;;  %v1235_v28 = vmax.f32 %v4064_v25, %v4072_v26  ;;  %v4073_v30 = vld [vmem:[%s5185_s27 + $0x38] sm:$0xff]  ;;  %v4066_v31 = vld [vmem:[%s5185_s27 + $0xa0] sm:$0xff]  ;;  %v4074_v32 = vld [vmem:[%s5185_s27 + $0xb0] sm:$0xff]  ;;  %s5609_s6 = sld [smem:[#allocation9 + $0x380]] }
  0x91   : > { %4450 = vmatpush3.msra.mxu0 %v5205_v1  ;;  %v1236_v33 = vmax.f32 %v4065_v29, %v4073_v30  ;;  %v1237_v34 = vmax.f32 %v4066_v31, %v4074_v32  ;;  %v4067_v35 = vld [vmem:[%s5185_s27 + $0xa8] sm:$0xff]  ;;  %v4075_v36 = vld [vmem:[%s5185_s27 + $0xb8] sm:$0xff]  ;;  %v4068_v37 = vld [vmem:[%s5185_s27 + $0x120] sm:$0xff]  ;;  %s5611_s16 = sld [smem:[#allocation9 + $0x1]] }
  0x92   : > { %4452 = vmatmul.mubr.msk.f32.vlgmr.msra.gmra.mxu0 %vm374_vm0, %v369_v15  ;;  %4461 = vmatprep.subr.mxu0 %v5203_v0  ;;  %v4076_v38 = vld [vmem:[%s5185_s27 + $0x130] sm:$0xff]  ;;  %v1238_v39 = vmax.f32 %v4067_v35, %v4075_v36  ;;  %v4069_v41 = vld [vmem:[%s5185_s27 + $0x128] sm:$0xff]  ;;  %v4077_v42 = vld [vmem:[%s5185_s27 + $0x138] sm:$0xff]  ;;  %s5613_s3 = sld [smem:[#allocation9 + $0x81]] }
  0x93   : > { %4462 = vmatpush3.msra.mxu0 %v5203_v0  ;;  %4465 = vmatprep.mubr.msk.f32.mxu0 %vm374_vm0, %v370_v16  ;;  %v1239_v40 = vmax.f32 %v4068_v37, %v4076_v38  ;;  %v4070_v43 = vld [vmem:[%s5185_s27 + $0x1a0] sm:$0xff]  ;;  %v4078_v44 = vld [vmem:[%s5185_s27 + $0x1b0] sm:$0xff]  ;;  %v1240_v45 = vmax.f32 %v4069_v41, %v4077_v42  ;;  %v4071_v47 = vld [vmem:[%s5185_s27 + $0x1a8] sm:$0xff]  ;;  %s5615_s11 = sld [smem:[#allocation9 + $0x101]] }
  0x94   : > { %4463 = vmatprep.subr.mxu0 %v5205_v1  ;;  %v1241_v46 = vmax.f32 %v4070_v43, %v4078_v44  ;;  %v4079_v48 = vld [vmem:[%s5185_s27 + $0x1b8] sm:$0xff]  ;;  %v4142_v49 = vld [vmem:[%s5185_s27 + $0x40] sm:$0xff]  ;;  %v4150_v50 = vld [vmem:[%s5185_s27 + $0x50] sm:$0xff]  ;;  %s5617_s28 = sld [smem:[#allocation9 + $0x181]] }
  0x95   : > { %4464 = vmatpush3.msra.mxu0 %v5205_v1  ;;  %v1242_v51 = vmax.f32 %v4071_v47, %v4079_v48  ;;  %v2097_v52 = vmax.f32 %v4142_v49, %v4150_v50  ;;  %v4143_v53 = vld [vmem:[%s5185_s27 + $0x48] sm:$0xff]  ;;  %v4151_v54 = vld [vmem:[%s5185_s27 + $0x58] sm:$0xff]  ;;  %v4144_v55 = vld [vmem:[%s5185_s27 + $0xc0] sm:$0xff]  ;;  %s5619_s1 = sld [smem:[#allocation9 + $0x201]] }
  0x96   : > { %4466 = vmatmul.mubr.msk.f32.vlgmr.msra.gmra.mxu0 %vm374_vm0, %v371_v21  ;;  %4475 = vmatprep.subr.mxu0 %v5203_v0  ;;  %v4152_v56 = vld [vmem:[%s5185_s27 + $0xd0] sm:$0xff]  ;;  %v2098_v57 = vmax.f32 %v4143_v53, %v4151_v54  ;;  %v4145_v59 = vld [vmem:[%s5185_s27 + $0xc8] sm:$0xff]  ;;  %v4153_v60 = vld [vmem:[%s5185_s27 + $0xd8] sm:$0xff]  ;;  %s5621_s17 = sld [smem:[#allocation9 + $0x281]] }
  0x97   : > { %4476 = vmatpush3.msra.mxu0 %v5203_v0  ;;  %4479 = vmatprep.mubr.msk.f32.mxu0 %vm374_vm0, %v372_v22  ;;  %v2099_v58 = vmax.f32 %v4144_v55, %v4152_v56  ;;  %v4146_v61 = vld [vmem:[%s5185_s27 + $0x140] sm:$0xff]  ;;  %v4154_v62 = vld [vmem:[%s5185_s27 + $0x150] sm:$0xff]  ;;  %v2100_v63 = vmax.f32 %v4145_v59, %v4153_v60  ;;  %v4147_v3 = vld [vmem:[%s5185_s27 + $0x148] sm:$0xff]  ;;  %s5623_s12 = sld [smem:[#allocation9 + $0x301]] }
  0x98   : > { %4477 = vmatprep.subr.mxu0 %v5205_v1  ;;  %v2101_v2 = vmax.f32 %v4146_v61, %v4154_v62  ;;  %v4155_v4 = vld [vmem:[%s5185_s27 + $0x158] sm:$0xff]  ;;  %v4148_v5 = vld [vmem:[%s5185_s27 + $0x1c0] sm:$0xff]  ;;  %v4156_v6 = vld [vmem:[%s5185_s27 + $0x1d0] sm:$0xff]  ;;  %s5629_s0 = sld [smem:[#allocation9 + $0x82]] }
  0x99   : > { %4478 = vmatpush3.msra.mxu0 %v5205_v1  ;;  %v2102_v7 = vmax.f32 %v4147_v3, %v4155_v4  ;;  %v2103_v8 = vmax.f32 %v4148_v5, %v4156_v6  ;;  %v4149_v9 = vld [vmem:[%s5185_s27 + $0x1c8] sm:$0xff]  ;;  %v4157_v10 = vld [vmem:[%s5185_s27 + $0x1d8] sm:$0xff]  ;;  %v4220_v11 = vld [vmem:[%s5185_s27 + $0x60] sm:$0xff]  ;;  %s5631_s24 = sld [smem:[#allocation9 + $0x102]] }
  0x9a   : > { %4480 = vmatmul.mubr.msk.f32.vlgmr.msra.gmra.mxu0 %vm374_vm0, %v373_v27  ;;  %4489 = vmatprep.subr.mxu0 %v5203_v0  ;;  %v4228_v12 = vld [vmem:[%s5185_s27 + $0x70] sm:$0xff]  ;;  %v2104_v13 = vmax.f32 %v4149_v9, %v4157_v10  ;;  %v4221_v15 = vld [vmem:[%s5185_s27 + $0x68] sm:$0xff]  ;;  %v4229_v16 = vld [vmem:[%s5185_s27 + $0x78] sm:$0xff]  ;;  %s5633_s23 = sld [smem:[#allocation9 + $0x182]] }
  0x9b   : > { %4490 = vmatpush3.msra.mxu0 %v5203_v0  ;;  %4493 = vmatprep.mubr.msk.f32.mxu0 %vm374_vm0, %v1235_v28  ;;  %v2959_v14 = vmax.f32 %v4220_v11, %v4228_v12  ;;  %v4222_v17 = vld [vmem:[%s5185_s27 + $0xe0] sm:$0xff]  ;;  %v4230_v18 = vld [vmem:[%s5185_s27 + $0xf0] sm:$0xff]  ;;  %v2960_v19 = vmax.f32 %v4221_v15, %v4229_v16  ;;  %v4223_v21 = vld [vmem:[%s5185_s27 + $0xe8] sm:$0xff]  ;;  %s5635_s14 = sld [smem:[#allocation9 + $0x202]] }
  0x9c   : > { %4491 = vmatprep.subr.mxu0 %v5205_v1  ;;  %v2961_v20 = vmax.f32 %v4222_v17, %v4230_v18  ;;  %v4231_v22 = vld [vmem:[%s5185_s27 + $0xf8] sm:$0xff]  ;;  %v4224_v23 = vld [vmem:[%s5185_s27 + $0x160] sm:$0xff]  ;;  %v4232_v24 = vld [vmem:[%s5185_s27 + $0x170] sm:$0xff]  ;;  %s5637_s20 = sld [smem:[#allocation9 + $0x282]] }
  0x9d   : > { %4492 = vmatpush3.msra.mxu0 %v5205_v1  ;;  %v2962_v25 = vmax.f32 %v4223_v21, %v4231_v22  ;;  %v2963_v26 = vmax.f32 %v4224_v23, %v4232_v24  ;;  %v4225_v27 = vld [vmem:[%s5185_s27 + $0x168] sm:$0xff]  ;;  %v4233_v28 = vld [vmem:[%s5185_s27 + $0x178] sm:$0xff]  ;;  %v4226_v29 = vld [vmem:[%s5185_s27 + $0x1e0] sm:$0xff]  ;;  %s5639_s19 = sld [smem:[#allocation9 + $0x302]] }
  0x9e   : > { %4494 = vmatmul.mubr.msk.f32.vlgmr.msra.gmra.mxu0 %vm374_vm0, %v1236_v33  ;;  %4503 = vmatprep.subr.mxu0 %v5203_v0  ;;  %v4234_v30 = vld [vmem:[%s5185_s27 + $0x1f0] sm:$0xff]  ;;  %v2964_v31 = vmax.f32 %v4225_v27, %v4233_v28  ;;  %v4227_v33 = vld [vmem:[%s5185_s27 + $0x1e8] sm:$0xff]  ;;  %v5501_v10 = vld [vmem:[#allocation8 + $0x8] sm:$0xff]  ;;  %s5641_s13 = sld [smem:[#allocation9 + $0x382]] }
  0x9f   : > { %4504 = vmatpush3.msra.mxu0 %v5203_v0  ;;  %4507 = vmatprep.mubr.msk.f32.mxu0 %vm374_vm0, %v1237_v34  ;;  %v2965_v32 = vmax.f32 %v4226_v29, %v4234_v30  ;;  %v4235_v34 = vld [vmem:[%s5185_s27 + $0x1f8] sm:$0xff]  ;;  %v5367_v36 = vld [vmem:[#allocation8] sm:$0xff]  ;;  %s5625_s27 = sld [smem:[#allocation9 + $0x381]] }
  0xa0   : > { %4505 = vmatprep.subr.mxu0 %v5205_v1  ;;  %v2966_v35 = vmax.f32 %v4227_v33, %v4235_v34  ;;  %4444 = vmatprep.mubr.msk.f32.mxu1 %vm374_vm0, %v5367_v36  ;;  %s5643_s18 = sld [smem:[#allocation9 + $0x3]] }
  0xa1   : > { %4506 = vmatpush3.msra.mxu0 %v5205_v1  ;;  %6381 = sst [smem:[#allocation37_spill]] %s5635_s14 }
  0xa2   : > { %4508 = vmatmul.mubr.msk.f32.vlgmr.msra.gmra.mxu0 %vm374_vm0, %v1238_v39  ;;  %4517 = vmatprep.subr.mxu0 %v5203_v0  ;;  %6382 = sst [smem:[#allocation38_spill]] %s5637_s20 }
  0xa3   : > { %4518 = vmatpush3.msra.mxu0 %v5203_v0  ;;  %4521 = vmatprep.mubr.msk.f32.mxu0 %vm374_vm0, %v1239_v40  ;;  %6383 = sst [smem:[#allocation39_spill]] %s5639_s19 }
  0xa4   : > { %4519 = vmatprep.subr.mxu0 %v5205_v1  ;;  %6384 = sst [smem:[#allocation40_spill]] %s5641_s13 }
  0xa5   : > { %4520 = vmatpush3.msra.mxu0 %v5205_v1  ;;  %s5645_s25 = sld [smem:[#allocation10]] }
  0xa6   : > { %4522 = vmatmul.mubr.msk.f32.vlgmr.msra.gmra.mxu0 %vm374_vm0, %v1240_v45  ;;  %4531 = vmatprep.subr.mxu0 %v5203_v0  ;;  %6385 = sst [smem:[#allocation41_spill]] %s5643_s18 }
  0xa7   : > { %4532 = vmatpush3.msra.mxu0 %v5203_v0  ;;  %4535 = vmatprep.mubr.msk.f32.mxu0 %vm374_vm0, %v1241_v46  ;;  %s5647_s5 = sld [smem:[#allocation9 + $0x83]] }
  0xa8   : > { %4533 = vmatprep.subr.mxu0 %v5205_v1  ;;  %s5649_s10 = sld [smem:[#allocation10 + $0x1]] }
  0xa9   : > { %4534 = vmatpush3.msra.mxu0 %v5205_v1  ;;  %s5651_s22 = sld [smem:[#allocation9 + $0x103]] }
  0xaa   : > { %4536 = vmatmul.mubr.msk.f32.vlgmr.msra.gmra.mxu0 %vm374_vm0, %v1242_v51  ;;  %4545 = vmatprep.subr.mxu0 %v5203_v0  ;;  %s5653_s21 = sld [smem:[#allocation10 + $0x2]] }
  0xab   : > { %4546 = vmatpush3.msra.mxu0 %v5203_v0  ;;  %4549 = vmatprep.mubr.msk.f32.mxu0 %vm374_vm0, %v2097_v52  ;;  %6386 = sst [smem:[#allocation42_spill]] %s5645_s25 }
  0xac   : > { %4547 = vmatprep.subr.mxu0 %v5205_v1  ;;  %s5655_s2 = sld [smem:[#allocation9 + $0x183]] }
  0xad   : > { %4548 = vmatpush3.msra.mxu0 %v5205_v1  ;;  %6387 = sst [smem:[#allocation43_spill]] %s5647_s5 }
  0xae   : > { %4550 = vmatmul.mubr.msk.f32.vlgmr.msra.gmra.mxu0 %vm374_vm0, %v2098_v57  ;;  %4559 = vmatprep.subr.mxu0 %v5203_v0  ;;  %6388 = sst [smem:[#allocation44_spill]] %s5649_s10 }
  0xaf   : > { %4560 = vmatpush3.msra.mxu0 %v5203_v0  ;;  %4563 = vmatprep.mubr.msk.f32.mxu0 %vm374_vm0, %v2099_v58  ;;  %6389 = sst [smem:[#allocation45_spill]] %s5651_s22 }
  0xb0   : > { %4561 = vmatprep.subr.mxu0 %v5205_v1  ;;  %6390 = sst [smem:[#allocation46_spill]] %s5653_s21 }
  0xb1   : > { %4562 = vmatpush3.msra.mxu0 %v5205_v1  ;;  %s5657_s14 = sld [smem:[#allocation10 + $0x3]] }
  0xb2   : > { %4564 = vmatmul.mubr.msk.f32.vlgmr.msra.gmra.mxu0 %vm374_vm0, %v2100_v63  ;;  %4573 = vmatprep.subr.mxu0 %v5203_v0  ;;  %6391 = sst [smem:[#allocation47_spill]] %s5655_s2 }
  0xb3   : > { %4574 = vmatpush3.msra.mxu0 %v5203_v0  ;;  %4577 = vmatprep.mubr.msk.f32.mxu0 %vm374_vm0, %v2101_v2  ;;  %s5659_s20 = sld [smem:[#allocation9 + $0x203]] }
  0xb4   : > { %4575 = vmatprep.subr.mxu0 %v5205_v1  ;;  %s5661_s19 = sld [smem:[#allocation10 + $0x4]] }
  0xb5   : > { %4576 = vmatpush3.msra.mxu0 %v5205_v1  ;;  %s5663_s13 = sld [smem:[#allocation9 + $0x283]] }
  0xb6   : > { %4578 = vmatmul.mubr.msk.f32.vlgmr.msra.gmra.mxu0 %vm374_vm0, %v2102_v7  ;;  %4587 = vmatprep.subr.mxu0 %v5203_v0  ;;  %s5665_s18 = sld [smem:[#allocation10 + $0x5]] }
  0xb7   : > { %4588 = vmatpush3.msra.mxu0 %v5203_v0  ;;  %4591 = vmatprep.mubr.msk.f32.mxu0 %vm374_vm0, %v2103_v8  ;;  %s5667_s25 = sld [smem:[#allocation9 + $0x303]] }
  0xb8   : > { %4589 = vmatprep.subr.mxu0 %v5205_v1  ;;  %s5669_s5 = sld [smem:[#allocation10 + $0x6]] }
  0xb9   : > { %4590 = vmatpush3.msra.mxu0 %v5205_v1  ;;  %6392 = sst [smem:[#allocation48_spill]] %s5659_s20 }
  0xba   : > { %4592 = vmatmul.mubr.msk.f32.vlgmr.msra.gmra.mxu0 %vm374_vm0, %v2104_v13  ;;  %4601 = vmatprep.subr.mxu0 %v5203_v0  ;;  %6393 = sst [smem:[#allocation49_spill]] %s5661_s19 }
  0xbb   : > { %4602 = vmatpush3.msra.mxu0 %v5203_v0  ;;  %4605 = vmatprep.mubr.msk.f32.mxu0 %vm374_vm0, %v2959_v14  ;;  %s5671_s10 = sld [smem:[#allocation9 + $0x383]] }
  0xbc   : > { %4603 = vmatprep.subr.mxu0 %v5205_v1  ;;  %6394 = sst [smem:[#allocation50_spill]] %s5665_s18 }
  0xbd   : > { %4604 = vmatpush3.msra.mxu0 %v5205_v1  ;;  %6395 = sst [smem:[#allocation51_spill]] %s5667_s25 }
  0xbe   : > { %4606 = vmatmul.mubr.msk.f32.vlgmr.msra.gmra.mxu0 %vm374_vm0, %v2960_v19  ;;  %4615 = vmatprep.subr.mxu0 %v5203_v0  ;;  %6396 = sst [smem:[#allocation52_spill]] %s5669_s5 }
  0xbf   : > { %4616 = vmatpush3.msra.mxu0 %v5203_v0  ;;  %4619 = vmatprep.mubr.msk.f32.mxu0 %vm374_vm0, %v2961_v20  ;;  %s5673_s22 = sld [smem:[#allocation10 + $0x7]] }
  0xc0   : > { %4617 = vmatprep.subr.mxu0 %v5205_v1  ;;  %s5675_s21 = sld [smem:[#allocation9]] }
  0xc1   : > { %4618 = vmatpush3.msra.mxu0 %v5205_v1  ;;  %s5677_s2 = sld [smem:[#allocation9 + $0x80]] }
  0xc2   : > { %4620 = vmatmul.mubr.msk.f32.vlgmr.msra.gmra.mxu0 %vm374_vm0, %v2962_v25  ;;  %4629 = vmatprep.subr.mxu0 %v5203_v0  ;;  %s5679_s20 = sld [smem:[#allocation9 + $0x100]] }
  0xc3   : > { %4630 = vmatpush3.msra.mxu0 %v5203_v0  ;;  %4633 = vmatprep.mubr.msk.f32.mxu0 %vm374_vm0, %v2963_v26  ;;  %s5681_s19 = sld [smem:[#allocation9 + $0x180]] }
  0xc4   : > { %4631 = vmatprep.subr.mxu0 %v5205_v1  ;;  %s5683_s18 = sld [smem:[#allocation9 + $0x200]] }
  0xc5   : > { %4632 = vmatpush3.msra.mxu0 %v5205_v1  ;;  %6397 = sst [smem:[#allocation53_spill]] %s5673_s22 }
  0xc6   : > { %4634 = vmatmul.mubr.msk.f32.vlgmr.msra.gmra.mxu0 %vm374_vm0, %v2964_v31  ;;  %4643 = vmatprep.subr.mxu0 %v5203_v0  ;;  %6398 = sst [smem:[#allocation54_spill]] %s5675_s21 }
  0xc7   : > { %4644 = vmatpush3.msra.mxu0 %v5203_v0  ;;  %4647 = vmatprep.mubr.msk.f32.mxu0 %vm374_vm0, %v2965_v32  ;;  %6399 = sst [smem:[#allocation55_spill]] %s5677_s2 }
  0xc8   : > { %4645 = vmatprep.subr.mxu0 %v5205_v1  ;;  %6400 = sst [smem:[#allocation56_spill]] %s5679_s20 }
  0xc9   : > { %4646 = vmatpush3.msra.mxu0 %v5205_v1  ;;  %6401 = sst [smem:[#allocation57_spill]] %s5681_s19 }
  0xca   : > { %4648 = vmatmul.mubr.msk.f32.vlgmr.msra.gmra.mxu0 %vm374_vm0, %v2966_v35  ;;  %6402 = sst [smem:[#allocation58_spill]] %s5683_s18 }
  0xcb   : > { %s5685_s25 = sld [smem:[#allocation9 + $0x280]] }
  0xcc   : > { %s5687_s5 = sld [smem:[#allocation9 + $0x300]] }
  0xcd   : > { %s5689_s22 = sld [smem:[#allocation9 + $0x380]] }
  0xce   : > { %s5691_s21 = sld [smem:[#allocation9 + $0x1]] }
  0xcf   : > { %s5693_s2 = sld [smem:[#allocation9 + $0x81]] }
  0xd0   : > { %s5695_s20 = sld [smem:[#allocation9 + $0x101]] }
  0xd1   : > { %6403 = sst [smem:[#allocation59_spill]] %s5685_s25 }
  0xd2   : > { %6404 = sst [smem:[#allocation60_spill]] %s5687_s5 }
  0xd3   : > { %6405 = sst [smem:[#allocation61_spill]] %s5689_s22 }
  0xd4   : > { %6406 = sst [smem:[#allocation62_spill]] %s5691_s21 }
  0xd5   : > { %s5697_s19 = sld [smem:[#allocation9 + $0x181]] }
  0xd6   : > { %s5699_s18 = sld [smem:[#allocation9 + $0x201]] }
  0xd7   : > { %s5701_s25 = sld [smem:[#allocation9 + $0x281]] }
  0xd8   : > { %s5703_s5 = sld [smem:[#allocation9 + $0x301]] }
  0xd9   : > { %s5705_s22 = sld [smem:[#allocation9 + $0x381]] }
  0xda   : > { %s5707_s21 = sld [smem:[#allocation9 + $0x2]] }
  0xdd   : > { %6407 = sst [smem:[#allocation63_spill]] %s5701_s25 }
  0xde   : > { %s5721_s25 = sld [smem:[#allocation9 + $0x82]] }
 0x14e   : > { %v5371_v37 = vpop.f32.mrf.mxu0 }
 0x14f   : > { %460 = vrot.lane.b32.xlu0 %v5371_v37, %s4978_s4 }
 0x150   : > { %v5375_v0 = vpop.f32.mrf.mxu0 }
 0x152   : > { %v5377_v38 = vpop.f32.mrf.mxu0 }
 0x153   : > { %458 = vrot.lane.b32.xlu0 %v5375_v0, %s4978_s4  ;;  %633 = vrot.lane.b32.xlu1 %v5377_v38, %s4978_s4 }
 0x154   : > { %v5383_v1 = vpop.f32.mrf.mxu0 }
 0x156   : > { %v5385_v39 = vpop.f32.mrf.mxu0 }
 0x157   : > { %631 = vrot.lane.b32.xlu1 %v5383_v1, %s4978_s4  ;;  %800 = vrot.lane.b32.xlu0 %v5385_v39, %s4978_s4 }
 0x158   : > { %v5391_v40 = vpop.f32.mrf.mxu0 }
 0x15a   : > { %v5393_v41 = vpop.f32.mrf.mxu0 }
 0x15b   : > { %798 = vrot.lane.b32.xlu1 %v5391_v40, %s4978_s4  ;;  %967 = vrot.lane.b32.xlu0 %v5393_v41, %s4978_s4 }
 0x15c   : > { %v5399_v42 = vpop.f32.mrf.mxu0 }
 0x15e   : > { %v5401_v43 = vpop.f32.mrf.mxu0 }
 0x15f   : > { %965 = vrot.lane.b32.xlu1 %v5399_v42, %s4978_s4  ;;  %1328 = vrot.lane.b32.xlu0 %v5401_v43, %s4978_s4 }
 0x160   : > { %v5407_v44 = vpop.f32.mrf.mxu0 }
 0x162   : > { %v5409_v45 = vpop.f32.mrf.mxu0 }
 0x163   : > { %1326 = vrot.lane.b32.xlu1 %v5407_v44, %s4978_s4  ;;  %1495 = vrot.lane.b32.xlu0 %v5409_v45, %s4978_s4 }
 0x164   : > { %v5415_v46 = vpop.f32.mrf.mxu0 }
 0x166   : > { %v5417_v47 = vpop.f32.mrf.mxu0 }
 0x167   : > { %1493 = vrot.lane.b32.xlu1 %v5415_v46, %s4978_s4  ;;  %1662 = vrot.lane.b32.xlu0 %v5417_v47, %s4978_s4 }
 0x168   : > { %v5423_v48 = vpop.f32.mrf.mxu0 }
 0x16a   : > { %v5425_v49 = vpop.f32.mrf.mxu0 }
 0x16b   : > { %1660 = vrot.lane.b32.xlu1 %v5423_v48, %s4978_s4  ;;  %1829 = vrot.lane.b32.xlu0 %v5425_v49, %s4978_s4 }
 0x16c   : > { %v5431_v50 = vpop.f32.mrf.mxu0 }
 0x16e   : > { %v5433_v51 = vpop.f32.mrf.mxu0 }
 0x16f   : > { %1827 = vrot.lane.b32.xlu1 %v5431_v50, %s4978_s4  ;;  %2190 = vrot.lane.b32.xlu0 %v5433_v51, %s4978_s4 }
 0x170   : > { %v5439_v52 = vpop.f32.mrf.mxu0 }
 0x172   : > { %v5441_v53 = vpop.f32.mrf.mxu0 }
 0x173   : > { %2188 = vrot.lane.b32.xlu1 %v5439_v52, %s4978_s4  ;;  %2357 = vrot.lane.b32.xlu0 %v5441_v53, %s4978_s4 }
 0x174   : > { %v5447_v54 = vpop.f32.mrf.mxu0 }
 0x176   : > { %v5449_v55 = vpop.f32.mrf.mxu0 }
 0x177   : > { %2355 = vrot.lane.b32.xlu1 %v5447_v54, %s4978_s4  ;;  %2524 = vrot.lane.b32.xlu0 %v5449_v55, %s4978_s4 }
 0x178   : > { %v5455_v56 = vpop.f32.mrf.mxu0 }
 0x17a   : > { %v5457_v57 = vpop.f32.mrf.mxu0 }
 0x17b   : > { %2522 = vrot.lane.b32.xlu1 %v5455_v56, %s4978_s4  ;;  %2691 = vrot.lane.b32.xlu0 %v5457_v57, %s4978_s4 }
 0x17c   : > { %v5463_v58 = vpop.f32.mrf.mxu0 }
 0x17e   : > { %v5465_v59 = vpop.f32.mrf.mxu0 }
 0x17f   : > { %2689 = vrot.lane.b32.xlu1 %v5463_v58, %s4978_s4  ;;  %3052 = vrot.lane.b32.xlu0 %v5465_v59, %s4978_s4 }
 0x180   : > { %v5471_v60 = vpop.f32.mrf.mxu0 }
 0x182   : > { %v5473_v61 = vpop.f32.mrf.mxu0 }
 0x183   : > { %3050 = vrot.lane.b32.xlu1 %v5471_v60, %s4978_s4  ;;  %3219 = vrot.lane.b32.xlu0 %v5473_v61, %s4978_s4 }
 0x184   : > { %v5479_v62 = vpop.f32.mrf.mxu0 }
 0x186   : > { %v5481_v63 = vpop.f32.mrf.mxu0 }
 0x187   : > { %3217 = vrot.lane.b32.xlu1 %v5479_v62, %s4978_s4  ;;  %3386 = vrot.lane.b32.xlu0 %v5481_v63, %s4978_s4 }
 0x188   : > { %v5487_v2 = vpop.f32.mrf.mxu0 }
 0x18a   : > { %v5489_v3 = vpop.f32.mrf.mxu0 }
 0x18b   : > { %3384 = vrot.lane.b32.xlu1 %v5487_v2, %s4978_s4  ;;  %3553 = vrot.lane.b32.xlu0 %v5489_v3, %s4978_s4 }
 0x18c   : > { %v5495_v4 = vpop.f32.mrf.mxu0 }
 0x18f   : > { %3551 = vrot.lane.b32.xlu1 %v5495_v4, %s4978_s4  ;;  %s5627_s4 = sld [smem:[#allocation9 + $0x2]] }
 0x1c1   : > { %v461_v5 = vpop.permute.xlu0 %460 }
 0x1c2   : > { %v465_v6 = vmax.f32 %v5371_v37, %v461_v5 }
 0x1c4   : > { %4440 = vmatprep.subr.mxu1 %v465_v6 }
 0x1c5   : > { %4441 = vmatpush3.msra.mxu1 %v465_v6  ;;  %v459_v7 = vpop.permute.xlu0 %458  ;;  %v634_v8 = vpop.permute.xlu1 %633 }
 0x1c6   : > { %v464_v9 = vmax.f32 %v5375_v0, %v459_v7  ;;  %v638_v11 = vmax.f32 %v5377_v38, %v634_v8 }
 0x1c8   : > { %4442 = vmatprep.subr.mxu1 %v464_v9 }
 0x1c9   : > { %4443 = vmatpush3.msra.mxu1 %v464_v9  ;;  %v632_v12 = vpop.permute.xlu1 %631  ;;  %v801_v13 = vpop.permute.xlu0 %800 }
 0x1ca   : > { %v637_v14 = vmax.f32 %v5383_v1, %v632_v12  ;;  %4445 = vmatmul.mubr.msk.f32.vlgmr.msra.gmra.mxu1 %vm374_vm0, %v5501_v10  ;;  %4454 = vmatprep.subr.mxu1 %v638_v11  ;;  %v805_v15 = vmax.f32 %v5385_v39, %v801_v13  ;;  %v5730_v12 = vstv %s5607_s29  ;;  %v5733_v13 = vstv %s5609_s6  ;;  %s6418_s29 = sld [smem:[#allocation41_spill]] }
 0x1cb   : > { %4455 = vmatpush3.msra.mxu1 %v638_v11  ;;  %4458 = vmatprep.mubr.msk.f32.mxu1 %vm374_vm0, %v5367_v36  ;;  %v5727_v11 = vstv %s5605_s26  ;;  %6408 = vst [vmem:[#allocation64_spill] sm:$0xff] %v5733_v13  ;;  %s5749_s26 = sld [smem:[#allocation9 + $0x182]] }
 0x1cc   : > { %4456 = vmatprep.subr.mxu1 %v637_v14  ;;  %s6420_s6 = sld [smem:[#allocation42_spill]] }
 0x1cd   : > { %4457 = vmatpush3.msra.mxu1 %v637_v14  ;;  %v799_v16 = vpop.permute.xlu1 %798  ;;  %v968_v17 = vpop.permute.xlu0 %967  ;;  %v5738_v14 = vstv %s5611_s16  ;;  %s6424_s16 = sld [smem:[#allocation44_spill]] }
 0x1ce   : > { %v804_v18 = vmax.f32 %v5391_v40, %v799_v16  ;;  %4459 = vmatmul.mubr.msk.f32.vlgmr.msra.gmra.mxu1 %vm374_vm0, %v5501_v10  ;;  %4468 = vmatprep.subr.mxu1 %v805_v15  ;;  %v972_v19 = vmax.f32 %v5393_v41, %v968_v17  ;;  %6411 = vst [vmem:[#allocation66_spill] sm:$0xff] %v5738_v14  ;;  %v5744_v16 = vstv %s5615_s11  ;;  %v5747_v17 = vstv %s5617_s28  ;;  %s6427_s11 = sld [smem:[#allocation45_spill]] }
 0x1cf   : > { %4469 = vmatpush3.msra.mxu1 %v805_v15  ;;  %4472 = vmatprep.mubr.msk.f32.mxu1 %vm374_vm0, %v5367_v36  ;;  %v5741_v15 = vstv %s5613_s3  ;;  %6415 = vst [vmem:[#allocation68_spill] sm:$0xff] %v5744_v16  ;;  %6417 = vst [vmem:[#allocation69_spill] sm:$0xff] %v5747_v17  ;;  %s5763_s3 = sld [smem:[#allocation9 + $0x202]] }
 0x1d0   : > { %4470 = vmatprep.subr.mxu1 %v804_v18  ;;  %6413 = vst [vmem:[#allocation67_spill] sm:$0xff] %v5741_v15  ;;  %s6429_s28 = sld [smem:[#allocation46_spill]] }
 0x1d1   : > { %4471 = vmatpush3.msra.mxu1 %v804_v18  ;;  %v966_v20 = vpop.permute.xlu1 %965  ;;  %v1329_v21 = vpop.permute.xlu0 %1328  ;;  %v5752_v18 = vstv %s5619_s1  ;;  %s6431_s1 = sld [smem:[#allocation47_spill]] }
 0x1d2   : > { %v971_v22 = vmax.f32 %v5399_v42, %v966_v20  ;;  %4473 = vmatmul.mubr.msk.f32.vlgmr.msra.gmra.mxu1 %vm374_vm0, %v5501_v10  ;;  %4482 = vmatprep.subr.mxu1 %v972_v19  ;;  %v1333_v23 = vmax.f32 %v5401_v43, %v1329_v21  ;;  %6419 = vst [vmem:[#allocation70_spill] sm:$0xff] %v5752_v18  ;;  %v5758_v20 = vstv %s5623_s12  ;;  %v5761_v21 = vstv %s5625_s27  ;;  %s6434_s12 = sld [smem:[#allocation48_spill]] }
 0x1d3   : > { %4483 = vmatpush3.msra.mxu1 %v972_v19  ;;  %4486 = vmatprep.mubr.msk.f32.mxu1 %vm374_vm0, %v5367_v36  ;;  %v5755_v19 = vstv %s5621_s17  ;;  %6423 = vst [vmem:[#allocation72_spill] sm:$0xff] %v5758_v20  ;;  %6425 = vst [vmem:[#allocation73_spill] sm:$0xff] %v5761_v21  ;;  %s5777_s17 = sld [smem:[#allocation9 + $0x282]] }
 0x1d4   : > { %4484 = vmatprep.subr.mxu1 %v971_v22  ;;  %6421 = vst [vmem:[#allocation71_spill] sm:$0xff] %v5755_v19  ;;  %s6436_s27 = sld [smem:[#allocation49_spill]] }
 0x1d5   : > { %4485 = vmatpush3.msra.mxu1 %v971_v22  ;;  %v1327_v24 = vpop.permute.xlu1 %1326  ;;  %v1496_v25 = vpop.permute.xlu0 %1495  ;;  %v5766_v22 = vstv %s5627_s4  ;;  %s6442_s4 = sld [smem:[#allocation52_spill]] }
 0x1d6   : > { %v1332_v26 = vmax.f32 %v5407_v44, %v1327_v24  ;;  %4487 = vmatmul.mubr.msk.f32.vlgmr.msra.gmra.mxu1 %vm374_vm0, %v5501_v10  ;;  %4496 = vmatprep.subr.mxu1 %v1333_v23  ;;  %v1500_v27 = vmax.f32 %v5409_v45, %v1496_v25  ;;  %6426 = vst [vmem:[#allocation74_spill] sm:$0xff] %v5766_v22  ;;  %v5772_v24 = vstv %s5631_s24  ;;  %v5775_v25 = vstv %s5633_s23  ;;  %s5791_s24 = sld [smem:[#allocation9 + $0x302]] }
 0x1d7   : > { %4497 = vmatpush3.msra.mxu1 %v1333_v23  ;;  %4500 = vmatprep.mubr.msk.f32.mxu1 %vm374_vm0, %v5367_v36  ;;  %v5769_v23 = vstv %s5629_s0  ;;  %6430 = vst [vmem:[#allocation76_spill] sm:$0xff] %v5772_v24  ;;  %6432 = vst [vmem:[#allocation77_spill] sm:$0xff] %v5775_v25  ;;  %s6439_s0 = sld [smem:[#allocation50_spill]] }
 0x1d8   : > { %4498 = vmatprep.subr.mxu1 %v1332_v26  ;;  %6428 = vst [vmem:[#allocation75_spill] sm:$0xff] %v5769_v23  ;;  %s6441_s23 = sld [smem:[#allocation51_spill]] }
 0x1d9   : > { %4499 = vmatpush3.msra.mxu1 %v1332_v26  ;;  %v1494_v28 = vpop.permute.xlu1 %1493  ;;  %v1663_v29 = vpop.permute.xlu0 %1662 }
 0x1da   : > { %v1499_v30 = vmax.f32 %v5415_v46, %v1494_v28  ;;  %4501 = vmatmul.mubr.msk.f32.vlgmr.msra.gmra.mxu1 %vm374_vm0, %v5501_v10  ;;  %4510 = vmatprep.subr.mxu1 %v1500_v27  ;;  %v1667_v31 = vmax.f32 %v5417_v47, %v1663_v29 }
 0x1db   : > { %4511 = vmatpush3.msra.mxu1 %v1500_v27  ;;  %4514 = vmatprep.mubr.msk.f32.mxu1 %vm374_vm0, %v5367_v36 }
 0x1dc   : > { %4512 = vmatprep.subr.mxu1 %v1499_v30 }
 0x1dd   : > { %4513 = vmatpush3.msra.mxu1 %v1499_v30  ;;  %v1661_v32 = vpop.permute.xlu1 %1660  ;;  %v1830_v33 = vpop.permute.xlu0 %1829  ;;  %v5794_v30 = vstv %s6418_s29  ;;  %s6447_s29 = sld [smem:[#allocation56_spill]] }
 0x1de   : > { %v1666_v34 = vmax.f32 %v5423_v48, %v1661_v32  ;;  %4515 = vmatmul.mubr.msk.f32.vlgmr.msra.gmra.mxu1 %vm374_vm0, %v5501_v10  ;;  %4524 = vmatprep.subr.mxu1 %v1667_v31  ;;  %v1834_v35 = vmax.f32 %v5425_v49, %v1830_v33  ;;  %v5803_v33 = vstv %s6424_s16  ;;  %s6450_s16 = sld [smem:[#allocation58_spill]] }
 0x1df   : > { %4525 = vmatpush3.msra.mxu1 %v1667_v31  ;;  %4528 = vmatprep.mubr.msk.f32.mxu1 %vm374_vm0, %v5367_v36  ;;  %v5797_v31 = vstv %s6420_s6  ;;  %s5819_s6 = sld [smem:[#allocation9 + $0x3]] }
 0x1e0   : > { %4526 = vmatprep.subr.mxu1 %v1666_v34 }
 0x1e1   : > { %4527 = vmatpush3.msra.mxu1 %v1666_v34  ;;  %v1828_v37 = vpop.permute.xlu1 %1827  ;;  %v2191_v0 = vpop.permute.xlu0 %2190 }
 0x1e2   : > { %v1833_v38 = vmax.f32 %v5431_v50, %v1828_v37  ;;  %4529 = vmatmul.mubr.msk.f32.vlgmr.msra.gmra.mxu1 %vm374_vm0, %v5501_v10  ;;  %4538 = vmatprep.subr.mxu1 %v1834_v35  ;;  %v2195_v1 = vmax.f32 %v5433_v51, %v2191_v0  ;;  %v5811_v37 = vstv %s6429_s28  ;;  %v5814_v0 = vstv %s6431_s1  ;;  %s6454_s28 = sld [smem:[#allocation61_spill]] }
 0x1e3   : > { %4539 = vmatpush3.msra.mxu1 %v1834_v35  ;;  %4542 = vmatprep.mubr.msk.f32.mxu1 %vm374_vm0, %v5367_v36  ;;  %v5808_v35 = vstv %s6427_s11  ;;  %s6453_s11 = sld [smem:[#allocation60_spill]] }
 0x1e4   : > { %4540 = vmatprep.subr.mxu1 %v1833_v38  ;;  %s5833_s1 = sld [smem:[#allocation10]] }
 0x1e5   : > { %4541 = vmatpush3.msra.mxu1 %v1833_v38  ;;  %v2189_v39 = vpop.permute.xlu1 %2188  ;;  %v2358_v40 = vpop.permute.xlu0 %2357  ;;  %v5817_v38 = vstv %s5657_s14  ;;  %s6459_s14 = sld [smem:[#allocation63_spill]] }
 0x1e6   : > { %v2194_v41 = vmax.f32 %v5439_v52, %v2189_v39  ;;  %4543 = vmatmul.mubr.msk.f32.vlgmr.msra.gmra.mxu1 %vm374_vm0, %v5501_v10  ;;  %4552 = vmatprep.subr.mxu1 %v2195_v1  ;;  %v2362_v42 = vmax.f32 %v5441_v53, %v2358_v40  ;;  %v5825_v39 = vstv %s6436_s27  ;;  %v5828_v40 = vstv %s5663_s13  ;;  %s5847_s13 = sld [smem:[#allocation9 + $0x83]] }
 0x1e7   : > { %4553 = vmatpush3.msra.mxu1 %v2195_v1  ;;  %4556 = vmatprep.mubr.msk.f32.mxu1 %vm374_vm0, %v5367_v36  ;;  %v5822_v1 = vstv %s6434_s12  ;;  %6452 = vst [vmem:[#allocation82_spill] sm:$0xff] %v5828_v40 }
 0x1e8   : > { %4554 = vmatprep.subr.mxu1 %v2194_v41 }
 0x1e9   : > { %4555 = vmatpush3.msra.mxu1 %v2194_v41  ;;  %v2356_v43 = vpop.permute.xlu1 %2355  ;;  %v2525_v44 = vpop.permute.xlu0 %2524  ;;  %v5831_v41 = vstv %s6439_s0  ;;  %s5900_s0 = sld [smem:[#allocation10 + $0x1]] }
 0x1ea   : > { %v2361_v45 = vmax.f32 %v5447_v54, %v2356_v43  ;;  %4557 = vmatmul.mubr.msk.f32.vlgmr.msra.gmra.mxu1 %vm374_vm0, %v5501_v10  ;;  %4566 = vmatprep.subr.mxu1 %v2362_v42  ;;  %v2529_v46 = vmax.f32 %v5449_v55, %v2525_v44  ;;  %v5836_v43 = vstv %s6441_s23  ;;  %v5839_v44 = vstv %s6442_s4  ;;  %s5902_s23 = sld [smem:[#allocation9 + $0x103]] }
 0x1eb   : > { %4567 = vmatpush3.msra.mxu1 %v2362_v42  ;;  %4570 = vmatprep.mubr.msk.f32.mxu1 %vm374_vm0, %v5367_v36  ;;  %6457 = vst [vmem:[#allocation83_spill] sm:$0xff] %v5836_v43  ;;  %s6464_s4 = sld [smem:[#allocation36_spill]] }
 0x1ec   : > { %4568 = vmatprep.subr.mxu1 %v2361_v45  ;;  %6458 = sst [smem:[#allocation41_spill]] %s5847_s13 }
 0x1ed   : > { %4569 = vmatpush3.msra.mxu1 %v2361_v45  ;;  %v2523_v47 = vpop.permute.xlu1 %2522  ;;  %v2692_v48 = vpop.permute.xlu0 %2691  ;;  %v5842_v45 = vstv %s5671_s10  ;;  %s5918_s13 = sld [smem:[#allocation10 + $0x3]] }
 0x1ee   : > { %v2528_v49 = vmax.f32 %v5455_v56, %v2523_v47  ;;  %4571 = vmatmul.mubr.msk.f32.vlgmr.msra.gmra.mxu1 %vm374_vm0, %v5501_v10  ;;  %4580 = vmatprep.subr.mxu1 %v2529_v46  ;;  %v2696_v50 = vmax.f32 %v5457_v57, %v2692_v48 }
 0x1ef   : > { %4581 = vmatpush3.msra.mxu1 %v2529_v46  ;;  %4584 = vmatprep.mubr.msk.f32.mxu1 %vm374_vm0, %v5367_v36  ;;  %6463 = sst [smem:[#allocation42_spill]] %s5900_s0 }
 0x1f0   : > { %4582 = vmatprep.subr.mxu1 %v2528_v49  ;;  %s6004_s0 = sld [smem:[#allocation10 + $0x5]] }
 0x1f1   : > { %4583 = vmatpush3.msra.mxu1 %v2528_v49  ;;  %v2690_v51 = vpop.permute.xlu1 %2689  ;;  %v3053_v52 = vpop.permute.xlu0 %3052 }
 0x1f2   : > { %v2695_v53 = vmax.f32 %v5463_v58, %v2690_v51  ;;  %4585 = vmatmul.mubr.msk.f32.vlgmr.msra.gmra.mxu1 %vm374_vm0, %v5501_v10  ;;  %4594 = vmatprep.subr.mxu1 %v2696_v50  ;;  %v3057_v54 = vmax.f32 %v5465_v59, %v3053_v52 }
 0x1f3   : > { %4595 = vmatpush3.msra.mxu1 %v2696_v50  ;;  %4598 = vmatprep.mubr.msk.f32.mxu1 %vm374_vm0, %v5367_v36  ;;  %6466 = sst [smem:[#allocation44_spill]] %s5918_s13 }
 0x1f4   : > { %4596 = vmatprep.subr.mxu1 %v2695_v53  ;;  %s5992_s13 = sld [smem:[#allocation10 + $0x4]] }
 0x1f5   : > { %4597 = vmatpush3.msra.mxu1 %v2695_v53  ;;  %v3051_v55 = vpop.permute.xlu1 %3050  ;;  %v3220_v56 = vpop.permute.xlu0 %3219 }
 0x1f6   : > { %v3056_v57 = vmax.f32 %v5471_v60, %v3051_v55  ;;  %4599 = vmatmul.mubr.msk.f32.vlgmr.msra.gmra.mxu1 %vm374_vm0, %v5501_v10  ;;  %4608 = vmatprep.subr.mxu1 %v3057_v54  ;;  %v3224_v58 = vmax.f32 %v5473_v61, %v3220_v56  ;;  %6486 = sst [smem:[#allocation48_spill]] %s6004_s0 }
 0x1f7   : > { %4609 = vmatpush3.msra.mxu1 %v3057_v54  ;;  %4612 = vmatprep.mubr.msk.f32.mxu1 %vm374_vm0, %v5367_v36 }
 0x1f8   : > { %4610 = vmatprep.subr.mxu1 %v3056_v57 }
 0x1f9   : > { %4611 = vmatpush3.msra.mxu1 %v3056_v57  ;;  %v3218_v5 = vpop.permute.xlu1 %3217  ;;  %v3387_v59 = vpop.permute.xlu0 %3386 }
 0x1fa   : > { %v3223_v6 = vmax.f32 %v5479_v62, %v3218_v5  ;;  %4613 = vmatmul.mubr.msk.f32.vlgmr.msra.gmra.mxu1 %vm374_vm0, %v5501_v10  ;;  %4622 = vmatprep.subr.mxu1 %v3224_v58  ;;  %v3391_v60 = vmax.f32 %v5481_v63, %v3387_v59  ;;  %6484 = sst [smem:[#allocation46_spill]] %s5992_s13 }
 0x1fb   : > { %4623 = vmatpush3.msra.mxu1 %v3224_v58  ;;  %4626 = vmatprep.mubr.msk.f32.mxu1 %vm374_vm0, %v5367_v36 }
 0x1fc   : > { %4624 = vmatprep.subr.mxu1 %v3223_v6 }
 0x1fd   : > { %4625 = vmatpush3.msra.mxu1 %v3223_v6  ;;  %v3385_v7 = vpop.permute.xlu1 %3384  ;;  %v3554_v61 = vpop.permute.xlu0 %3553 }
 0x1fe   : > { %v3390_v8 = vmax.f32 %v5487_v2, %v3385_v7  ;;  %4627 = vmatmul.mubr.msk.f32.vlgmr.msra.gmra.mxu1 %vm374_vm0, %v5501_v10  ;;  %4636 = vmatprep.subr.mxu1 %v3391_v60  ;;  %v3558_v62 = vmax.f32 %v5489_v3, %v3554_v61  ;;  %v5713_v2 = vstv %s5597_s8  ;;  %v5716_v3 = vstv %s5599_s9  ;;  %s6410_s8 = sld [smem:[#allocation37_spill]] }
 0x1ff   : > { %4637 = vmatpush3.msra.mxu1 %v3391_v60  ;;  %4640 = vmatprep.mubr.msk.f32.mxu1 %vm374_vm0, %v5367_v36  ;;  %s6412_s9 = sld [smem:[#allocation38_spill]] }
 0x200   : > { %4638 = vmatprep.subr.mxu1 %v3390_v8  ;;  %6440 = sst [smem:[#allocation37_spill]] %s5791_s24 }
 0x201   : > { %4639 = vmatpush3.msra.mxu1 %v3390_v8  ;;  %v3552_v9 = vpop.permute.xlu1 %3551  ;;  %s6456_s24 = sld [smem:[#allocation62_spill]] }
 0x202   : > { %v3557_v63 = vmax.f32 %v5495_v4, %v3552_v9  ;;  %4641 = vmatmul.mubr.msk.f32.vlgmr.msra.gmra.mxu1 %vm374_vm0, %v5501_v10  ;;  %4650 = vmatprep.subr.mxu1 %v3558_v62  ;;  %v5719_v4 = vstv %s5601_s15  ;;  %s6414_s15 = sld [smem:[#allocation39_spill]] }
 0x203   : > { %4651 = vmatpush3.msra.mxu1 %v3558_v62  ;;  %4654 = vmatprep.mubr.msk.f32.mxu1 %vm374_vm0, %v5367_v36  ;;  %v5710_v36 = vstv %s5595_s7  ;;  %s5735_s7 = sld [smem:[#allocation9 + $0x102]] }
 0x204   : > { %4652 = vmatprep.subr.mxu1 %v3557_v63  ;;  %v5780_v26 = vstv %s6410_s8  ;;  %s5805_s8 = sld [smem:[#allocation9 + $0x382]] }
 0x205   : > { %4653 = vmatpush3.msra.mxu1 %v3557_v63  ;;  %6433 = vst [vmem:[#allocation78_spill] sm:$0xff] %v5780_v26  ;;  %v5783_v27 = vstv %s6412_s9  ;;  %s6444_s9 = sld [smem:[#allocation53_spill]] }
 0x206   : > { %4655 = vmatmul.mubr.msk.f32.vlgmr.msra.gmra.mxu1 %vm374_vm0, %v5501_v10  ;;  %v5724_v10 = vstv %s5603_s30  ;;  %s6416_s30 = sld [smem:[#allocation40_spill]]  ;;  %6435 = vst [vmem:[#allocation79_spill] sm:$0xff] %v5783_v27 }
 0x207   : > { %6449 = sst [smem:[#allocation39_spill]] %s5819_s6  ;;  %s3994_s6 = sshll.u32 %s6464_s4, 8 }
 0x208   : > { %v5786_v28 = vstv %s6414_s15  ;;  %s6445_s15 = sld [smem:[#allocation54_spill]]  ;;  %s5929_s4 = scalar_lea.vmem [#allocation12], %s3994_s6 }
 0x209   : > { %6409 = sst [smem:[#allocation65_spill]] %s5735_s7  ;;  %6437 = vst [vmem:[#allocation80_spill] sm:$0xff] %v5786_v28 }
 0x20a   : > { %s6422_s7 = sld [smem:[#allocation43_spill]] }
 0x20b   : > { %6443 = sst [smem:[#allocation38_spill]] %s5805_s8  ;;  %v5845_v46 = vstv %s6444_s9 }
 0x20c   : > { %v5789_v29 = vstv %s6416_s30  ;;  %s6446_s30 = sld [smem:[#allocation55_spill]] }
 0x20d   : > { %6438 = vst [vmem:[#allocation81_spill] sm:$0xff] %v5789_v29  ;;  %s6451_s8 = sld [smem:[#allocation59_spill]] }
 0x20e   : > { %6455 = sst [smem:[#allocation40_spill]] %s5833_s1 }
 0x20f   : > { %s6460_s10 = sld [smem:[#allocation65_spill]] }
 0x210   : > { %v5800_v32 = vstv %s6422_s7  ;;  %s6448_s7 = sld [smem:[#allocation57_spill]] }
 0x211   : > { %s6461_s12 = sld [smem:[#allocation37_spill]] }
 0x212   : > { %s6462_s27 = sld [smem:[#allocation38_spill]] }
 0x213   : > { %s5906_s9 = sld [smem:[#allocation10 + $0x2]] }
 0x214   : > { %s5912_s1 = sld [smem:[#allocation9 + $0x183]] }
 0x215   : > { %s5990_s6 = sld [smem:[#allocation9 + $0x203]] }
 0x219   : > { %6465 = sst [smem:[#allocation43_spill]] %s5906_s9 }
 0x21a   : > { %s5998_s9 = sld [smem:[#allocation9 + $0x283]] }
 0x21b   : > { %6483 = sst [smem:[#allocation45_spill]] %s5990_s6 }
 0x220   : > { %6485 = sst [smem:[#allocation47_spill]] %s5998_s9 }
 0x28a   : > { %v4446_v34 = vpop.f32.mrf.mxu1 }
 0x28c   : > { %v538_v42 = vpop.f32.mrf.mxu1 }
 0x28d   : > { %v547_v59 = vmax.f32 %v538_v42, %v4446_v34 }
 0x28e   : > { %v4460_v51 = vpop.f32.mrf.mxu1 }
 0x28f   : > { %v1051_v42 = vmul.f32 %v5710_v36, %v547_v59  ;;  %v1072_v9 = vmul.f32 %v5713_v2, %v547_v59  ;;  %v1093_v63 = vmul.f32 %v5716_v3, %v547_v59  ;;  %v1114_v57 = vmul.f32 %v5719_v4, %v547_v59 }
 0x290   : > { %v705_v6 = vpop.f32.mrf.mxu1  ;;  %v1135_v58 = vmul.f32 %v5724_v10, %v547_v59  ;;  %v1156_v5 = vmul.f32 %v5727_v11, %v547_v59  ;;  %v1177_v34 = vmul.f32 %v5730_v12, %v547_v59  ;;  %v1198_v52 = vmul.f32 %v5733_v13, %v547_v59 }
 0x291   : > { %v714_v8 = vmax.f32 %v705_v6, %v4460_v51 }
 0x292   : > { %v4474_v56 = vpop.f32.mrf.mxu1 }
 0x293   : > { %v1054_v60 = vmul.f32 %v5738_v14, %v714_v8  ;;  %v1075_v61 = vmul.f32 %v5741_v15, %v714_v8  ;;  %v1096_v53 = vmul.f32 %v5744_v16, %v714_v8  ;;  %v1117_v55 = vmul.f32 %v5747_v17, %v714_v8 }
 0x294   : > { %v872_v51 = vpop.f32.mrf.mxu1  ;;  %v1138_v6 = vmul.f32 %v5752_v18, %v714_v8  ;;  %v1159_v62 = vmul.f32 %v5755_v19, %v714_v8  ;;  %v1180_v48 = vmul.f32 %v5758_v20, %v714_v8  ;;  %v1201_v47 = vmul.f32 %v5761_v21, %v714_v8 }
 0x295   : > { %v881_v7 = vmax.f32 %v872_v51, %v4474_v56  ;;  %v1055_v50 = vadd.f32 %v1054_v60, %v1051_v42  ;;  %v1076_v49 = vadd.f32 %v1075_v61, %v1072_v9  ;;  %v1097_v9 = vadd.f32 %v1096_v53, %v1093_v63 }
 0x296   : > { %v4488_v54 = vpop.f32.mrf.mxu1  ;;  %v1118_v8 = vadd.f32 %v1117_v55, %v1114_v57  ;;  %v1139_v42 = vadd.f32 %v1138_v6, %v1135_v58  ;;  %v1160_v51 = vadd.f32 %v1159_v62, %v1156_v5  ;;  %v1202_v21 = vadd.f32 %v1201_v47, %v1198_v52 }
 0x297   : > { %v1058_v14 = vmul.f32 %v5766_v22, %v881_v7  ;;  %v1079_v59 = vmul.f32 %v5769_v23, %v881_v7  ;;  %v1100_v16 = vmul.f32 %v5772_v24, %v881_v7  ;;  %v1121_v17 = vmul.f32 %v5775_v25, %v881_v7 }
 0x298   : > { %v1039_v15 = vpop.f32.mrf.mxu1  ;;  %v1142_v18 = vmul.f32 %v5780_v26, %v881_v7  ;;  %v1163_v19 = vmul.f32 %v5783_v27, %v881_v7  ;;  %v1184_v56 = vmul.f32 %v5786_v28, %v881_v7  ;;  %v1205_v60 = vmul.f32 %v5789_v29, %v881_v7 }
 0x299   : > { %v1181_v22 = vadd.f32 %v1180_v48, %v1177_v34  ;;  %v1059_v23 = vadd.f32 %v1058_v14, %v1055_v50  ;;  %v1080_v20 = vadd.f32 %v1079_v59, %v1076_v49  ;;  %v1101_v26 = vadd.f32 %v1100_v16, %v1097_v9 }
 0x29a   : > { %v4502_v61 = vpop.f32.mrf.mxu1  ;;  %v1122_v25 = vadd.f32 %v1121_v17, %v1118_v8  ;;  %v1143_v27 = vadd.f32 %v1142_v18, %v1139_v42  ;;  %v1048_v13 = vmax.f32 %v1039_v15, %v4488_v54  ;;  %v1164_v7 = vadd.f32 %v1163_v19, %v1160_v51 }
 0x29b   : > { %v1185_v29 = vadd.f32 %v1184_v56, %v1181_v22  ;;  %v1206_v53 = vadd.f32 %v1205_v60, %v1202_v21 }
 0x29c   : > { %v1400_v24 = vpop.f32.mrf.mxu1  ;;  %v1062_v14 = vmul.f32 %v5794_v30, %v1048_v13  ;;  %v1083_v47 = vmul.f32 %v5800_v32, %v1048_v13  ;;  %v1104_v16 = vmul.f32 %v5808_v35, %v1048_v13  ;;  %v1125_v17 = vmul.f32 %v5814_v0, %v1048_v13 }
 0x29d   : > { %v5904_v55 = vmax.f32 %v1400_v24, %v4502_v61  ;;  %v1146_v15 = vmul.f32 %v5822_v1, %v1048_v13  ;;  %v1167_v18 = vmul.f32 %v5828_v40, %v1048_v13  ;;  %v1188_v19 = vmul.f32 %v5836_v43, %v1048_v13 }
 0x29e   : > { %v4516_v48 = vpop.f32.mrf.mxu1  ;;  %v1209_v21 = vmul.f32 %v5842_v45, %v1048_v13  ;;  %v1063_v24 = vadd.f32 %v1062_v14, %v1059_v23  ;;  %v1084_v49 = vadd.f32 %v1083_v47, %v1080_v20  ;;  %v1105_v50 = vadd.f32 %v1104_v16, %v1101_v26 }
 0x29f   : > { %v1126_v52 = vadd.f32 %v1125_v17, %v1122_v25  ;;  %v1147_v54 = vadd.f32 %v1146_v15, %v1143_v27  ;;  %v1168_v57 = vadd.f32 %v1167_v18, %v1164_v7  ;;  %v1189_v58 = vadd.f32 %v1188_v19, %v1185_v29 }
 0x2a0   : > { %v1567_v22 = vpop.f32.mrf.mxu1  ;;  %v1210_v5 = vadd.f32 %v1209_v21, %v1206_v53  ;;  %v1066_v63 = vadd.f32 %v5797_v31, %v1063_v24  ;;  %v1087_v34 = vadd.f32 %v5803_v33, %v1084_v49  ;;  %v1108_v6 = vadd.f32 %v5811_v37, %v1105_v50  ;;  %v6476_v53 = vld [vmem:[#allocation74_spill] sm:$0xff] }
 0x2a1   : > { %v1129_v13 = vadd.f32 %v5817_v38, %v1126_v52  ;;  %v1150_v59 = vadd.f32 %v5825_v39, %v1147_v54  ;;  %v1171_v23 = vadd.f32 %v5831_v41, %v1168_v57  ;;  %v1192_v20 = vadd.f32 %v5839_v44, %v1189_v58  ;;  %v6467_v54 = vld [vmem:[#allocation64_spill] sm:$0xff] }
 0x2a2   : > { %v4530_v62 = vpop.f32.mrf.mxu1  ;;  %v1213_v25 = vadd.f32 %v5845_v46, %v1210_v5  ;;  %v1067_v27 = vmax.f32 %v1066_v63, 0.0  ;;  %v1088_v29 = vmax.f32 %v1087_v34, 0.0  ;;  %v1109_v56 = vmax.f32 %v1108_v6, 0.0  ;;  %v6468_v34 = vld [vmem:[#allocation66_spill] sm:$0xff] }
 0x2a3   : > { %v1130_v60 = vmax.f32 %v1129_v13, 0.0  ;;  %v1151_v61 = vmax.f32 %v1150_v59, 0.0  ;;  %v1172_v9 = vmax.f32 %v1171_v23, 0.0  ;;  %v1193_v8 = vmax.f32 %v1192_v20, 0.0  ;;  %v6469_v13 = vld [vmem:[#allocation67_spill] sm:$0xff]  ;;  %v6470_v23 = vld [vmem:[#allocation68_spill] sm:$0xff] }
 0x2a4   : > { %v1734_v26 = vpop.f32.mrf.mxu1  ;;  %v1214_v42 = vmax.f32 %v1213_v25, 0.0  ;;  %1069 = vst.msk [vmem:[%s5929_s4] sm:$0xff] %vm1068_vm1, %v1067_v27  ;;  %4027 = vst.msk [vmem:[%s5929_s4 + $0x20] sm:$0xff] %vm1068_vm1, %v1088_v29  ;;  %v1913_v16 = vmul.f32 %v5904_v55, %v5710_v36  ;;  %v1934_v17 = vmul.f32 %v5904_v55, %v5713_v2  ;;  %v1955_v15 = vmul.f32 %v5904_v55, %v5716_v3  ;;  %v6471_v25 = vld [vmem:[#allocation69_spill] sm:$0xff]  ;;  %v6472_v29 = vld [vmem:[#allocation70_spill] sm:$0xff] }
 0x2a5   : > { %4033 = vst.msk [vmem:[%s5929_s4 + $0x40] sm:$0xff] %vm1068_vm1, %v1109_v56  ;;  %4039 = vst.msk [vmem:[%s5929_s4 + $0x60] sm:$0xff] %vm1068_vm1, %v1130_v60  ;;  %v1976_v21 = vmul.f32 %v5904_v55, %v5719_v4  ;;  %v1997_v24 = vmul.f32 %v5904_v55, %v5724_v10  ;;  %v2018_v49 = vmul.f32 %v5904_v55, %v5727_v11  ;;  %v6474_v60 = vld [vmem:[#allocation72_spill] sm:$0xff] }
 0x2a6   : > { %v4544_v51 = vpop.f32.mrf.mxu1  ;;  %4045 = vst.msk [vmem:[%s5929_s4 + $0x80] sm:$0xff] %vm1068_vm1, %v1151_v61  ;;  %4051 = vst.msk [vmem:[%s5929_s4 + $0xa0] sm:$0xff] %vm1068_vm1, %v1172_v9  ;;  %v1576_v50 = vmax.f32 %v1567_v22, %v4516_v48  ;;  %v2039_v52 = vmul.f32 %v5904_v55, %v5730_v12  ;;  %v2060_v57 = vmul.f32 %v5904_v55, %v6467_v54  ;;  %v6473_v22 = vld [vmem:[#allocation71_spill] sm:$0xff]  ;;  %v6475_v9 = vld [vmem:[#allocation73_spill] sm:$0xff] }
 0x2a7   : > { %4057 = vst.msk [vmem:[%s5929_s4 + $0xc0] sm:$0xff] %vm1068_vm1, %v1193_v8  ;;  %4063 = vst.msk [vmem:[%s5929_s4 + $0xe0] sm:$0xff] %vm1068_vm1, %v1214_v42  ;;  %v1743_v58 = vmax.f32 %v1734_v26, %v4530_v62 }
 0x2a8   : > { %v1901_v18 = vpop.f32.mrf.mxu1  ;;  %v1916_v6 = vmul.f32 %v1576_v50, %v6468_v34  ;;  %v1937_v59 = vmul.f32 %v1576_v50, %v6469_v13  ;;  %v1958_v20 = vmul.f32 %v1576_v50, %v6470_v23  ;;  %v1979_v27 = vmul.f32 %v1576_v50, %v6471_v25  ;;  %v6477_v25 = vld [vmem:[#allocation75_spill] sm:$0xff]  ;;  %v6478_v23 = vld [vmem:[#allocation76_spill] sm:$0xff]  ;;  %v6479_v13 = vld [vmem:[#allocation77_spill] sm:$0xff] }
 0x2a9   : > { %v1910_v5 = vmax.f32 %v1901_v18, %v4544_v51  ;;  %v2000_v48 = vmul.f32 %v1576_v50, %v6472_v29  ;;  %v2021_v56 = vmul.f32 %v1576_v50, %v6473_v22  ;;  %v2042_v61 = vmul.f32 %v1576_v50, %v6474_v60 }
 0x2aa   : > { %v5968_v63 = vpop.f32.mrf.mxu1  ;;  %v2063_v55 = vmul.f32 %v1576_v50, %v6475_v9  ;;  %v1917_v26 = vadd.f32 %v1916_v6, %v1913_v16  ;;  %v1938_v8 = vadd.f32 %v1937_v59, %v1934_v17  ;;  %v1959_v42 = vadd.f32 %v1958_v20, %v1955_v15  ;;  %v6480_v9 = vld [vmem:[#allocation78_spill] sm:$0xff]  ;;  %v6481_v16 = vld [vmem:[#allocation79_spill] sm:$0xff] }
 0x2ab   : > { %v1980_v51 = vadd.f32 %v1979_v27, %v1976_v21  ;;  %v2001_v18 = vadd.f32 %v2000_v48, %v1997_v24  ;;  %v2022_v19 = vadd.f32 %v2021_v56, %v2018_v49  ;;  %v2043_v14 = vadd.f32 %v2042_v61, %v2039_v52  ;;  %v6482_v21 = vld [vmem:[#allocation81_spill] sm:$0xff] }
 0x2ac   : > { %v5978_v62 = vpop.f32.mrf.mxu1  ;;  %v2064_v7 = vadd.f32 %v2063_v55, %v2060_v57  ;;  %v1920_v29 = vmul.f32 %v1743_v58, %v6476_v53  ;;  %v1941_v22 = vmul.f32 %v1743_v58, %v6477_v25  ;;  %v1962_v60 = vmul.f32 %v1743_v58, %v6478_v23 }
 0x2ad   : > { %v1983_v50 = vmul.f32 %v1743_v58, %v6479_v13  ;;  %v2004_v34 = vmul.f32 %v1743_v58, %v6480_v9  ;;  %v2025_v17 = vmul.f32 %v1743_v58, %v6481_v16  ;;  %v2046_v15 = vmul.f32 %v1743_v58, %v5786_v28 }
 0x2ae   : > { %v5980_v47 = vpop.f32.mrf.mxu1  ;;  %v2067_v24 = vmul.f32 %v1743_v58, %v6482_v21  ;;  %v1921_v52 = vadd.f32 %v1920_v29, %v1917_v26  ;;  %v1942_v57 = vadd.f32 %v1941_v22, %v1938_v8  ;;  %v1963_v6 = vadd.f32 %v1962_v60, %v1959_v42 }
 0x2af   : > { %v1984_v59 = vadd.f32 %v1983_v50, %v1980_v51  ;;  %v2005_v20 = vadd.f32 %v2004_v34, %v2001_v18  ;;  %v2026_v27 = vadd.f32 %v2025_v17, %v2022_v19  ;;  %v2047_v48 = vadd.f32 %v2046_v15, %v2043_v14 }
 0x2b0   : > { %v2429_v49 = vpop.f32.mrf.mxu1  ;;  %v2068_v56 = vadd.f32 %v2067_v24, %v2064_v7  ;;  %v1924_v55 = vmul.f32 %v1910_v5, %v5794_v30  ;;  %v1945_v28 = vmul.f32 %v1910_v5, %v5800_v32  ;;  %v1966_v58 = vmul.f32 %v1910_v5, %v5808_v35 }
 0x2b1   : > { %v1987_v29 = vmul.f32 %v1910_v5, %v5814_v0  ;;  %v2008_v22 = vmul.f32 %v1910_v5, %v5822_v1  ;;  %v2029_v34 = vmul.f32 %v1910_v5, %v5828_v40  ;;  %v2050_v14 = vmul.f32 %v1910_v5, %v5836_v43 }
 0x2b2   : > { %v4586_v61 = vpop.f32.mrf.mxu1  ;;  %v2071_v7 = vmul.f32 %v1910_v5, %v5842_v45  ;;  %v1925_v60 = vadd.f32 %v1924_v55, %v1921_v52  ;;  %v1946_v26 = vadd.f32 %v1945_v28, %v1942_v57  ;;  %v1967_v8 = vadd.f32 %v1966_v58, %v1963_v6 }
 0x2b3   : > { %v1988_v42 = vadd.f32 %v1987_v29, %v1984_v59  ;;  %v2009_v51 = vadd.f32 %v2008_v22, %v2005_v20  ;;  %v2030_v18 = vadd.f32 %v2029_v34, %v2026_v27  ;;  %v2051_v50 = vadd.f32 %v2050_v14, %v2047_v48 }
 0x2b4   : > { %v2596_v19 = vpop.f32.mrf.mxu1  ;;  %v2072_v17 = vadd.f32 %v2071_v7, %v2068_v56  ;;  %v1928_v24 = vadd.f32 %v1925_v60, %v5797_v31  ;;  %v1949_v40 = vadd.f32 %v1946_v26, %v5803_v33  ;;  %v1970_v43 = vadd.f32 %v1967_v8, %v5811_v37 }
 0x2b5   : > { %v1991_v5 = vadd.f32 %v1988_v42, %v5817_v38  ;;  %v2012_v52 = vadd.f32 %v2009_v51, %v5825_v39  ;;  %v2033_v28 = vadd.f32 %v2030_v18, %v5831_v41  ;;  %v2054_v57 = vadd.f32 %v2051_v50, %v5839_v44 }
 0x2b6   : > { %v4600_v15 = vpop.f32.mrf.mxu1  ;;  %v2075_v6 = vadd.f32 %v2072_v17, %v5845_v46  ;;  %v1929_v20 = vmax.f32 %v1928_v24, 0.0  ;;  %v1950_v27 = vmax.f32 %v1949_v40, 0.0  ;;  %v1971_v48 = vmax.f32 %v1970_v43, 0.0 }
 0x2b7   : > { %v1992_v56 = vmax.f32 %v1991_v5, 0.0  ;;  %v2013_v55 = vmax.f32 %v2012_v52, 0.0  ;;  %v2034_v58 = vmax.f32 %v2033_v28, 0.0  ;;  %v2055_v29 = vmax.f32 %v2054_v57, 0.0  ;;  %v6488_v5 = vld [vmem:[#allocation67_spill] sm:$0xff]  ;;  %v6489_v52 = vld [vmem:[#allocation68_spill] sm:$0xff] }
 0x2b8   : > { %v2763_v59 = vpop.f32.mrf.mxu1  ;;  %v2076_v22 = vmax.f32 %v2075_v6, 0.0  ;;  %4099 = vst.msk [vmem:[%s5929_s4 + $0x8] sm:$0xff] %vm1068_vm1, %v1929_v20  ;;  %4105 = vst.msk [vmem:[%s5929_s4 + $0x28] sm:$0xff] %vm1068_vm1, %v1950_v27  ;;  %v2271_v40 = vmax.f32 %v5978_v62, %v5968_v63  ;;  %v2438_v43 = vmax.f32 %v2429_v49, %v5980_v47  ;;  %v3731_v14 = vstv %s5990_s6  ;;  %v6490_v28 = vld [vmem:[#allocation69_spill] sm:$0xff]  ;;  %v6491_v57 = vld [vmem:[#allocation70_spill] sm:$0xff]  ;;  %s6085_s6 = sld [smem:[#allocation10 + $0x7]] }
 0x2b9   : > { %4111 = vst.msk [vmem:[%s5929_s4 + $0x48] sm:$0xff] %vm1068_vm1, %v1971_v48  ;;  %4117 = vst.msk [vmem:[%s5929_s4 + $0x68] sm:$0xff] %vm1068_vm1, %v1992_v56  ;;  %v3735_v7 = vstv %s5992_s13  ;;  %v2605_v60 = vmax.f32 %v2596_v19, %v4586_v61  ;;  %v2772_v26 = vmax.f32 %v2763_v59, %v4600_v15  ;;  %v3752_v42 = vstv %s5998_s9  ;;  %v6487_v15 = vld [vmem:[#allocation66_spill] sm:$0xff]  ;;  %v6492_v6 = vld [vmem:[#allocation71_spill] sm:$0xff]  ;;  %s6073_s13 = sld [smem:[#allocation10 + $0x6]] }
 0x2ba   : > { %v6014_v34 = vpop.f32.mrf.mxu1  ;;  %4123 = vst.msk [vmem:[%s5929_s4 + $0x88] sm:$0xff] %vm1068_vm1, %v2013_v55  ;;  %4129 = vst.msk [vmem:[%s5929_s4 + $0xa8] sm:$0xff] %vm1068_vm1, %v2034_v58  ;;  %v3756_v51 = vstv %s6004_s0  ;;  %v2775_v63 = vmul.f32 %v2271_v40, %v5710_v36  ;;  %v2796_v47 = vmul.f32 %v2271_v40, %v5713_v2  ;;  %v2817_v62 = vmul.f32 %v2271_v40, %v5716_v3  ;;  %v6493_v59 = vld [vmem:[#allocation72_spill] sm:$0xff]  ;;  %v6494_v20 = vld [vmem:[#allocation73_spill] sm:$0xff]  ;;  %s6071_s0 = sld [smem:[#allocation9 + $0x303]] }
 0x2bb   : > { %4135 = vst.msk [vmem:[%s5929_s4 + $0xc8] sm:$0xff] %vm1068_vm1, %v2055_v29  ;;  %4141 = vst.msk [vmem:[%s5929_s4 + $0xe8] sm:$0xff] %vm1068_vm1, %v2076_v22  ;;  %v2838_v49 = vmul.f32 %v2271_v40, %v5719_v4  ;;  %v2859_v18 = vmul.f32 %v2271_v40, %v5724_v10  ;;  %v2880_v50 = vmul.f32 %v2271_v40, %v5727_v11  ;;  %s6079_s9 = sld [smem:[#allocation9 + $0x383]] }
 0x2bc   : > { %v6037_v8 = vpop.f32.mrf.mxu1  ;;  %v2901_v17 = vmul.f32 %v2271_v40, %v5730_v12  ;;  %v2922_v61 = vmul.f32 %v2271_v40, %v6467_v54  ;;  %v2778_v24 = vmul.f32 %v2438_v43, %v6487_v15  ;;  %v2799_v36 = vmul.f32 %v2438_v43, %v6488_v5 }
 0x2bd   : > { %v2820_v2 = vmul.f32 %v2438_v43, %v6489_v52  ;;  %v2841_v3 = vmul.f32 %v2438_v43, %v6490_v28  ;;  %v2862_v4 = vmul.f32 %v2438_v43, %v6491_v57  ;;  %v2883_v10 = vmul.f32 %v2438_v43, %v6492_v6 }
 0x2be   : > { %v6049_v19 = vpop.f32.mrf.mxu1  ;;  %v2904_v11 = vmul.f32 %v2438_v43, %v6493_v59  ;;  %v2925_v12 = vmul.f32 %v2438_v43, %v6494_v20  ;;  %v2779_v54 = vadd.f32 %v2778_v24, %v2775_v63  ;;  %v2800_v48 = vadd.f32 %v2799_v36, %v2796_v47  ;;  %v6495_v47 = vld [vmem:[#allocation80_spill] sm:$0xff] }
 0x2bf   : > { %v2821_v56 = vadd.f32 %v2820_v2, %v2817_v62  ;;  %v2842_v55 = vadd.f32 %v2841_v3, %v2838_v49  ;;  %v2863_v58 = vadd.f32 %v2862_v4, %v2859_v18  ;;  %v2884_v29 = vadd.f32 %v2883_v10, %v2880_v50  ;;  %v6496_v2 = vld [vmem:[#allocation82_spill] sm:$0xff]  ;;  %v6497_v4 = vld [vmem:[#allocation83_spill] sm:$0xff] }
 0x2c0   : > { %v6059_v27 = vpop.f32.mrf.mxu1  ;;  %v2905_v22 = vadd.f32 %v2904_v11, %v2901_v17  ;;  %v2926_v40 = vadd.f32 %v2925_v12, %v2922_v61  ;;  %v2782_v5 = vmul.f32 %v2605_v60, %v6476_v53  ;;  %v2803_v52 = vmul.f32 %v2605_v60, %v6477_v25 }
 0x2c1   : > { %v2824_v28 = vmul.f32 %v2605_v60, %v6478_v23  ;;  %v2845_v43 = vmul.f32 %v2605_v60, %v6479_v13  ;;  %v2866_v57 = vmul.f32 %v2605_v60, %v6480_v9  ;;  %v2887_v63 = vmul.f32 %v2605_v60, %v6481_v16 }
 0x2c2   : > { %v6061_v15 = vpop.f32.mrf.mxu1  ;;  %v2908_v62 = vmul.f32 %v2605_v60, %v6495_v47  ;;  %v2929_v49 = vmul.f32 %v2605_v60, %v6482_v21  ;;  %v2783_v18 = vadd.f32 %v2782_v5, %v2779_v54  ;;  %v2804_v50 = vadd.f32 %v2803_v52, %v2800_v48 }
 0x2c3   : > { %v2825_v17 = vadd.f32 %v2824_v28, %v2821_v56  ;;  %v2846_v61 = vadd.f32 %v2845_v43, %v2842_v55  ;;  %v2867_v53 = vadd.f32 %v2866_v57, %v2863_v58  ;;  %v2888_v25 = vadd.f32 %v2887_v63, %v2884_v29 }
 0x2c4   : > { %v3458_v24 = vpop.f32.mrf.mxu1  ;;  %v2909_v23 = vadd.f32 %v2908_v62, %v2905_v22  ;;  %v2930_v36 = vadd.f32 %v2929_v49, %v2926_v40  ;;  %v2786_v13 = vmul.f32 %v2772_v26, %v5794_v30  ;;  %v2807_v9 = vmul.f32 %v2772_v26, %v5800_v32 }
 0x2c5   : > { %v2828_v16 = vmul.f32 %v2772_v26, %v5808_v35  ;;  %v2849_v21 = vmul.f32 %v2772_v26, %v5814_v0  ;;  %v2870_v60 = vmul.f32 %v2772_v26, %v5822_v1  ;;  %v2891_v3 = vmul.f32 %v2772_v26, %v6496_v2 }
 0x2c6   : > { %v2912_v6 = vmul.f32 %v2772_v26, %v6497_v4  ;;  %v2933_v10 = vmul.f32 %v2772_v26, %v5842_v45  ;;  %v2787_v59 = vadd.f32 %v2786_v13, %v2783_v18  ;;  %v2808_v30 = vadd.f32 %v2807_v9, %v2804_v50  ;;  %v4656_v20 = vpop.f32.mrf.mxu1 }
 0x2c7   : > { %v2829_v11 = vadd.f32 %v2828_v16, %v2825_v17  ;;  %v2850_v32 = vadd.f32 %v2849_v21, %v2846_v61  ;;  %v2871_v35 = vadd.f32 %v2870_v60, %v2867_v53  ;;  %v2892_v12 = vadd.f32 %v2891_v3, %v2888_v25 }
 0x2c8   : > { %v2913_v0 = vadd.f32 %v2912_v6, %v2909_v23  ;;  %v2934_v54 = vadd.f32 %v2933_v10, %v2930_v36  ;;  %v2790_v48 = vadd.f32 %v2787_v59, %v5797_v31  ;;  %v2811_v1 = vadd.f32 %v2808_v30, %v5803_v33 }
 0x2c9   : > { %v2832_v56 = vadd.f32 %v2829_v11, %v5811_v37  ;;  %v2853_v45 = vadd.f32 %v2850_v32, %v5817_v38  ;;  %v2874_v26 = vadd.f32 %v2871_v35, %v5825_v39  ;;  %v2895_v55 = vadd.f32 %v2892_v12, %v5831_v41  ;;  %v3625_v38 = vpop.f32.mrf.mxu1 }
 0x2ca   : > { %v2916_v58 = vadd.f32 %v2913_v0, %v5839_v44  ;;  %v2937_v29 = vadd.f32 %v2934_v54, %v5845_v46  ;;  %v2791_v31 = vmax.f32 %v2790_v48, 0.0  ;;  %v2812_v33 = vmax.f32 %v2811_v1, 0.0 }
 0x2cb   : > { %v2833_v22 = vmax.f32 %v2832_v56, 0.0  ;;  %v2854_v37 = vmax.f32 %v2853_v45, 0.0  ;;  %v2875_v40 = vmax.f32 %v2874_v26, 0.0  ;;  %v2896_v39 = vmax.f32 %v2895_v55, 0.0 }
 0x2cc   : > { %v2917_v5 = vmax.f32 %v2916_v58, 0.0  ;;  %v2938_v41 = vmax.f32 %v2937_v29, 0.0  ;;  %4177 = vst.msk [vmem:[%s5929_s4 + $0x10] sm:$0xff] %vm1068_vm1, %v2791_v31  ;;  %4183 = vst.msk [vmem:[%s5929_s4 + $0x30] sm:$0xff] %vm1068_vm1, %v2812_v33  ;;  %v3133_v44 = vmax.f32 %v6037_v8, %v6014_v34  ;;  %v3300_v46 = vmax.f32 %v6059_v27, %v6049_v19 }
 0x2cd   : > { %4189 = vst.msk [vmem:[%s5929_s4 + $0x50] sm:$0xff] %vm1068_vm1, %v2833_v22  ;;  %4195 = vst.msk [vmem:[%s5929_s4 + $0x70] sm:$0xff] %vm1068_vm1, %v2854_v37  ;;  %v3773_v52 = vstv %s6071_s0  ;;  %v3777_v28 = vstv %s6073_s13  ;;  %v3467_v34 = vmax.f32 %v3458_v24, %v6061_v15  ;;  %v3634_v8 = vmax.f32 %v3625_v38, %v4656_v20 }
 0x2ce   : > { %4201 = vst.msk [vmem:[%s5929_s4 + $0x90] sm:$0xff] %vm1068_vm1, %v2875_v40  ;;  %4207 = vst.msk [vmem:[%s5929_s4 + $0xb0] sm:$0xff] %vm1068_vm1, %v2896_v39  ;;  %v3794_v19 = vstv %s6079_s9  ;;  %v3798_v27 = vstv %s6085_s6 }
 0x2cf   : > { %4213 = vst.msk [vmem:[%s5929_s4 + $0xd0] sm:$0xff] %vm1068_vm1, %v2917_v5  ;;  %4219 = vst.msk [vmem:[%s5929_s4 + $0xf0] sm:$0xff] %vm1068_vm1, %v2938_v41  ;;  %v6498_v43 = vstv %s6445_s15  ;;  %v6499_v63 = vstv %s6446_s30 }
 0x2d0   : > { %v3637_v57 = vmul.f32 %v6498_v43, %v3133_v44  ;;  %v3658_v47 = vmul.f32 %v6499_v63, %v3133_v44  ;;  %v6500_v62 = vstv %s6447_s29  ;;  %v6501_v18 = vstv %s6448_s7 }
 0x2d1   : > { %v3679_v49 = vmul.f32 %v6500_v62, %v3133_v44  ;;  %v3700_v50 = vmul.f32 %v6501_v18, %v3133_v44  ;;  %v6502_v17 = vstv %s6450_s16  ;;  %v6503_v53 = vstv %s6451_s8 }
 0x2d2   : > { %v3721_v61 = vmul.f32 %v6502_v17, %v3133_v44  ;;  %v3742_v25 = vmul.f32 %v6503_v53, %v3133_v44  ;;  %v6504_v15 = vstv %s6453_s11  ;;  %v6505_v23 = vstv %s6454_s28 }
 0x2d3   : > { %v3763_v24 = vmul.f32 %v6504_v15, %v3133_v44  ;;  %v3784_v36 = vmul.f32 %v6505_v23, %v3133_v44  ;;  %v6506_v13 = vstv %s6456_s24  ;;  %v6507_v16 = vstv %s5693_s2  ;;  %s6533_s2 = sld [smem:[#allocation44_spill]] }
 0x2d4   : > { %v3640_v9 = vmul.f32 %v6506_v13, %v3300_v46  ;;  %v3661_v21 = vmul.f32 %v6507_v16, %v3300_v46  ;;  %v6508_v60 = vstv %s5695_s20  ;;  %v6509_v3 = vstv %s5697_s19 }
 0x2d5   : > { %v3682_v2 = vmul.f32 %v6508_v60, %v3300_v46  ;;  %v3703_v4 = vmul.f32 %v6509_v3, %v3300_v46  ;;  %v6510_v6 = vstv %s5699_s18  ;;  %v6511_v59 = vstv %s6459_s14  ;;  %s6516_s18 = sld [smem:[#allocation39_spill]] }
 0x2d6   : > { %v3724_v10 = vmul.f32 %v6510_v6, %v3300_v46  ;;  %v3745_v30 = vmul.f32 %v6511_v59, %v3300_v46  ;;  %v6512_v11 = vstv %s5703_s5  ;;  %v6513_v20 = vstv %s5705_s22  ;;  %s6518_s5 = sld [smem:[#allocation41_spill]] }
 0x2d7   : > { %v3766_v32 = vmul.f32 %v6512_v11, %v3300_v46  ;;  %v3787_v35 = vmul.f32 %v6513_v20, %v3300_v46  ;;  %v3641_v12 = vadd.f32 %v3640_v9, %v3637_v57  ;;  %v3662_v0 = vadd.f32 %v3661_v21, %v3658_v47  ;;  %s6530_s22 = sld [smem:[#allocation42_spill]] }
 0x2d8   : > { %v3683_v54 = vadd.f32 %v3682_v2, %v3679_v49  ;;  %v3704_v48 = vadd.f32 %v3703_v4, %v3700_v50  ;;  %v3725_v1 = vadd.f32 %v3724_v10, %v3721_v61  ;;  %v3746_v56 = vadd.f32 %v3745_v30, %v3742_v25 }
 0x2d9   : > { %v3767_v45 = vadd.f32 %v3766_v32, %v3763_v24  ;;  %v3788_v26 = vadd.f32 %v3787_v35, %v3784_v36  ;;  %v6514_v55 = vstv %s5707_s21  ;;  %v6515_v29 = vstv %s5721_s25  ;;  %s6528_s21 = sld [smem:[#allocation40_spill]] }
 0x2da   : > { %v3644_v58 = vmul.f32 %v6514_v55, %v3467_v34  ;;  %v3665_v31 = vmul.f32 %v6515_v29, %v3467_v34  ;;  %v6517_v33 = vstv %s6460_s10  ;;  %v6519_v37 = vstv %s5749_s26  ;;  %s6532_s25 = sld [smem:[#allocation43_spill]] }
 0x2db   : > { %v3686_v22 = vmul.f32 %v6517_v33, %v3467_v34  ;;  %v3707_v38 = vmul.f32 %v6519_v37, %v3467_v34  ;;  %v6520_v40 = vstv %s5763_s3  ;;  %v6521_v5 = vstv %s5777_s17  ;;  %s6540_s17 = sld [smem:[#allocation36_spill]] }
 0x2dc   : > { %v3728_v39 = vmul.f32 %v6520_v40, %v3467_v34  ;;  %v3749_v41 = vmul.f32 %v6521_v5, %v3467_v34  ;;  %v6523_v44 = vstv %s6461_s12  ;;  %v6525_v43 = vstv %s6462_s27 }
 0x2dd   : > { %v3770_v46 = vmul.f32 %v6523_v44, %v3467_v34  ;;  %v3791_v57 = vmul.f32 %v6525_v43, %v3467_v34  ;;  %v3645_v63 = vadd.f32 %v3644_v58, %v3641_v12  ;;  %v3666_v47 = vadd.f32 %v3665_v31, %v3662_v0 }
 0x2de   : > { %v3687_v62 = vadd.f32 %v3686_v22, %v3683_v54  ;;  %v3708_v49 = vadd.f32 %v3707_v38, %v3704_v48  ;;  %v3729_v18 = vadd.f32 %v3728_v39, %v3725_v1  ;;  %v3750_v50 = vadd.f32 %v3749_v41, %v3746_v56 }
 0x2df   : > { %v3771_v17 = vadd.f32 %v3770_v46, %v3767_v45  ;;  %v3792_v61 = vadd.f32 %v3791_v57, %v3788_v26  ;;  %v6526_v53 = vstv %s6516_s18  ;;  %v6527_v15 = vstv %s6518_s5 }
 0x2e0   : > { %v3648_v25 = vmul.f32 %v6526_v53, %v3634_v8  ;;  %v3669_v24 = vmul.f32 %v6527_v15, %v3634_v8  ;;  %v6529_v23 = vstv %s5902_s23  ;;  %v6531_v13 = vstv %s5912_s1 }
 0x2e1   : > { %v3690_v36 = vmul.f32 %v6529_v23, %v3634_v8  ;;  %v3711_v9 = vmul.f32 %v6531_v13, %v3634_v8  ;;  %v3732_v34 = vmul.f32 %v3731_v14, %v3634_v8  ;;  %v3753_v16 = vmul.f32 %v3752_v42, %v3634_v8  ;;  %s3804_s24 = scalar_lea.sflag [#allocation4], %s6540_s17 }
 0x2e2   : > { %v3774_v21 = vmul.f32 %v3773_v52, %v3634_v8  ;;  %v3795_v60 = vmul.f32 %v3794_v19, %v3634_v8  ;;  %v3649_v2 = vadd.f32 %v3648_v25, %v3645_v63  ;;  %v3670_v3 = vadd.f32 %v3669_v24, %v3666_v47 }
 0x2e3   : > { %v3691_v4 = vadd.f32 %v3690_v36, %v3687_v62  ;;  %v3712_v6 = vadd.f32 %v3711_v9, %v3708_v49  ;;  %v3733_v10 = vadd.f32 %v3732_v34, %v3729_v18  ;;  %v3754_v59 = vadd.f32 %v3753_v16, %v3750_v50 }
 0x2e4   : > { %v3775_v30 = vadd.f32 %v3774_v21, %v3771_v17  ;;  %v3796_v11 = vadd.f32 %v3795_v60, %v3792_v61  ;;  %v6536_v32 = vstv %s6528_s21  ;;  %v6537_v35 = vstv %s6530_s22 }
 0x2e5   : > { %v3652_v20 = vadd.f32 %v6536_v32, %v3649_v2  ;;  %v3673_v14 = vadd.f32 %v6537_v35, %v3670_v3  ;;  %v6538_v12 = vstv %s6532_s25  ;;  %v6539_v52 = vstv %s6533_s2 }
 0x2e6   : > { %v3694_v42 = vadd.f32 %v6538_v12, %v3691_v4  ;;  %v3715_v8 = vadd.f32 %v6539_v52, %v3712_v6  ;;  %v3736_v19 = vadd.f32 %v3735_v7, %v3733_v10  ;;  %v3757_v0 = vadd.f32 %v3756_v51, %v3754_v59 }
 0x2e7   : > { %v3778_v54 = vadd.f32 %v3777_v28, %v3775_v30  ;;  %v3799_v48 = vadd.f32 %v3798_v27, %v3796_v11  ;;  %v3653_v1 = vmax.f32 %v3652_v20, 0.0  ;;  %v3674_v56 = vmax.f32 %v3673_v14, 0.0 }
 0x2e8   : > { %v3695_v45 = vmax.f32 %v3694_v42, 0.0  ;;  %v3716_v26 = vmax.f32 %v3715_v8, 0.0  ;;  %v3737_v55 = vmax.f32 %v3736_v19, 0.0  ;;  %v3758_v58 = vmax.f32 %v3757_v0, 0.0 }
 0x2e9   : > { %v3779_v29 = vmax.f32 %v3778_v54, 0.0  ;;  %v3800_v31 = vmax.f32 %v3799_v48, 0.0  ;;  %4255 = vst.msk [vmem:[%s5929_s4 + $0x18] sm:$0xff] %vm1068_vm1, %v3653_v1  ;;  %4261 = vst.msk [vmem:[%s5929_s4 + $0x38] sm:$0xff] %vm1068_vm1, %v3674_v56 }
 0x2ea   : > { %4267 = vst.msk [vmem:[%s5929_s4 + $0x58] sm:$0xff] %vm1068_vm1, %v3695_v45  ;;  %4273 = vst.msk [vmem:[%s5929_s4 + $0x78] sm:$0xff] %vm1068_vm1, %v3716_v26 }
 0x2eb   : > { %4279 = vst.msk [vmem:[%s5929_s4 + $0x98] sm:$0xff] %vm1068_vm1, %v3737_v55  ;;  %4285 = vst.msk [vmem:[%s5929_s4 + $0xb8] sm:$0xff] %vm1068_vm1, %v3758_v58 }
 0x2ec   : > { %4291 = vst.msk [vmem:[%s5929_s4 + $0xd8] sm:$0xff] %vm1068_vm1, %v3779_v29  ;;  %4297 = vst.msk [vmem:[%s5929_s4 + $0xf8] sm:$0xff] %vm1068_vm1, %v3800_v31 }
 0x2ed   : > { %s6541_s8 = sld [smem:[#allocation26_spill]]  ;;  %s3829_s11 = sshll.u32 %s5929_s4, 4  ;;  %s3830_s11 = int_to_ptr.vmem [resolvable:$true] %s3829_s11 }
 0x2ee   : > { %s6542_s15 = sld [smem:[#allocation27_spill]]  ;;  %s4979_s12 = smov 512  }
 0x2ef   : > { %s6543_s30 = sld [smem:[#allocation33_spill]]  ;;  %s4980_s27 = smov 1024  }
 0x2f0   : > { %s6544_s14 = sld [smem:[#allocation89_spill]]  ;;  %s4981_s0 = smov 4  }
 0x2f1   : > { %s4982_s23 = smov 128   ;;  %s4983_s4 = smov 8  }
 0x2f2   : > { %s4984_s9 = smov 131072   ;;  %s4985_s6 = smov 0  }
 0x2f3   : > { %s4299_s29 = sshll.u32 %s6541_s8, 2 }
 0x2f4   : > { %s4300_s7 = sshll.u32 %s6542_s15, 6 }
 0x2f5   : > { %s3816_s16 = sadd.s32 %s4300_s7, %s4299_s29  ;;  %p6545_p13 = scmp.ne.s32.totalorder %s6543_s30, 0 }
 0x2f6   : > { %s4301_s28 = sshll.u32 %s3816_s16, 7 }
 0x2f7   : > { %s3818_s10 = scalar_lea.hbm %s6544_s14, %s4301_s28  ;;  %4682 = sst [smem:[#allocation16]] (%p6545_p13), %s4979_s12 }
 0x2f8   : > { %4683 = sst [smem:[#allocation16 + $0x1]] (%p6545_p13), %s4980_s27 }
 0x2f9   : > { %4684 = sst [smem:[#allocation16 + $0x2]] (%p6545_p13), %s4981_s0 }
 0x2fa   : > { %4685 = sst [smem:[#allocation16 + $0x3]] (%p6545_p13), %s4982_s23 }
 0x2fb   : > { %4686 = sst [smem:[#allocation16 + $0x4]] (%p6545_p13), %s4982_s23 }
 0x2fc   : > { %4687 = sst [smem:[#allocation16 + $0x5]] (%p6545_p13), %s4983_s4 }
 0x2fd   : > { %4688 = dma.general (%p6545_p13), %s3830_s11, 4096, %s3818_s10, %s3804_s24, %s4984_s9, [#allocation16], %s4985_s6, 0  }
 0x2fe PF: > { %s6546_s18 = sld [smem:[#allocation30_spill]] }
 0x2ff   : > { %s6547_s5 = sld [smem:[#allocation23_spill]] }
 0x300   : > { %s6548_s19 = sld [smem:[#allocation34_spill]] }
 0x304   : > { %p4715_p0 = scmp.ge.s32.totalorder %s6546_s18, 2 }
 0x305   : > { %s3857_s20 = sand.u32 1, %s6547_s5  }
 0x306   : > { %p6549_p1 = scmp.ne.s32.totalorder %s6548_s19, 0  ;;  %s3858_s21 = scalar_lea.sflag [#allocation4], %s3857_s20 }
 0x308   : > { %p4704_p7 = pnand %p4715_p0, %p6549_p1 }
 0x30a   : > { %p4705_p10 = pneg %p4704_p7 }
 0x30c   : > { %4931 = dma.done.wait (%p4705_p10), %s3858_s21, 4096  }
 0x30d   : > { %4933 = vsyncadd (%p4705_p10), %s3858_s21, 4294963200  ;;  %s24_s25 = sadd.s32 1, %s6546_s18   ;;  %s6550_s18 = sld [smem:[#allocation24_spill]] }
 0x30e   : > { %p21_p12 = scmp.ge.s32.totalorder %s24_s25, 6   ;;  %s6551_s19 = sld [smem:[#allocation25_spill]] }
 0x30f   : > { %s6552_s20 = sld [smem:[#allocation35_spill]] }
 0x310   : > { %s6553_s21 = sld [smem:[#allocation28_spill]]  ;;  %23 = sbr.rel (!%p21_p12) target bundleno = 17 (0x11), region = 150 }
 0x311   : > { %s6554_s22 = sld [smem:[#allocation29_spill]] }
 0x312   : > { %s6555_s23 = sld [smem:[#allocation31_spill]] }
 0x313   : > { %s6556_s24 = sld [smem:[#allocation32_spill]] }
 0x315   :  { %3863 = vsyncpa [#allocation3], 1 }
 0x316   :  { %3865 = vsyncpa [#allocation3 + $0x1], 1 }
 0x317   :  { %3866 = vsyncpa [#allocation7], 1 }
 0x318   :  { %3867 = vsyncpa [#allocation4], 1 }
 0x319   :  { %3869 = vsyncpa [#allocation4 + $0x1], 1 }
 0x31a   :  { %3870 = vsyncpa [#allocation5], 1 }
 0x31b   :  { %3872 = vsyncpa [#allocation5 + $0x1], 1 }
 0x31c   :  { %3873 = vsyncpa [#allocation11], 1 }

</bundles_post_ra>
